<compile_context>
chip_gen: v7x
topology: tpu7x:2x2x1
jax: 0.10.0
libtpu: 0.0.40
codegen_flags: <defaults>
</compile_context>

<pallas_src>
import functools

import jax
import jax.numpy as jnp
import numpy as np
from jax.experimental import pallas as pl
from jax.experimental.pallas import tpu as pltpu


def _round_up(x, m):
    return (x + m - 1) // m * m


# ----------------------------------------------------------------------------
# Fused kernel: conv1 matmul -> conv2 (selection-matmul im2col) -> ReLU ->
# MaxPool3d(2) -> fc1 -> ReLU -> fc2.  One batch element per grid step.
# ----------------------------------------------------------------------------
def _voxnet_fused_kernel(p1_ref, g_ref, w1_ref, b1_ref, w2_ref, b2_ref,
                         wf1_ref, bf1_ref, wf2_ref, bf2_ref, o_ref,
                         *, n_taps, n_windows):
    f32 = jnp.float32
    bf16 = jnp.bfloat16

    # conv3d_1 as a matmul: a1 = relu(p1 @ w1 + b1), (M1p, 128) f32 epilogue.
    a1 = jnp.dot(p1_ref[...], w1_ref[...], preferred_element_type=f32)
    a1 = jnp.maximum(a1 + b1_ref[...], 0.0).astype(bf16)
    # (rows M1..M1p of a1 are junk; G's corresponding columns are zero.)

    # In-kernel im2col for conv3d_2 with pool-grouped row ordering: a single
    # MXU matmul against a 0/1 selection matrix (exact gather, no relayouts).
    p2 = jnp.dot(g_ref[...], a1, preferred_element_type=f32).astype(bf16)

    # conv3d_2 = sum of per-tap matmuls, f32 accumulation.
    rows = n_windows * 8
    acc = jnp.dot(p2[0:rows, :], w2_ref[0], preferred_element_type=f32)
    for t in range(1, n_taps):
        acc = acc + jnp.dot(p2[t * rows:(t + 1) * rows, :], w2_ref[t],
                            preferred_element_type=f32)
    acc = jnp.maximum(acc + b2_ref[...], 0.0)

    # MaxPool3d(2): max over the 8 members of each 2x2x2 window (sublane reduce;
    # the reshape is tile-aligned, lanes stay 128 wide).
    pooled = jnp.max(acc.reshape(n_windows, 8, 128), axis=1).astype(bf16)

    # fc1 + ReLU: contraction over (window, channel) as accumulated matmuls
    # against the pre-permuted fc1 weight (avoids a sublane->lane flatten).
    h = jnp.dot(pooled[0:1, :], wf1_ref[0], preferred_element_type=f32)
    for s in range(1, n_windows):
        h = h + jnp.dot(pooled[s:s + 1, :], wf1_ref[s],
                        preferred_element_type=f32)
    h = jnp.maximum(h + bf1_ref[...], 0.0).astype(bf16)

    # fc2 (logits padded to 128 lanes -> unmasked, lane-dense store).
    logits = jnp.dot(h, wf2_ref[...], preferred_element_type=f32) + bf2_ref[...]
    o_ref[...] = jnp.broadcast_to(logits, (8, 128)).astype(o_ref.dtype)


# ----------------------------------------------------------------------------
# Geometry / parameter preparation (all done ONCE, outside the forward pass)
# ----------------------------------------------------------------------------
def voxnet_geometry(input_shape):
    D, H, W = input_shape
    k1, s1, k2 = 5, 2, 3
    D1, H1, W1 = [(d - k1) // s1 + 1 for d in (D, H, W)]
    D2, H2, W2 = D1 - k2 + 1, H1 - k2 + 1, W1 - k2 + 1
    Dp, Hp, Wp = D2 // 2, H2 // 2, W2 // 2
    M1 = D1 * H1 * W1
    return dict(
        k1=k1, s1=s1, k2=k2,
        D1=D1, H1=H1, W1=W1, Dp=Dp, Hp=Hp, Wp=Wp,
        M1=M1, M1p=_round_up(max(M1, 8), 128),
        n_taps=k2 ** 3, n_windows=Dp * Hp * Wp,
    )


def init_voxnet_params(key, n_classes, input_shape):
    """Parameters in PyTorch layouts (Conv3d: (OC,IC,k,k,k); Linear: (out,in))."""
    g = voxnet_geometry(input_shape)
    dim_feat = 32 * g["n_windows"]
    ks = jax.random.split(key, 8)
    return {
        "w1": 0.05 * jax.random.normal(ks[0], (32, 1, 5, 5, 5), jnp.float32),
        "b1": 0.05 * jax.random.normal(ks[1], (32,), jnp.float32),
        "w2": 0.05 * jax.random.normal(ks[2], (32, 32, 3, 3, 3), jnp.float32),
        "b2": 0.05 * jax.random.normal(ks[3], (32,), jnp.float32),
        "wf1": 0.05 * jax.random.normal(ks[4], (128, dim_feat), jnp.float32),
        "bf1": 0.05 * jax.random.normal(ks[5], (128,), jnp.float32),
        "wf2": 0.05 * jax.random.normal(ks[6], (n_classes, 128), jnp.float32),
        "bf2": 0.05 * jax.random.normal(ks[7], (n_classes,), jnp.float32),
    }


def prepare_voxnet(params, geom):
    """One-time weight permutation/padding + the conv2 im2col selection matrix."""
    k2 = geom["k2"]
    H1, W1 = geom["H1"], geom["W1"]
    Dp, Hp, Wp = geom["Dp"], geom["Hp"], geom["Wp"]
    NW, NT, M1p = geom["n_windows"], geom["n_taps"], geom["M1p"]
    rows2 = NW * 8

    # 0/1 selection matrix: row (tap, pool-window, window-member) picks the
    # conv1 output row it reads.  Built once on the host with numpy.
    G = np.zeros((NT * rows2, M1p), np.float32)
    for kd in range(k2):
        for kh in range(k2):
            for kw in range(k2):
                t = (kd * k2 + kh) * k2 + kw
                for pd in range(Dp):
                    for ph in range(Hp):
                        for pw in range(Wp):
                            s = (pd * Hp + ph) * Wp + pw
                            for wd in range(2):
                                for wh in range(2):
                                    for ww in range(2):
                                        m = (wd * 2 + wh) * 2 + ww
                                        r1 = ((2 * pd + wd + kd) * H1
                                              + (2 * ph + wh + kh)) * W1 \
                                             + (2 * pw + ww + kw)
                                        G[t * rows2 + s * 8 + m, r1] = 1.0

    def pad2(a, r, c):
        return jnp.pad(a, ((0, r - a.shape[0]), (0, c - a.shape[1])))

    oc1 = params["w1"].shape[0]
    w1m = pad2(params["w1"].reshape(oc1, -1).T, 128, 128).astype(jnp.bfloat16)
    b1 = jnp.pad(params["b1"], (0, 128 - oc1)).reshape(1, 128).astype(jnp.float32)

    oc2, ic2 = params["w2"].shape[:2]
    w2m = jnp.transpose(params["w2"], (2, 3, 4, 1, 0)).reshape(NT, ic2, oc2)
    w2m = jnp.pad(w2m, ((0, 0), (0, 128 - ic2), (0, 128 - oc2))).astype(jnp.bfloat16)
    b2 = jnp.pad(params["b2"], (0, 128 - oc2)).reshape(1, 128).astype(jnp.float32)

    # fc1: PyTorch flattens (c, pd, ph, pw); our pooled rows are (pd, ph, pw).
    wf1k = params["wf1"].T.reshape(oc2, NW, 128).transpose(1, 0, 2)   # (NW,32,128)
    wf1k = jnp.pad(wf1k, ((0, 0), (0, 128 - oc2), (0, 0))).astype(jnp.bfloat16)
    bf1 = params["bf1"].reshape(1, 128).astype(jnp.float32)

    nc = params["wf2"].shape[0]
    wf2 = jnp.pad(params["wf2"].T, ((0, 0), (0, 128 - nc))).astype(jnp.bfloat16)
    bf2 = jnp.pad(params["bf2"], (0, 128 - nc)).reshape(1, 128).astype(jnp.float32)

    return {"G": jnp.asarray(G, jnp.bfloat16),
            "w1": w1m, "b1": b1, "w2": w2m, "b2": b2,
            "wf1": wf1k, "bf1": bf1, "wf2": wf2, "bf2": bf2}


# ----------------------------------------------------------------------------
# Forward pass
# ----------------------------------------------------------------------------
def _conv1_patches(x, geom):
    """im2col for conv1 (5^3 taps, stride 2) from the raw voxel grid (one op)."""
    B = x.shape[0]
    k1, s1 = geom["k1"], geom["s1"]
    pat = jax.lax.conv_general_dilated_patches(
        x, filter_shape=(k1, k1, k1), window_strides=(s1, s1, s1),
        padding="VALID")                           # (B, k1^3, D1, H1, W1)
    kk = pat.shape[1]                              # 125, ordered (kd,kh,kw)
    pat = jnp.moveaxis(pat, 1, -1).reshape(B, geom["M1"], kk)
    pat = jnp.pad(pat, ((0, 0), (0, geom["M1p"] - geom["M1"]), (0, 128 - kk)))
    return pat.astype(jnp.bfloat16)


def voxnet_forward(x, prep, *, geom, n_classes):
    B = x.shape[0]
    M1p, NT, NW = geom["M1p"], geom["n_taps"], geom["n_windows"]
    GM = NT * NW * 8

    p1 = _conv1_patches(x, geom)                   # (B, M1p, 128) bf16

    flops = 2 * B * (M1p * 128 * 128 + GM * M1p * 128
                     + NT * NW * 8 * 128 * 128 + NW * 128 * 128 + 128 * 128)
    bytes_acc = (p1.size * 2 + prep["G"].size * 2 + prep["w1"].size * 2
                 + prep["w2"].size * 2 + prep["wf1"].size * 2
                 + prep["wf2"].size * 2 + 6 * 128 * 4 + B * 8 * 128 * 4)
    ce = pl.CostEstimate(flops=flops, transcendentals=0, bytes_accessed=bytes_acc)

    kernel = functools.partial(_voxnet_fused_kernel, n_taps=NT, n_windows=NW)
    out = pl.pallas_call(
        kernel,
        out_shape=jax.ShapeDtypeStruct((B, 8, 128), jnp.float32),
        grid=(B,),
        in_specs=[
            pl.BlockSpec((None, M1p, 128), lambda b: (b, 0, 0)),   # conv1 patches
            pl.BlockSpec((GM, M1p), lambda b: (0, 0)),             # selection G
            pl.BlockSpec((128, 128), lambda b: (0, 0)),            # w1
            pl.BlockSpec((1, 128), lambda b: (0, 0)),              # b1
            pl.BlockSpec((NT, 128, 128), lambda b: (0, 0, 0)),     # w2 taps
            pl.BlockSpec((1, 128), lambda b: (0, 0)),              # b2
            pl.BlockSpec((NW, 128, 128), lambda b: (0, 0, 0)),     # fc1 (permuted)
            pl.BlockSpec((1, 128), lambda b: (0, 0)),              # bf1
            pl.BlockSpec((128, 128), lambda b: (0, 0)),            # fc2
            pl.BlockSpec((1, 128), lambda b: (0, 0)),              # bf2
        ],
        out_specs=pl.BlockSpec((None, 8, 128), lambda b: (b, 0, 0)),
        compiler_params=pltpu.CompilerParams(dimension_semantics=("parallel",)),
        cost_estimate=ce,
    )(p1, prep["G"], prep["w1"], prep["b1"], prep["w2"], prep["b2"],
      prep["wf1"], prep["bf1"], prep["wf2"], prep["bf2"])
    return out[:, 0, :n_classes]


# ----------------------------------------------------------------------------
# Pure-XLA f32 reference (for a loose-tolerance correctness check)
# ----------------------------------------------------------------------------
def voxnet_reference(x, params):
    dn = ("NCDHW", "OIDHW", "NCDHW")
    y = jax.lax.conv_general_dilated(x, params["w1"], (2, 2, 2), "VALID",
                                     dimension_numbers=dn)
    y = jax.nn.relu(y + params["b1"].reshape(1, -1, 1, 1, 1))
    y = jax.lax.conv_general_dilated(y, params["w2"], (1, 1, 1), "VALID",
                                     dimension_numbers=dn)
    y = jax.nn.relu(y + params["b2"].reshape(1, -1, 1, 1, 1))
    y = jax.lax.reduce_window(y, -jnp.inf, jax.lax.max,
                              (1, 1, 2, 2, 2), (1, 1, 2, 2, 2), "VALID")
    f = y.reshape(y.shape[0], -1)
    h = jax.nn.relu(f @ params["wf1"].T + params["bf1"])
    return h @ params["wf2"].T + params["bf2"]


if __name__ == "__main__":
    key = jax.random.PRNGKey(0)
    k_param, k_input = jax.random.split(key)

    n_classes = 10
    input_shape = (16, 16, 16)     # small spatial size consistent with the module
    batch = 2

    geom = voxnet_geometry(input_shape)
    params = init_voxnet_params(k_param, n_classes, input_shape)
    prep = prepare_voxnet(params, geom)            # one-time weight prep (+ G)

    x = jax.random.normal(k_input, (batch, 1) + input_shape, jnp.float32)

    fwd = jax.jit(functools.partial(voxnet_forward, geom=geom, n_classes=n_classes))
    out = jax.block_until_ready(fwd(x, prep))
    assert out.shape == (batch, n_classes), out.shape
    assert bool(jnp.all(jnp.isfinite(out)))

    # bf16 MXU math vs f32 XLA reference -> loose tolerance.
    ref = jax.block_until_ready(voxnet_reference(x, params))
    np.testing.assert_allclose(np.asarray(out), np.asarray(ref),
                               rtol=5e-2, atol=5e-2)

    print("KERNEL_OK")
</pallas_src>

<mosaic_0001>
module attributes {stable_mosaic.version = 11 : i64} {
  func.func @_voxnet_fused_kernel(%arg0: i32, %arg1: memref<1x256x128xbf16, #tpu.memory_space<vmem>>, %arg2: memref<1728x256xbf16, #tpu.memory_space<vmem>>, %arg3: memref<128x128xbf16, #tpu.memory_space<vmem>>, %arg4: memref<1x128xf32, #tpu.memory_space<vmem>>, %arg5: memref<27x128x128xbf16, #tpu.memory_space<vmem>>, %arg6: memref<1x128xf32, #tpu.memory_space<vmem>>, %arg7: memref<8x128x128xbf16, #tpu.memory_space<vmem>>, %arg8: memref<1x128xf32, #tpu.memory_space<vmem>>, %arg9: memref<128x128xbf16, #tpu.memory_space<vmem>>, %arg10: memref<1x128xf32, #tpu.memory_space<vmem>>, %arg11: memref<1x8x128xf32, #tpu.memory_space<vmem>>) attributes {dimension_semantics = [#tpu.dimension_semantics<parallel>], iteration_bounds = array<i64: 2>, scalar_prefetch = 0 : i64, scratch_operands = 0 : i64, tpu.core_type = #tpu.core_type<tc>, window_params = [{transform_indices = @transform_0, window_bounds = array<i64: 1, 256, 128>}, {pipeline_mode = #tpu.pipeline_mode<synchronous>, transform_indices = @transform_1, window_bounds = array<i64: 1728, 256>}, {pipeline_mode = #tpu.pipeline_mode<synchronous>, transform_indices = @transform_2, window_bounds = array<i64: 128, 128>}, {pipeline_mode = #tpu.pipeline_mode<synchronous>, transform_indices = @transform_3, window_bounds = array<i64: 1, 128>}, {pipeline_mode = #tpu.pipeline_mode<synchronous>, transform_indices = @transform_4, window_bounds = array<i64: 27, 128, 128>}, {pipeline_mode = #tpu.pipeline_mode<synchronous>, transform_indices = @transform_5, window_bounds = array<i64: 1, 128>}, {pipeline_mode = #tpu.pipeline_mode<synchronous>, transform_indices = @transform_6, window_bounds = array<i64: 8, 128, 128>}, {pipeline_mode = #tpu.pipeline_mode<synchronous>, transform_indices = @transform_7, window_bounds = array<i64: 1, 128>}, {pipeline_mode = #tpu.pipeline_mode<synchronous>, transform_indices = @transform_8, window_bounds = array<i64: 128, 128>}, {pipeline_mode = #tpu.pipeline_mode<synchronous>, transform_indices = @transform_9, window_bounds = array<i64: 1, 128>}, {transform_indices = @transform_10, window_bounds = array<i64: 1, 8, 128>}]} {
    %c0 = arith.constant 0 : index
    %c0_0 = arith.constant 0 : index
    %c0_1 = arith.constant 0 : index
    %0 = vector.load %arg1[%c0, %c0_0, %c0_1] : memref<1x256x128xbf16, #tpu.memory_space<vmem>>, vector<1x256x128xbf16>
    %1 = vector.shape_cast %0 : vector<1x256x128xbf16> to vector<256x128xbf16>
    %c0_2 = arith.constant 0 : index
    %c0_3 = arith.constant 0 : index
    %2 = vector.load %arg3[%c0_2, %c0_3] : memref<128x128xbf16, #tpu.memory_space<vmem>>, vector<128x128xbf16>
    %cst = arith.constant dense<0.000000e+00> : vector<256x128xf32>
    %3 = tpu.matmul %1, %2, %cst {dimension_numbers = #tpu.dot_dimension_numbers<[1], [0], [0], [1], [0, 0, 1, 1], [], []>} : vector<256x128xbf16>, vector<128x128xbf16>, vector<256x128xf32> -> vector<256x128xf32>
    %c0_4 = arith.constant 0 : index
    %c0_5 = arith.constant 0 : index
    %4 = vector.load %arg4[%c0_4, %c0_5] : memref<1x128xf32, #tpu.memory_space<vmem>>, vector<1x128xf32>
    %5 = vector.broadcast %4 : vector<1x128xf32> to vector<256x128xf32>
    %6 = arith.addf %3, %5 : vector<256x128xf32>
    %cst_6 = arith.constant 0.000000e+00 : f32
    %7 = vector.broadcast %cst_6 : f32 to vector<256x128xf32>
    %8 = arith.maximumf %6, %7 : vector<256x128xf32>
    %9 = arith.truncf %8 : vector<256x128xf32> to vector<256x128xbf16>
    %c0_7 = arith.constant 0 : index
    %c0_8 = arith.constant 0 : index
    %10 = vector.load %arg2[%c0_7, %c0_8] : memref<1728x256xbf16, #tpu.memory_space<vmem>>, vector<1728x256xbf16>
    %cst_9 = arith.constant dense<0.000000e+00> : vector<1728x128xf32>
    %11 = tpu.matmul %10, %9, %cst_9 {dimension_numbers = #tpu.dot_dimension_numbers<[1], [0], [0], [1], [0, 0, 1, 1], [], []>} : vector<1728x256xbf16>, vector<256x128xbf16>, vector<1728x128xf32> -> vector<1728x128xf32>
    %12 = arith.truncf %11 : vector<1728x128xf32> to vector<1728x128xbf16>
    %13 = vector.extract_strided_slice %12 {offsets = [0, 0], sizes = [64, 128], strides = [1, 1]} : vector<1728x128xbf16> to vector<64x128xbf16>
    %c0_10 = arith.constant 0 : index
    %c0_11 = arith.constant 0 : index
    %c0_12 = arith.constant 0 : index
    %14 = vector.load %arg5[%c0_10, %c0_11, %c0_12] : memref<27x128x128xbf16, #tpu.memory_space<vmem>>, vector<1x128x128xbf16>
    %15 = vector.shape_cast %14 : vector<1x128x128xbf16> to vector<128x128xbf16>
    %cst_13 = arith.constant dense<0.000000e+00> : vector<64x128xf32>
    %16 = tpu.matmul %13, %15, %cst_13 {dimension_numbers = #tpu.dot_dimension_numbers<[1], [0], [0], [1], [0, 0, 1, 1], [], []>} : vector<64x128xbf16>, vector<128x128xbf16>, vector<64x128xf32> -> vector<64x128xf32>
    %17 = vector.extract_strided_slice %12 {offsets = [64, 0], sizes = [64, 128], strides = [1, 1]} : vector<1728x128xbf16> to vector<64x128xbf16>
    %c1 = arith.constant 1 : index
    %c0_14 = arith.constant 0 : index
    %c0_15 = arith.constant 0 : index
    %18 = vector.load %arg5[%c1, %c0_14, %c0_15] : memref<27x128x128xbf16, #tpu.memory_space<vmem>>, vector<1x128x128xbf16>
    %19 = vector.shape_cast %18 : vector<1x128x128xbf16> to vector<128x128xbf16>
    %cst_16 = arith.constant dense<0.000000e+00> : vector<64x128xf32>
    %20 = tpu.matmul %17, %19, %cst_16 {dimension_numbers = #tpu.dot_dimension_numbers<[1], [0], [0], [1], [0, 0, 1, 1], [], []>} : vector<64x128xbf16>, vector<128x128xbf16>, vector<64x128xf32> -> vector<64x128xf32>
    %21 = arith.addf %16, %20 : vector<64x128xf32>
    %22 = vector.extract_strided_slice %12 {offsets = [128, 0], sizes = [64, 128], strides = [1, 1]} : vector<1728x128xbf16> to vector<64x128xbf16>
    %c2 = arith.constant 2 : index
    %c0_17 = arith.constant 0 : index
    %c0_18 = arith.constant 0 : index
    %23 = vector.load %arg5[%c2, %c0_17, %c0_18] : memref<27x128x128xbf16, #tpu.memory_space<vmem>>, vector<1x128x128xbf16>
    %24 = vector.shape_cast %23 : vector<1x128x128xbf16> to vector<128x128xbf16>
    %cst_19 = arith.constant dense<0.000000e+00> : vector<64x128xf32>
    %25 = tpu.matmul %22, %24, %cst_19 {dimension_numbers = #tpu.dot_dimension_numbers<[1], [0], [0], [1], [0, 0, 1, 1], [], []>} : vector<64x128xbf16>, vector<128x128xbf16>, vector<64x128xf32> -> vector<64x128xf32>
    %26 = arith.addf %21, %25 : vector<64x128xf32>
    %27 = vector.extract_strided_slice %12 {offsets = [192, 0], sizes = [64, 128], strides = [1, 1]} : vector<1728x128xbf16> to vector<64x128xbf16>
    %c3 = arith.constant 3 : index
    %c0_20 = arith.constant 0 : index
    %c0_21 = arith.constant 0 : index
    %28 = vector.load %arg5[%c3, %c0_20, %c0_21] : memref<27x128x128xbf16, #tpu.memory_space<vmem>>, vector<1x128x128xbf16>
    %29 = vector.shape_cast %28 : vector<1x128x128xbf16> to vector<128x128xbf16>
    %cst_22 = arith.constant dense<0.000000e+00> : vector<64x128xf32>
    %30 = tpu.matmul %27, %29, %cst_22 {dimension_numbers = #tpu.dot_dimension_numbers<[1], [0], [0], [1], [0, 0, 1, 1], [], []>} : vector<64x128xbf16>, vector<128x128xbf16>, vector<64x128xf32> -> vector<64x128xf32>
    %31 = arith.addf %26, %30 : vector<64x128xf32>
    %32 = vector.extract_strided_slice %12 {offsets = [256, 0], sizes = [64, 128], strides = [1, 1]} : vector<1728x128xbf16> to vector<64x128xbf16>
    %c4 = arith.constant 4 : index
    %c0_23 = arith.constant 0 : index
    %c0_24 = arith.constant 0 : index
    %33 = vector.load %arg5[%c4, %c0_23, %c0_24] : memref<27x128x128xbf16, #tpu.memory_space<vmem>>, vector<1x128x128xbf16>
    %34 = vector.shape_cast %33 : vector<1x128x128xbf16> to vector<128x128xbf16>
    %cst_25 = arith.constant dense<0.000000e+00> : vector<64x128xf32>
    %35 = tpu.matmul %32, %34, %cst_25 {dimension_numbers = #tpu.dot_dimension_numbers<[1], [0], [0], [1], [0, 0, 1, 1], [], []>} : vector<64x128xbf16>, vector<128x128xbf16>, vector<64x128xf32> -> vector<64x128xf32>
    %36 = arith.addf %31, %35 : vector<64x128xf32>
    %37 = vector.extract_strided_slice %12 {offsets = [320, 0], sizes = [64, 128], strides = [1, 1]} : vector<1728x128xbf16> to vector<64x128xbf16>
    %c5 = arith.constant 5 : index
    %c0_26 = arith.constant 0 : index
    %c0_27 = arith.constant 0 : index
    %38 = vector.load %arg5[%c5, %c0_26, %c0_27] : memref<27x128x128xbf16, #tpu.memory_space<vmem>>, vector<1x128x128xbf16>
    %39 = vector.shape_cast %38 : vector<1x128x128xbf16> to vector<128x128xbf16>
    %cst_28 = arith.constant dense<0.000000e+00> : vector<64x128xf32>
    %40 = tpu.matmul %37, %39, %cst_28 {dimension_numbers = #tpu.dot_dimension_numbers<[1], [0], [0], [1], [0, 0, 1, 1], [], []>} : vector<64x128xbf16>, vector<128x128xbf16>, vector<64x128xf32> -> vector<64x128xf32>
    %41 = arith.addf %36, %40 : vector<64x128xf32>
    %42 = vector.extract_strided_slice %12 {offsets = [384, 0], sizes = [64, 128], strides = [1, 1]} : vector<1728x128xbf16> to vector<64x128xbf16>
    %c6 = arith.constant 6 : index
    %c0_29 = arith.constant 0 : index
    %c0_30 = arith.constant 0 : index
    %43 = vector.load %arg5[%c6, %c0_29, %c0_30] : memref<27x128x128xbf16, #tpu.memory_space<vmem>>, vector<1x128x128xbf16>
    %44 = vector.shape_cast %43 : vector<1x128x128xbf16> to vector<128x128xbf16>
    %cst_31 = arith.constant dense<0.000000e+00> : vector<64x128xf32>
    %45 = tpu.matmul %42, %44, %cst_31 {dimension_numbers = #tpu.dot_dimension_numbers<[1], [0], [0], [1], [0, 0, 1, 1], [], []>} : vector<64x128xbf16>, vector<128x128xbf16>, vector<64x128xf32> -> vector<64x128xf32>
    %46 = arith.addf %41, %45 : vector<64x128xf32>
    %47 = vector.extract_strided_slice %12 {offsets = [448, 0], sizes = [64, 128], strides = [1, 1]} : vector<1728x128xbf16> to vector<64x128xbf16>
    %c7 = arith.constant 7 : index
    %c0_32 = arith.constant 0 : index
    %c0_33 = arith.constant 0 : index
    %48 = vector.load %arg5[%c7, %c0_32, %c0_33] : memref<27x128x128xbf16, #tpu.memory_space<vmem>>, vector<1x128x128xbf16>
    %49 = vector.shape_cast %48 : vector<1x128x128xbf16> to vector<128x128xbf16>
    %cst_34 = arith.constant dense<0.000000e+00> : vector<64x128xf32>
    %50 = tpu.matmul %47, %49, %cst_34 {dimension_numbers = #tpu.dot_dimension_numbers<[1], [0], [0], [1], [0, 0, 1, 1], [], []>} : vector<64x128xbf16>, vector<128x128xbf16>, vector<64x128xf32> -> vector<64x128xf32>
    %51 = arith.addf %46, %50 : vector<64x128xf32>
    %52 = vector.extract_strided_slice %12 {offsets = [512, 0], sizes = [64, 128], strides = [1, 1]} : vector<1728x128xbf16> to vector<64x128xbf16>
    %c8 = arith.constant 8 : index
    %c0_35 = arith.constant 0 : index
    %c0_36 = arith.constant 0 : index
    %53 = vector.load %arg5[%c8, %c0_35, %c0_36] : memref<27x128x128xbf16, #tpu.memory_space<vmem>>, vector<1x128x128xbf16>
    %54 = vector.shape_cast %53 : vector<1x128x128xbf16> to vector<128x128xbf16>
    %cst_37 = arith.constant dense<0.000000e+00> : vector<64x128xf32>
    %55 = tpu.matmul %52, %54, %cst_37 {dimension_numbers = #tpu.dot_dimension_numbers<[1], [0], [0], [1], [0, 0, 1, 1], [], []>} : vector<64x128xbf16>, vector<128x128xbf16>, vector<64x128xf32> -> vector<64x128xf32>
    %56 = arith.addf %51, %55 : vector<64x128xf32>
    %57 = vector.extract_strided_slice %12 {offsets = [576, 0], sizes = [64, 128], strides = [1, 1]} : vector<1728x128xbf16> to vector<64x128xbf16>
    %c9 = arith.constant 9 : index
    %c0_38 = arith.constant 0 : index
    %c0_39 = arith.constant 0 : index
    %58 = vector.load %arg5[%c9, %c0_38, %c0_39] : memref<27x128x128xbf16, #tpu.memory_space<vmem>>, vector<1x128x128xbf16>
    %59 = vector.shape_cast %58 : vector<1x128x128xbf16> to vector<128x128xbf16>
    %cst_40 = arith.constant dense<0.000000e+00> : vector<64x128xf32>
    %60 = tpu.matmul %57, %59, %cst_40 {dimension_numbers = #tpu.dot_dimension_numbers<[1], [0], [0], [1], [0, 0, 1, 1], [], []>} : vector<64x128xbf16>, vector<128x128xbf16>, vector<64x128xf32> -> vector<64x128xf32>
    %61 = arith.addf %56, %60 : vector<64x128xf32>
    %62 = vector.extract_strided_slice %12 {offsets = [640, 0], sizes = [64, 128], strides = [1, 1]} : vector<1728x128xbf16> to vector<64x128xbf16>
    %c10 = arith.constant 10 : index
    %c0_41 = arith.constant 0 : index
    %c0_42 = arith.constant 0 : index
    %63 = vector.load %arg5[%c10, %c0_41, %c0_42] : memref<27x128x128xbf16, #tpu.memory_space<vmem>>, vector<1x128x128xbf16>
    %64 = vector.shape_cast %63 : vector<1x128x128xbf16> to vector<128x128xbf16>
    %cst_43 = arith.constant dense<0.000000e+00> : vector<64x128xf32>
    %65 = tpu.matmul %62, %64, %cst_43 {dimension_numbers = #tpu.dot_dimension_numbers<[1], [0], [0], [1], [0, 0, 1, 1], [], []>} : vector<64x128xbf16>, vector<128x128xbf16>, vector<64x128xf32> -> vector<64x128xf32>
    %66 = arith.addf %61, %65 : vector<64x128xf32>
    %67 = vector.extract_strided_slice %12 {offsets = [704, 0], sizes = [64, 128], strides = [1, 1]} : vector<1728x128xbf16> to vector<64x128xbf16>
    %c11 = arith.constant 11 : index
    %c0_44 = arith.constant 0 : index
    %c0_45 = arith.constant 0 : index
    %68 = vector.load %arg5[%c11, %c0_44, %c0_45] : memref<27x128x128xbf16, #tpu.memory_space<vmem>>, vector<1x128x128xbf16>
    %69 = vector.shape_cast %68 : vector<1x128x128xbf16> to vector<128x128xbf16>
    %cst_46 = arith.constant dense<0.000000e+00> : vector<64x128xf32>
    %70 = tpu.matmul %67, %69, %cst_46 {dimension_numbers = #tpu.dot_dimension_numbers<[1], [0], [0], [1], [0, 0, 1, 1], [], []>} : vector<64x128xbf16>, vector<128x128xbf16>, vector<64x128xf32> -> vector<64x128xf32>
    %71 = arith.addf %66, %70 : vector<64x128xf32>
    %72 = vector.extract_strided_slice %12 {offsets = [768, 0], sizes = [64, 128], strides = [1, 1]} : vector<1728x128xbf16> to vector<64x128xbf16>
    %c12 = arith.constant 12 : index
    %c0_47 = arith.constant 0 : index
    %c0_48 = arith.constant 0 : index
    %73 = vector.load %arg5[%c12, %c0_47, %c0_48] : memref<27x128x128xbf16, #tpu.memory_space<vmem>>, vector<1x128x128xbf16>
    %74 = vector.shape_cast %73 : vector<1x128x128xbf16> to vector<128x128xbf16>
    %cst_49 = arith.constant dense<0.000000e+00> : vector<64x128xf32>
    %75 = tpu.matmul %72, %74, %cst_49 {dimension_numbers = #tpu.dot_dimension_numbers<[1], [0], [0], [1], [0, 0, 1, 1], [], []>} : vector<64x128xbf16>, vector<128x128xbf16>, vector<64x128xf32> -> vector<64x128xf32>
    %76 = arith.addf %71, %75 : vector<64x128xf32>
    %77 = vector.extract_strided_slice %12 {offsets = [832, 0], sizes = [64, 128], strides = [1, 1]} : vector<1728x128xbf16> to vector<64x128xbf16>
    %c13 = arith.constant 13 : index
    %c0_50 = arith.constant 0 : index
    %c0_51 = arith.constant 0 : index
    %78 = vector.load %arg5[%c13, %c0_50, %c0_51] : memref<27x128x128xbf16, #tpu.memory_space<vmem>>, vector<1x128x128xbf16>
    %79 = vector.shape_cast %78 : vector<1x128x128xbf16> to vector<128x128xbf16>
    %cst_52 = arith.constant dense<0.000000e+00> : vector<64x128xf32>
    %80 = tpu.matmul %77, %79, %cst_52 {dimension_numbers = #tpu.dot_dimension_numbers<[1], [0], [0], [1], [0, 0, 1, 1], [], []>} : vector<64x128xbf16>, vector<128x128xbf16>, vector<64x128xf32> -> vector<64x128xf32>
    %81 = arith.addf %76, %80 : vector<64x128xf32>
    %82 = vector.extract_strided_slice %12 {offsets = [896, 0], sizes = [64, 128], strides = [1, 1]} : vector<1728x128xbf16> to vector<64x128xbf16>
    %c14 = arith.constant 14 : index
    %c0_53 = arith.constant 0 : index
    %c0_54 = arith.constant 0 : index
    %83 = vector.load %arg5[%c14, %c0_53, %c0_54] : memref<27x128x128xbf16, #tpu.memory_space<vmem>>, vector<1x128x128xbf16>
    %84 = vector.shape_cast %83 : vector<1x128x128xbf16> to vector<128x128xbf16>
    %cst_55 = arith.constant dense<0.000000e+00> : vector<64x128xf32>
    %85 = tpu.matmul %82, %84, %cst_55 {dimension_numbers = #tpu.dot_dimension_numbers<[1], [0], [0], [1], [0, 0, 1, 1], [], []>} : vector<64x128xbf16>, vector<128x128xbf16>, vector<64x128xf32> -> vector<64x128xf32>
    %86 = arith.addf %81, %85 : vector<64x128xf32>
    %87 = vector.extract_strided_slice %12 {offsets = [960, 0], sizes = [64, 128], strides = [1, 1]} : vector<1728x128xbf16> to vector<64x128xbf16>
    %c15 = arith.constant 15 : index
    %c0_56 = arith.constant 0 : index
    %c0_57 = arith.constant 0 : index
    %88 = vector.load %arg5[%c15, %c0_56, %c0_57] : memref<27x128x128xbf16, #tpu.memory_space<vmem>>, vector<1x128x128xbf16>
    %89 = vector.shape_cast %88 : vector<1x128x128xbf16> to vector<128x128xbf16>
    %cst_58 = arith.constant dense<0.000000e+00> : vector<64x128xf32>
    %90 = tpu.matmul %87, %89, %cst_58 {dimension_numbers = #tpu.dot_dimension_numbers<[1], [0], [0], [1], [0, 0, 1, 1], [], []>} : vector<64x128xbf16>, vector<128x128xbf16>, vector<64x128xf32> -> vector<64x128xf32>
    %91 = arith.addf %86, %90 : vector<64x128xf32>
    %92 = vector.extract_strided_slice %12 {offsets = [1024, 0], sizes = [64, 128], strides = [1, 1]} : vector<1728x128xbf16> to vector<64x128xbf16>
    %c16 = arith.constant 16 : index
    %c0_59 = arith.constant 0 : index
    %c0_60 = arith.constant 0 : index
    %93 = vector.load %arg5[%c16, %c0_59, %c0_60] : memref<27x128x128xbf16, #tpu.memory_space<vmem>>, vector<1x128x128xbf16>
    %94 = vector.shape_cast %93 : vector<1x128x128xbf16> to vector<128x128xbf16>
    %cst_61 = arith.constant dense<0.000000e+00> : vector<64x128xf32>
    %95 = tpu.matmul %92, %94, %cst_61 {dimension_numbers = #tpu.dot_dimension_numbers<[1], [0], [0], [1], [0, 0, 1, 1], [], []>} : vector<64x128xbf16>, vector<128x128xbf16>, vector<64x128xf32> -> vector<64x128xf32>
    %96 = arith.addf %91, %95 : vector<64x128xf32>
    %97 = vector.extract_strided_slice %12 {offsets = [1088, 0], sizes = [64, 128], strides = [1, 1]} : vector<1728x128xbf16> to vector<64x128xbf16>
    %c17 = arith.constant 17 : index
    %c0_62 = arith.constant 0 : index
    %c0_63 = arith.constant 0 : index
    %98 = vector.load %arg5[%c17, %c0_62, %c0_63] : memref<27x128x128xbf16, #tpu.memory_space<vmem>>, vector<1x128x128xbf16>
    %99 = vector.shape_cast %98 : vector<1x128x128xbf16> to vector<128x128xbf16>
    %cst_64 = arith.constant dense<0.000000e+00> : vector<64x128xf32>
    %100 = tpu.matmul %97, %99, %cst_64 {dimension_numbers = #tpu.dot_dimension_numbers<[1], [0], [0], [1], [0, 0, 1, 1], [], []>} : vector<64x128xbf16>, vector<128x128xbf16>, vector<64x128xf32> -> vector<64x128xf32>
    %101 = arith.addf %96, %100 : vector<64x128xf32>
    %102 = vector.extract_strided_slice %12 {offsets = [1152, 0], sizes = [64, 128], strides = [1, 1]} : vector<1728x128xbf16> to vector<64x128xbf16>
    %c18 = arith.constant 18 : index
    %c0_65 = arith.constant 0 : index
    %c0_66 = arith.constant 0 : index
    %103 = vector.load %arg5[%c18, %c0_65, %c0_66] : memref<27x128x128xbf16, #tpu.memory_space<vmem>>, vector<1x128x128xbf16>
    %104 = vector.shape_cast %103 : vector<1x128x128xbf16> to vector<128x128xbf16>
    %cst_67 = arith.constant dense<0.000000e+00> : vector<64x128xf32>
    %105 = tpu.matmul %102, %104, %cst_67 {dimension_numbers = #tpu.dot_dimension_numbers<[1], [0], [0], [1], [0, 0, 1, 1], [], []>} : vector<64x128xbf16>, vector<128x128xbf16>, vector<64x128xf32> -> vector<64x128xf32>
    %106 = arith.addf %101, %105 : vector<64x128xf32>
    %107 = vector.extract_strided_slice %12 {offsets = [1216, 0], sizes = [64, 128], strides = [1, 1]} : vector<1728x128xbf16> to vector<64x128xbf16>
    %c19 = arith.constant 19 : index
    %c0_68 = arith.constant 0 : index
    %c0_69 = arith.constant 0 : index
    %108 = vector.load %arg5[%c19, %c0_68, %c0_69] : memref<27x128x128xbf16, #tpu.memory_space<vmem>>, vector<1x128x128xbf16>
    %109 = vector.shape_cast %108 : vector<1x128x128xbf16> to vector<128x128xbf16>
    %cst_70 = arith.constant dense<0.000000e+00> : vector<64x128xf32>
    %110 = tpu.matmul %107, %109, %cst_70 {dimension_numbers = #tpu.dot_dimension_numbers<[1], [0], [0], [1], [0, 0, 1, 1], [], []>} : vector<64x128xbf16>, vector<128x128xbf16>, vector<64x128xf32> -> vector<64x128xf32>
    %111 = arith.addf %106, %110 : vector<64x128xf32>
    %112 = vector.extract_strided_slice %12 {offsets = [1280, 0], sizes = [64, 128], strides = [1, 1]} : vector<1728x128xbf16> to vector<64x128xbf16>
    %c20 = arith.constant 20 : index
    %c0_71 = arith.constant 0 : index
    %c0_72 = arith.constant 0 : index
    %113 = vector.load %arg5[%c20, %c0_71, %c0_72] : memref<27x128x128xbf16, #tpu.memory_space<vmem>>, vector<1x128x128xbf16>
    %114 = vector.shape_cast %113 : vector<1x128x128xbf16> to vector<128x128xbf16>
    %cst_73 = arith.constant dense<0.000000e+00> : vector<64x128xf32>
    %115 = tpu.matmul %112, %114, %cst_73 {dimension_numbers = #tpu.dot_dimension_numbers<[1], [0], [0], [1], [0, 0, 1, 1], [], []>} : vector<64x128xbf16>, vector<128x128xbf16>, vector<64x128xf32> -> vector<64x128xf32>
    %116 = arith.addf %111, %115 : vector<64x128xf32>
    %117 = vector.extract_strided_slice %12 {offsets = [1344, 0], sizes = [64, 128], strides = [1, 1]} : vector<1728x128xbf16> to vector<64x128xbf16>
    %c21 = arith.constant 21 : index
    %c0_74 = arith.constant 0 : index
    %c0_75 = arith.constant 0 : index
    %118 = vector.load %arg5[%c21, %c0_74, %c0_75] : memref<27x128x128xbf16, #tpu.memory_space<vmem>>, vector<1x128x128xbf16>
    %119 = vector.shape_cast %118 : vector<1x128x128xbf16> to vector<128x128xbf16>
    %cst_76 = arith.constant dense<0.000000e+00> : vector<64x128xf32>
    %120 = tpu.matmul %117, %119, %cst_76 {dimension_numbers = #tpu.dot_dimension_numbers<[1], [0], [0], [1], [0, 0, 1, 1], [], []>} : vector<64x128xbf16>, vector<128x128xbf16>, vector<64x128xf32> -> vector<64x128xf32>
    %121 = arith.addf %116, %120 : vector<64x128xf32>
    %122 = vector.extract_strided_slice %12 {offsets = [1408, 0], sizes = [64, 128], strides = [1, 1]} : vector<1728x128xbf16> to vector<64x128xbf16>
    %c22 = arith.constant 22 : index
    %c0_77 = arith.constant 0 : index
    %c0_78 = arith.constant 0 : index
    %123 = vector.load %arg5[%c22, %c0_77, %c0_78] : memref<27x128x128xbf16, #tpu.memory_space<vmem>>, vector<1x128x128xbf16>
    %124 = vector.shape_cast %123 : vector<1x128x128xbf16> to vector<128x128xbf16>
    %cst_79 = arith.constant dense<0.000000e+00> : vector<64x128xf32>
    %125 = tpu.matmul %122, %124, %cst_79 {dimension_numbers = #tpu.dot_dimension_numbers<[1], [0], [0], [1], [0, 0, 1, 1], [], []>} : vector<64x128xbf16>, vector<128x128xbf16>, vector<64x128xf32> -> vector<64x128xf32>
    %126 = arith.addf %121, %125 : vector<64x128xf32>
    %127 = vector.extract_strided_slice %12 {offsets = [1472, 0], sizes = [64, 128], strides = [1, 1]} : vector<1728x128xbf16> to vector<64x128xbf16>
    %c23 = arith.constant 23 : index
    %c0_80 = arith.constant 0 : index
    %c0_81 = arith.constant 0 : index
    %128 = vector.load %arg5[%c23, %c0_80, %c0_81] : memref<27x128x128xbf16, #tpu.memory_space<vmem>>, vector<1x128x128xbf16>
    %129 = vector.shape_cast %128 : vector<1x128x128xbf16> to vector<128x128xbf16>
    %cst_82 = arith.constant dense<0.000000e+00> : vector<64x128xf32>
    %130 = tpu.matmul %127, %129, %cst_82 {dimension_numbers = #tpu.dot_dimension_numbers<[1], [0], [0], [1], [0, 0, 1, 1], [], []>} : vector<64x128xbf16>, vector<128x128xbf16>, vector<64x128xf32> -> vector<64x128xf32>
    %131 = arith.addf %126, %130 : vector<64x128xf32>
    %132 = vector.extract_strided_slice %12 {offsets = [1536, 0], sizes = [64, 128], strides = [1, 1]} : vector<1728x128xbf16> to vector<64x128xbf16>
    %c24 = arith.constant 24 : index
    %c0_83 = arith.constant 0 : index
    %c0_84 = arith.constant 0 : index
    %133 = vector.load %arg5[%c24, %c0_83, %c0_84] : memref<27x128x128xbf16, #tpu.memory_space<vmem>>, vector<1x128x128xbf16>
    %134 = vector.shape_cast %133 : vector<1x128x128xbf16> to vector<128x128xbf16>
    %cst_85 = arith.constant dense<0.000000e+00> : vector<64x128xf32>
    %135 = tpu.matmul %132, %134, %cst_85 {dimension_numbers = #tpu.dot_dimension_numbers<[1], [0], [0], [1], [0, 0, 1, 1], [], []>} : vector<64x128xbf16>, vector<128x128xbf16>, vector<64x128xf32> -> vector<64x128xf32>
    %136 = arith.addf %131, %135 : vector<64x128xf32>
    %137 = vector.extract_strided_slice %12 {offsets = [1600, 0], sizes = [64, 128], strides = [1, 1]} : vector<1728x128xbf16> to vector<64x128xbf16>
    %c25 = arith.constant 25 : index
    %c0_86 = arith.constant 0 : index
    %c0_87 = arith.constant 0 : index
    %138 = vector.load %arg5[%c25, %c0_86, %c0_87] : memref<27x128x128xbf16, #tpu.memory_space<vmem>>, vector<1x128x128xbf16>
    %139 = vector.shape_cast %138 : vector<1x128x128xbf16> to vector<128x128xbf16>
    %cst_88 = arith.constant dense<0.000000e+00> : vector<64x128xf32>
    %140 = tpu.matmul %137, %139, %cst_88 {dimension_numbers = #tpu.dot_dimension_numbers<[1], [0], [0], [1], [0, 0, 1, 1], [], []>} : vector<64x128xbf16>, vector<128x128xbf16>, vector<64x128xf32> -> vector<64x128xf32>
    %141 = arith.addf %136, %140 : vector<64x128xf32>
    %142 = vector.extract_strided_slice %12 {offsets = [1664, 0], sizes = [64, 128], strides = [1, 1]} : vector<1728x128xbf16> to vector<64x128xbf16>
    %c26 = arith.constant 26 : index
    %c0_89 = arith.constant 0 : index
    %c0_90 = arith.constant 0 : index
    %143 = vector.load %arg5[%c26, %c0_89, %c0_90] : memref<27x128x128xbf16, #tpu.memory_space<vmem>>, vector<1x128x128xbf16>
    %144 = vector.shape_cast %143 : vector<1x128x128xbf16> to vector<128x128xbf16>
    %cst_91 = arith.constant dense<0.000000e+00> : vector<64x128xf32>
    %145 = tpu.matmul %142, %144, %cst_91 {dimension_numbers = #tpu.dot_dimension_numbers<[1], [0], [0], [1], [0, 0, 1, 1], [], []>} : vector<64x128xbf16>, vector<128x128xbf16>, vector<64x128xf32> -> vector<64x128xf32>
    %146 = arith.addf %141, %145 : vector<64x128xf32>
    %c0_92 = arith.constant 0 : index
    %c0_93 = arith.constant 0 : index
    %147 = vector.load %arg6[%c0_92, %c0_93] : memref<1x128xf32, #tpu.memory_space<vmem>>, vector<1x128xf32>
    %148 = vector.broadcast %147 : vector<1x128xf32> to vector<64x128xf32>
    %149 = arith.addf %146, %148 : vector<64x128xf32>
    %cst_94 = arith.constant 0.000000e+00 : f32
    %150 = vector.broadcast %cst_94 : f32 to vector<64x128xf32>
    %151 = arith.maximumf %149, %150 : vector<64x128xf32>
    %152 = vector.shape_cast %151 : vector<64x128xf32> to vector<8x8x128xf32>
    %cst_95 = arith.constant dense<0xFF800000> : vector<8x128xf32>
    %153 = vector.multi_reduction <maximumf>, %152, %cst_95 [1] : vector<8x8x128xf32> to vector<8x128xf32>
    %154 = arith.truncf %153 : vector<8x128xf32> to vector<8x128xbf16>
    %155 = vector.extract_strided_slice %154 {offsets = [0, 0], sizes = [1, 128], strides = [1, 1]} : vector<8x128xbf16> to vector<1x128xbf16>
    %c0_96 = arith.constant 0 : index
    %c0_97 = arith.constant 0 : index
    %c0_98 = arith.constant 0 : index
    %156 = vector.load %arg7[%c0_96, %c0_97, %c0_98] : memref<8x128x128xbf16, #tpu.memory_space<vmem>>, vector<1x128x128xbf16>
    %157 = vector.shape_cast %156 : vector<1x128x128xbf16> to vector<128x128xbf16>
    %cst_99 = arith.constant dense<0.000000e+00> : vector<1x128xf32>
    %158 = tpu.matmul %155, %157, %cst_99 {dimension_numbers = #tpu.dot_dimension_numbers<[1], [0], [0], [1], [0, 0, 1, 1], [], []>} : vector<1x128xbf16>, vector<128x128xbf16>, vector<1x128xf32> -> vector<1x128xf32>
    %159 = vector.extract_strided_slice %154 {offsets = [1, 0], sizes = [1, 128], strides = [1, 1]} : vector<8x128xbf16> to vector<1x128xbf16>
    %c1_100 = arith.constant 1 : index
    %c0_101 = arith.constant 0 : index
    %c0_102 = arith.constant 0 : index
    %160 = vector.load %arg7[%c1_100, %c0_101, %c0_102] : memref<8x128x128xbf16, #tpu.memory_space<vmem>>, vector<1x128x128xbf16>
    %161 = vector.shape_cast %160 : vector<1x128x128xbf16> to vector<128x128xbf16>
    %cst_103 = arith.constant dense<0.000000e+00> : vector<1x128xf32>
    %162 = tpu.matmul %159, %161, %cst_103 {dimension_numbers = #tpu.dot_dimension_numbers<[1], [0], [0], [1], [0, 0, 1, 1], [], []>} : vector<1x128xbf16>, vector<128x128xbf16>, vector<1x128xf32> -> vector<1x128xf32>
    %163 = arith.addf %158, %162 : vector<1x128xf32>
    %164 = vector.extract_strided_slice %154 {offsets = [2, 0], sizes = [1, 128], strides = [1, 1]} : vector<8x128xbf16> to vector<1x128xbf16>
    %c2_104 = arith.constant 2 : index
    %c0_105 = arith.constant 0 : index
    %c0_106 = arith.constant 0 : index
    %165 = vector.load %arg7[%c2_104, %c0_105, %c0_106] : memref<8x128x128xbf16, #tpu.memory_space<vmem>>, vector<1x128x128xbf16>
    %166 = vector.shape_cast %165 : vector<1x128x128xbf16> to vector<128x128xbf16>
    %cst_107 = arith.constant dense<0.000000e+00> : vector<1x128xf32>
    %167 = tpu.matmul %164, %166, %cst_107 {dimension_numbers = #tpu.dot_dimension_numbers<[1], [0], [0], [1], [0, 0, 1, 1], [], []>} : vector<1x128xbf16>, vector<128x128xbf16>, vector<1x128xf32> -> vector<1x128xf32>
    %168 = arith.addf %163, %167 : vector<1x128xf32>
    %169 = vector.extract_strided_slice %154 {offsets = [3, 0], sizes = [1, 128], strides = [1, 1]} : vector<8x128xbf16> to vector<1x128xbf16>
    %c3_108 = arith.constant 3 : index
    %c0_109 = arith.constant 0 : index
    %c0_110 = arith.constant 0 : index
    %170 = vector.load %arg7[%c3_108, %c0_109, %c0_110] : memref<8x128x128xbf16, #tpu.memory_space<vmem>>, vector<1x128x128xbf16>
    %171 = vector.shape_cast %170 : vector<1x128x128xbf16> to vector<128x128xbf16>
    %cst_111 = arith.constant dense<0.000000e+00> : vector<1x128xf32>
    %172 = tpu.matmul %169, %171, %cst_111 {dimension_numbers = #tpu.dot_dimension_numbers<[1], [0], [0], [1], [0, 0, 1, 1], [], []>} : vector<1x128xbf16>, vector<128x128xbf16>, vector<1x128xf32> -> vector<1x128xf32>
    %173 = arith.addf %168, %172 : vector<1x128xf32>
    %174 = vector.extract_strided_slice %154 {offsets = [4, 0], sizes = [1, 128], strides = [1, 1]} : vector<8x128xbf16> to vector<1x128xbf16>
    %c4_112 = arith.constant 4 : index
    %c0_113 = arith.constant 0 : index
    %c0_114 = arith.constant 0 : index
    %175 = vector.load %arg7[%c4_112, %c0_113, %c0_114] : memref<8x128x128xbf16, #tpu.memory_space<vmem>>, vector<1x128x128xbf16>
    %176 = vector.shape_cast %175 : vector<1x128x128xbf16> to vector<128x128xbf16>
    %cst_115 = arith.constant dense<0.000000e+00> : vector<1x128xf32>
    %177 = tpu.matmul %174, %176, %cst_115 {dimension_numbers = #tpu.dot_dimension_numbers<[1], [0], [0], [1], [0, 0, 1, 1], [], []>} : vector<1x128xbf16>, vector<128x128xbf16>, vector<1x128xf32> -> vector<1x128xf32>
    %178 = arith.addf %173, %177 : vector<1x128xf32>
    %179 = vector.extract_strided_slice %154 {offsets = [5, 0], sizes = [1, 128], strides = [1, 1]} : vector<8x128xbf16> to vector<1x128xbf16>
    %c5_116 = arith.constant 5 : index
    %c0_117 = arith.constant 0 : index
    %c0_118 = arith.constant 0 : index
    %180 = vector.load %arg7[%c5_116, %c0_117, %c0_118] : memref<8x128x128xbf16, #tpu.memory_space<vmem>>, vector<1x128x128xbf16>
    %181 = vector.shape_cast %180 : vector<1x128x128xbf16> to vector<128x128xbf16>
    %cst_119 = arith.constant dense<0.000000e+00> : vector<1x128xf32>
    %182 = tpu.matmul %179, %181, %cst_119 {dimension_numbers = #tpu.dot_dimension_numbers<[1], [0], [0], [1], [0, 0, 1, 1], [], []>} : vector<1x128xbf16>, vector<128x128xbf16>, vector<1x128xf32> -> vector<1x128xf32>
    %183 = arith.addf %178, %182 : vector<1x128xf32>
    %184 = vector.extract_strided_slice %154 {offsets = [6, 0], sizes = [1, 128], strides = [1, 1]} : vector<8x128xbf16> to vector<1x128xbf16>
    %c6_120 = arith.constant 6 : index
    %c0_121 = arith.constant 0 : index
    %c0_122 = arith.constant 0 : index
    %185 = vector.load %arg7[%c6_120, %c0_121, %c0_122] : memref<8x128x128xbf16, #tpu.memory_space<vmem>>, vector<1x128x128xbf16>
    %186 = vector.shape_cast %185 : vector<1x128x128xbf16> to vector<128x128xbf16>
    %cst_123 = arith.constant dense<0.000000e+00> : vector<1x128xf32>
    %187 = tpu.matmul %184, %186, %cst_123 {dimension_numbers = #tpu.dot_dimension_numbers<[1], [0], [0], [1], [0, 0, 1, 1], [], []>} : vector<1x128xbf16>, vector<128x128xbf16>, vector<1x128xf32> -> vector<1x128xf32>
    %188 = arith.addf %183, %187 : vector<1x128xf32>
    %189 = vector.extract_strided_slice %154 {offsets = [7, 0], sizes = [1, 128], strides = [1, 1]} : vector<8x128xbf16> to vector<1x128xbf16>
    %c7_124 = arith.constant 7 : index
    %c0_125 = arith.constant 0 : index
    %c0_126 = arith.constant 0 : index
    %190 = vector.load %arg7[%c7_124, %c0_125, %c0_126] : memref<8x128x128xbf16, #tpu.memory_space<vmem>>, vector<1x128x128xbf16>
    %191 = vector.shape_cast %190 : vector<1x128x128xbf16> to vector<128x128xbf16>
    %cst_127 = arith.constant dense<0.000000e+00> : vector<1x128xf32>
    %192 = tpu.matmul %189, %191, %cst_127 {dimension_numbers = #tpu.dot_dimension_numbers<[1], [0], [0], [1], [0, 0, 1, 1], [], []>} : vector<1x128xbf16>, vector<128x128xbf16>, vector<1x128xf32> -> vector<1x128xf32>
    %193 = arith.addf %188, %192 : vector<1x128xf32>
    %c0_128 = arith.constant 0 : index
    %c0_129 = arith.constant 0 : index
    %194 = vector.load %arg8[%c0_128, %c0_129] : memref<1x128xf32, #tpu.memory_space<vmem>>, vector<1x128xf32>
    %195 = arith.addf %193, %194 : vector<1x128xf32>
    %cst_130 = arith.constant 0.000000e+00 : f32
    %196 = vector.broadcast %cst_130 : f32 to vector<1x128xf32>
    %197 = arith.maximumf %195, %196 : vector<1x128xf32>
    %198 = arith.truncf %197 : vector<1x128xf32> to vector<1x128xbf16>
    %c0_131 = arith.constant 0 : index
    %c0_132 = arith.constant 0 : index
    %199 = vector.load %arg9[%c0_131, %c0_132] : memref<128x128xbf16, #tpu.memory_space<vmem>>, vector<128x128xbf16>
    %cst_133 = arith.constant dense<0.000000e+00> : vector<1x128xf32>
    %200 = tpu.matmul %198, %199, %cst_133 {dimension_numbers = #tpu.dot_dimension_numbers<[1], [0], [0], [1], [0, 0, 1, 1], [], []>} : vector<1x128xbf16>, vector<128x128xbf16>, vector<1x128xf32> -> vector<1x128xf32>
    %c0_134 = arith.constant 0 : index
    %c0_135 = arith.constant 0 : index
    %201 = vector.load %arg10[%c0_134, %c0_135] : memref<1x128xf32, #tpu.memory_space<vmem>>, vector<1x128xf32>
    %202 = arith.addf %200, %201 : vector<1x128xf32>
    %203 = vector.shape_cast %202 : vector<1x128xf32> to vector<1x128xf32>
    %204 = vector.broadcast %203 : vector<1x128xf32> to vector<8x128xf32>
    %c0_136 = arith.constant 0 : index
    %c0_137 = arith.constant 0 : index
    %c0_138 = arith.constant 0 : index
    %205 = vector.load %arg11[%c0_136, %c0_137, %c0_138] : memref<1x8x128xf32, #tpu.memory_space<vmem>>, vector<1x8x128xf32>
    %206 = vector.shape_cast %205 : vector<1x8x128xf32> to vector<8x128xf32>
    %207 = vector.shape_cast %204 : vector<8x128xf32> to vector<1x8x128xf32>
    tpu.vector_store %arg11[%c0_136, %c0_137, %c0_138], %207 {strides = array<i32>} : memref<1x8x128xf32, #tpu.memory_space<vmem>>, vector<1x8x128xf32>,
    return
  }
  func.func @transform_0(%arg0: i32) -> (i32, i32, i32) {
    %c0_i32 = arith.constant 0 : i32
    %c0_i32_0 = arith.constant 0 : i32
    %c0_i32_1 = arith.constant 0 : i32
    return %arg0, %c0_i32, %c0_i32_0 : i32, i32, i32
  }
  func.func @transform_1(%arg0: i32) -> (i32, i32) {
    %c0_i32 = arith.constant 0 : i32
    %c0_i32_0 = arith.constant 0 : i32
    %c0_i32_1 = arith.constant 0 : i32
    return %c0_i32, %c0_i32_0 : i32, i32
  }
  func.func @transform_2(%arg0: i32) -> (i32, i32) {
    %c0_i32 = arith.constant 0 : i32
    %c0_i32_0 = arith.constant 0 : i32
    %c0_i32_1 = arith.constant 0 : i32
    return %c0_i32, %c0_i32_0 : i32, i32
  }
  func.func @transform_3(%arg0: i32) -> (i32, i32) {
    %c0_i32 = arith.constant 0 : i32
    %c0_i32_0 = arith.constant 0 : i32
    %c0_i32_1 = arith.constant 0 : i32
    return %c0_i32, %c0_i32_0 : i32, i32
  }
  func.func @transform_4(%arg0: i32) -> (i32, i32, i32) {
    %c0_i32 = arith.constant 0 : i32
    %c0_i32_0 = arith.constant 0 : i32
    %c0_i32_1 = arith.constant 0 : i32
    %c0_i32_2 = arith.constant 0 : i32
    return %c0_i32, %c0_i32_0, %c0_i32_1 : i32, i32, i32
  }
  func.func @transform_5(%arg0: i32) -> (i32, i32) {
    %c0_i32 = arith.constant 0 : i32
    %c0_i32_0 = arith.constant 0 : i32
    %c0_i32_1 = arith.constant 0 : i32
    return %c0_i32, %c0_i32_0 : i32, i32
  }
  func.func @transform_6(%arg0: i32) -> (i32, i32, i32) {
    %c0_i32 = arith.constant 0 : i32
    %c0_i32_0 = arith.constant 0 : i32
    %c0_i32_1 = arith.constant 0 : i32
    %c0_i32_2 = arith.constant 0 : i32
    return %c0_i32, %c0_i32_0, %c0_i32_1 : i32, i32, i32
  }
  func.func @transform_7(%arg0: i32) -> (i32, i32) {
    %c0_i32 = arith.constant 0 : i32
    %c0_i32_0 = arith.constant 0 : i32
    %c0_i32_1 = arith.constant 0 : i32
    return %c0_i32, %c0_i32_0 : i32, i32
  }
  func.func @transform_8(%arg0: i32) -> (i32, i32) {
    %c0_i32 = arith.constant 0 : i32
    %c0_i32_0 = arith.constant 0 : i32
    %c0_i32_1 = arith.constant 0 : i32
    return %c0_i32, %c0_i32_0 : i32, i32
  }
  func.func @transform_9(%arg0: i32) -> (i32, i32) {
    %c0_i32 = arith.constant 0 : i32
    %c0_i32_0 = arith.constant 0 : i32
    %c0_i32_1 = arith.constant 0 : i32
    return %c0_i32, %c0_i32_0 : i32, i32
  }
  func.func @transform_10(%arg0: i32) -> (i32, i32, i32) {
    %c0_i32 = arith.constant 0 : i32
    %c0_i32_0 = arith.constant 0 : i32
    %c0_i32_1 = arith.constant 0 : i32
    return %arg0, %c0_i32, %c0_i32_0 : i32, i32, i32
  }
}

</mosaic_0001>

<bundles_post_ra>
// kernel: voxnet_forward.1
= control target key start
LH: loop header
LB: loop body
LE: loop exit
PB: predicated region body
PF: predicated region fallthrough
CT: control target
= control target key end

     0   :  { %s11163_s13 = smov 0   ;;  %s13113_s0 = inlined_call_operand.vmem [shape: bf16[2,256,128], index: 0, kind: input, shape index: {}]   ;;  %s13114_s1 = inlined_call_operand.vmem [shape: bf16[1728,256], index: 1, kind: input, shape index: {}]   ;;  %s13115_s2 = inlined_call_operand.vmem [shape: bf16[128,128], index: 2, kind: input, shape index: {}]   ;;  %s13116_s3 = inlined_call_operand.vmem [shape: f32[1,128], index: 3, kind: input, shape index: {}]   ;;  %s13117_s4 = inlined_call_operand.vmem [shape: bf16[27,128,128], index: 4, kind: input, shape index: {}]   ;;  %s13118_s5 = inlined_call_operand.vmem [shape: f32[1,128], index: 5, kind: input, shape index: {}]   ;;  %s13119_s6 = inlined_call_operand.vmem [shape: bf16[8,128,128], index: 6, kind: input, shape index: {}]   ;;  %s13120_s7 = inlined_call_operand.vmem [shape: f32[1,128], index: 7, kind: input, shape index: {}]   ;;  %s13121_s8 = inlined_call_operand.vmem [shape: bf16[128,128], index: 8, kind: input, shape index: {}]   ;;  %s13122_s9 = inlined_call_operand.vmem [shape: f32[1,128], index: 9, kind: input, shape index: {}]   ;;  %s13123_s10 = inlined_call_operand.vmem [shape: f32[2,8,128], index: 10, kind: output, shape index: {}]  }
   0x1 LB: > { %s7868_s14 = sadd.s32 4294967295, %s11103_s13   ;;  %p7872_p0 = scmp.ge.s32.totalorder %s11103_s13, 1  ;;  %s11103_s13 = sphi %s11163_s13, %s20_s13  }
   0x2   : > { %p312_p1 = scmp.lt.s32.totalorder %s11103_s13, 3 }
   0x4   : > { %p313_p2 = pnand %p7872_p0, %p312_p1 }
   0x5   : > { %v10461_v0 = vld [vmem:[%s13115_s2] sm:$0xff] (!%p313_p2)   ;;  %p349_p3 = scmp.lt.s32.totalorder (!%p313_p2), %s7868_s14, 1  ;;  %v10462_v1 = vld [vmem:[%s13115_s2 + $0x8] sm:$0xff] (!%p313_p2)   ;;  %v10463_v2 = vld [vmem:[%s13115_s2 + $0x10] sm:$0xff] (!%p313_p2)   ;;  %v11105_v24 = vmov (!%p313_p2), 0   ;;  %vm11107_vm0 = vmmov (!%p313_p2), 0  }
   0x6   : > { %316 = sbr.rel (%p313_p2) target bundleno = 2178 (0x882), region = 60  ;;  %9366 = vmatprep.subr.bf16.mxu0 (!%p313_p2), %v10461_v0  ;;  %v10464_v3 = vld [vmem:[%s13115_s2 + $0x18] sm:$0xff] (!%p313_p2)   ;;  %v10465_v5 = vld [vmem:[%s13115_s2 + $0x20] sm:$0xff] (!%p313_p2)   ;;  %v10466_v6 = vld [vmem:[%s13115_s2 + $0x28] sm:$0xff] (!%p313_p2)   ;;  %2063 = vmatprep.subr.bf16.mxu1 (!%p313_p2), %v11105_v24 }
   0x7   : > { %9367 = vmatpush3.bf16.msra.mxu0 (!%p313_p2), %v10461_v0  ;;  %v10467_v7 = vld [vmem:[%s13115_s2 + $0x30] sm:$0xff] (!%p313_p2)   ;;  %v10468_v8 = vld [vmem:[%s13115_s2 + $0x38] sm:$0xff] (!%p313_p2)   ;;  %v10487_v25 = vld [vmem:[%s13114_s1 + $0x4] ss:$8 sps:$4 sm:$0xff] (!%p313_p2)  }
   0x8   : > { %9368 = vmatprep.subr.bf16.mxu0 (!%p313_p2), %v10462_v1  ;;  %2095 = vmatprep.mubr.bf16.mxu1 (!%p313_p2), %v10487_v25  ;;  %v11226_v26 = vld [vmem:[%s13116_s3] ss:$0 sm:$0xff] (!%p313_p2) }
   0xb   : > { %9369 = vmatpush3.bf16.msra.mxu0 (!%p313_p2), %v10462_v1 }
   0xc   : > { %9370 = vmatprep.subr.bf16.mxu0 (!%p313_p2), %v10463_v2 }
   0xd   : > { %s13125_s14 = smov (!%p349_p3, %s7868_s14), 1 }
   0xe   : > { %s8936_s21 = sshll.u32 %s13125_s14, 7  ;;  %s7875_s25 = sshll.u32 %s13125_s14, 3 }
   0xf   : > { %s11186_s24 = scalar_lea.vmem %s13113_s0, %s8936_s21  ;;  %9371 = vmatpush3.bf16.msra.mxu0 %v10463_v2  ;;  %s357_s28 = scalar_lea.vmem %s13123_s10, %s7875_s25 }
  0x10   : > { %v10469_v4 = vld [vmem:[%s11186_s24] sm:$0xff]   ;;  %9372 = vmatprep.subr.bf16.mxu0 %v10464_v3  ;;  %v10470_v9 = vld [vmem:[%s11186_s24 + $0x8] sm:$0xff]   ;;  %v10471_v10 = vld [vmem:[%s11186_s24 + $0x10] sm:$0xff]  }
  0x11   : > { %9382 = vmatprep.mubr.bf16.mxu0 %v10469_v4  ;;  %v10472_v11 = vld [vmem:[%s11186_s24 + $0x18] sm:$0xff]   ;;  %v10473_v12 = vld [vmem:[%s11186_s24 + $0x20] sm:$0xff]   ;;  %v10474_v13 = vld [vmem:[%s11186_s24 + $0x28] sm:$0xff]  }
  0x12   : > { %v10475_v14 = vld [vmem:[%s11186_s24 + $0x30] sm:$0xff]   ;;  %v10476_v15 = vld [vmem:[%s11186_s24 + $0x38] sm:$0xff]   ;;  %v10477_v16 = vld [vmem:[%s11186_s24 + $0x40] sm:$0xff]  }
  0x13   : > { %9373 = vmatpush3.bf16.msra.mxu0 %v10464_v3  ;;  %v10478_v17 = vld [vmem:[%s11186_s24 + $0x48] sm:$0xff]   ;;  %v10479_v18 = vld [vmem:[%s11186_s24 + $0x50] sm:$0xff]   ;;  %v10480_v19 = vld [vmem:[%s11186_s24 + $0x58] sm:$0xff]  }
  0x14   : > { %9374 = vmatprep.subr.bf16.mxu0 %v10465_v5  ;;  %v10481_v20 = vld [vmem:[%s11186_s24 + $0x60] sm:$0xff]   ;;  %v10482_v21 = vld [vmem:[%s11186_s24 + $0x68] sm:$0xff]   ;;  %v10483_v22 = vld [vmem:[%s11186_s24 + $0x70] sm:$0xff]  }
  0x15   : > { %v10484_v23 = vld [vmem:[%s11186_s24 + $0x78] sm:$0xff]  }
  0x17   : > { %9375 = vmatpush3.bf16.msra.mxu0 %v10465_v5 }
  0x18   : > { %9376 = vmatprep.subr.bf16.mxu0 %v10466_v6 }
  0x1b   : > { %9377 = vmatpush3.bf16.msra.mxu0 %v10466_v6 }
  0x1c   : > { %9378 = vmatprep.subr.bf16.mxu0 %v10467_v7 }
  0x1f   : > { %9379 = vmatpush3.bf16.msra.mxu0 %v10467_v7 }
  0x20   : > { %9380 = vmatprep.subr.bf16.mxu0 %v10468_v8 }
  0x23   : > { %9381 = vmatpush3.bf16.msra.mxu0 %v10468_v8 }
  0x26   : > { %9383 = vmatmul.mubr.bf16.vlgmr.msra.gmra.mrb[0].mxu0 %v10470_v9 }
  0x27   : > { %9386 = vmatprep.mubr.bf16.mxu0 %v10471_v10 }
  0x2e   : > { %9387 = vmatmul.mubr.bf16.gmra.mrb[4].mxu0 %v10472_v11 }
  0x2f   : > { %9390 = vmatprep.mubr.bf16.mxu0 %v10473_v12 }
  0x36   : > { %9391 = vmatmul.mubr.bf16.gmra.mrb[8].mxu0 %v10474_v13 }
  0x37   : > { %9394 = vmatprep.mubr.bf16.mxu0 %v10475_v14 }
  0x3e   : > { %9395 = vmatmul.mubr.bf16.gmra.mrb[12].mxu0 %v10476_v15 }
  0x3f   : > { %9398 = vmatprep.mubr.bf16.mxu0 %v10477_v16 }
  0x46   : > { %9399 = vmatmul.mubr.bf16.gmra.mrb[16].mxu0 %v10478_v17 }
  0x47   : > { %9402 = vmatprep.mubr.bf16.mxu0 %v10479_v18 }
  0x4e   : > { %9403 = vmatmul.mubr.bf16.gmra.mrb[20].mxu0 %v10480_v19 }
  0x4f   : > { %9406 = vmatprep.mubr.bf16.mxu0 %v10481_v20 }
  0x56   : > { %9407 = vmatmul.mubr.bf16.gmra.mrb[24].mxu0 %v10482_v21 }
  0x57   : > { %9410 = vmatprep.mubr.bf16.mxu0 %v10483_v22 }
  0x5e   : > { %9411 = vmatmul.mubr.bf16.gmra.mrb[28].mxu0 %v10484_v23 }
  0xf9   : > { %v9384_v27 = vpop.f32.mrb[0].mxu0 }
  0xfa   : > { %v601_v28 = vadd.f32 %v9384_v27, %v11226_v26  ;;  %v592_v29 = vpop.f32.mrb[1].mxu0 }
  0xfb   : > { %v593_v30 = vadd.f32 %v11226_v26, %v592_v29  ;;  %v9385_v31 = vpop.f32.mrb[2].mxu0 }
  0xfc   : > { %v604_v32 = vadd.f32 %v9385_v31, %v11226_v26  ;;  %v595_v33 = vpop.f32.mrb[3].mxu0  ;;  %v721_v35 = vmax.f32 %v601_v28, 0.0 }
  0xfd   : > { %v596_v34 = vadd.f32 %v11226_v26, %v595_v33  ;;  %v719_v37 = vmax.f32 %v593_v30, 0.0 }
  0xfe   : > { %v722_v36 = vmax.f32 %v604_v32, 0.0 }
  0xff   : > { %v720_v38 = vmax.f32 %v596_v34, 0.0 }
 0x100   : > { %v752_v39 = vpack.c.bf16 %v722_v36, %v721_v35 }
 0x101   : > { %v9388_v40 = vpop.f32.mrb[4].mxu0  ;;  %v751_v41 = vpack.c.bf16 %v720_v38, %v719_v37 }
 0x102   : > { %v617_v42 = vadd.f32 %v9388_v40, %v11226_v26  ;;  %v608_v43 = vpop.f32.mrb[5].mxu0 }
 0x103   : > { %v609_v44 = vadd.f32 %v11226_v26, %v608_v43  ;;  %v9389_v45 = vpop.f32.mrb[6].mxu0  ;;  %2064 = vmatpush1.bf16.msra.mxu1 %v751_v41 }
 0x104   : > { %v620_v46 = vadd.f32 %v9389_v45, %v11226_v26  ;;  %v611_v47 = vpop.f32.mrb[7].mxu0  ;;  %2065 = vmatprep.subr.bf16.mxu1 %v11105_v24  ;;  %v725_v49 = vmax.f32 %v617_v42, 0.0 }
 0x105   : > { %v612_v48 = vadd.f32 %v11226_v26, %v611_v47  ;;  %v723_v51 = vmax.f32 %v609_v44, 0.0 }
 0x106   : > { %v726_v50 = vmax.f32 %v620_v46, 0.0 }
 0x107   : > { %v724_v52 = vmax.f32 %v612_v48, 0.0  ;;  %2066 = vmatpush1.bf16.msra.mxu1 %v752_v39 }
 0x108   : > { %v754_v53 = vpack.c.bf16 %v726_v50, %v725_v49  ;;  %2067 = vmatprep.subr.bf16.mxu1 %v11105_v24 }
 0x109   : > { %v753_v54 = vpack.c.bf16 %v724_v52, %v723_v51  ;;  %v9392_v55 = vpop.f32.mrb[8].mxu0 }
 0x10a   : > { %v633_v56 = vadd.f32 %v9392_v55, %v11226_v26  ;;  %v624_v57 = vpop.f32.mrb[9].mxu0 }
 0x10b   : > { %v625_v58 = vadd.f32 %v11226_v26, %v624_v57  ;;  %v9393_v59 = vpop.f32.mrb[10].mxu0  ;;  %2068 = vmatpush1.bf16.msra.mxu1 %v753_v54 }
 0x10c   : > { %v636_v60 = vadd.f32 %v9393_v59, %v11226_v26  ;;  %v627_v61 = vpop.f32.mrb[11].mxu0  ;;  %2069 = vmatprep.subr.bf16.mxu1 %v11105_v24  ;;  %v729_v63 = vmax.f32 %v633_v56, 0.0 }
 0x10d   : > { %v628_v62 = vadd.f32 %v11226_v26, %v627_v61  ;;  %v727_v1 = vmax.f32 %v625_v58, 0.0 }
 0x10e   : > { %v730_v0 = vmax.f32 %v636_v60, 0.0 }
 0x10f   : > { %v728_v2 = vmax.f32 %v628_v62, 0.0  ;;  %2070 = vmatpush1.bf16.msra.mxu1 %v754_v53 }
 0x110   : > { %v756_v3 = vpack.c.bf16 %v730_v0, %v729_v63  ;;  %2071 = vmatprep.subr.bf16.mxu1 %v11105_v24 }
 0x111   : > { %v755_v4 = vpack.c.bf16 %v728_v2, %v727_v1  ;;  %v9396_v5 = vpop.f32.mrb[12].mxu0 }
 0x112   : > { %v649_v6 = vadd.f32 %v9396_v5, %v11226_v26  ;;  %v640_v7 = vpop.f32.mrb[13].mxu0 }
 0x113   : > { %v641_v8 = vadd.f32 %v11226_v26, %v640_v7  ;;  %v9397_v9 = vpop.f32.mrb[14].mxu0  ;;  %2072 = vmatpush1.bf16.msra.mxu1 %v755_v4 }
 0x114   : > { %v652_v10 = vadd.f32 %v9397_v9, %v11226_v26  ;;  %v643_v11 = vpop.f32.mrb[15].mxu0  ;;  %2073 = vmatprep.subr.bf16.mxu1 %v11105_v24  ;;  %v733_v13 = vmax.f32 %v649_v6, 0.0 }
 0x115   : > { %v644_v12 = vadd.f32 %v11226_v26, %v643_v11  ;;  %v731_v15 = vmax.f32 %v641_v8, 0.0 }
 0x116   : > { %v734_v14 = vmax.f32 %v652_v10, 0.0 }
 0x117   : > { %v732_v16 = vmax.f32 %v644_v12, 0.0  ;;  %2074 = vmatpush1.bf16.msra.mxu1 %v756_v3 }
 0x118   : > { %v758_v17 = vpack.c.bf16 %v734_v14, %v733_v13  ;;  %2075 = vmatprep.subr.bf16.mxu1 %v11105_v24  ;;  %v10485_v13 = vld [vmem:[%s13114_s1] ss:$8 sps:$4 sm:$0xff]   ;;  %v10490_v14 = vld [vmem:[%s13114_s1 + $0x10] ss:$8 sps:$4 sm:$0xff]  }
 0x119   : > { %v757_v18 = vpack.c.bf16 %v732_v16, %v731_v15  ;;  %v9400_v19 = vpop.f32.mrb[16].mxu0  ;;  %v10491_v15 = vld [vmem:[%s13114_s1 + $0x24] ss:$8 sps:$4 sm:$0xff]   ;;  %v10494_v16 = vld [vmem:[%s13114_s1 + $0x34] ss:$8 sps:$4 sm:$0xff]  }
 0x11a   : > { %v665_v20 = vadd.f32 %v9400_v19, %v11226_v26  ;;  %v656_v21 = vpop.f32.mrb[17].mxu0  ;;  %v10499_v19 = vld [vmem:[%s13114_s1 + $0x40] ss:$8 sps:$4 sm:$0xff]  }
 0x11b   : > { %v657_v22 = vadd.f32 %v11226_v26, %v656_v21  ;;  %v9401_v23 = vpop.f32.mrb[18].mxu0  ;;  %2076 = vmatpush1.bf16.msra.mxu1 %v757_v18  ;;  %v10497_v18 = vld [vmem:[%s13114_s1 + $0x44] ss:$8 sps:$4 sm:$0xff]   ;;  %v10502_v21 = vld [vmem:[%s13114_s1 + $0x50] ss:$8 sps:$4 sm:$0xff]  }
 0x11c   : > { %v668_v25 = vadd.f32 %v9401_v23, %v11226_v26  ;;  %v659_v27 = vpop.f32.mrb[19].mxu0  ;;  %2077 = vmatprep.subr.bf16.mxu1 %v11105_v24  ;;  %v737_v29 = vmax.f32 %v665_v20, 0.0  ;;  %v10500_v20 = vld [vmem:[%s13114_s1 + $0x54] ss:$8 sps:$4 sm:$0xff]   ;;  %v10551_v23 = vld [vmem:[%s13117_s4 + $0x40] sm:$0xff]  }
 0x11d   : > { %v660_v28 = vadd.f32 %v11226_v26, %v659_v27  ;;  %v735_v31 = vmax.f32 %v657_v22, 0.0  ;;  %v10503_v22 = vld [vmem:[%s13114_s1 + $0x64] ss:$8 sps:$4 sm:$0xff]   ;;  %9414 = vmatprep.subr.bf16.mxu0 %v10551_v23  ;;  %v10506_v27 = vld [vmem:[%s13114_s1 + $0x74] ss:$8 sps:$4 sm:$0xff]  }
 0x11e   : > { %v738_v30 = vmax.f32 %v668_v25, 0.0  ;;  %9415 = vmatpush3.bf16.msra.mxu0 %v10551_v23  ;;  %v10505_v25 = vld [vmem:[%s13114_s1 + $0x60] ss:$8 sps:$4 sm:$0xff]  }
 0x11f   : > { %v736_v32 = vmax.f32 %v660_v28, 0.0  ;;  %2078 = vmatpush1.bf16.msra.mxu1 %v758_v17  ;;  %v10496_v17 = vld [vmem:[%s13114_s1 + $0x30] ss:$8 sps:$4 sm:$0xff]   ;;  %v10555_v28 = vld [vmem:[%s13117_s4 + $0x48] sm:$0xff]  }
 0x120   : > { %v760_v33 = vpack.c.bf16 %v738_v30, %v737_v29  ;;  %2079 = vmatprep.subr.bf16.mxu1 %v11105_v24  ;;  %9416 = vmatprep.subr.bf16.mxu0 %v10555_v28  ;;  %v10508_v29 = vld [vmem:[%s13114_s1 + $0x70] ss:$8 sps:$4 sm:$0xff]   ;;  %v10509_v30 = vld [vmem:[%s13114_s1 + $0x84] ss:$8 sps:$4 sm:$0xff]  }
 0x121   : > { %v759_v34 = vpack.c.bf16 %v736_v32, %v735_v31  ;;  %v9404_v35 = vpop.f32.mrb[20].mxu0  ;;  %v10559_v31 = vld [vmem:[%s13117_s4 + $0x50] sm:$0xff]   ;;  %v10511_v32 = vld [vmem:[%s13114_s1 + $0x80] ss:$8 sps:$4 sm:$0xff]  }
 0x122   : > { %v681_v36 = vadd.f32 %v9404_v35, %v11226_v26  ;;  %v672_v37 = vpop.f32.mrb[21].mxu0  ;;  %9417 = vmatpush3.bf16.msra.mxu0 %v10555_v28  ;;  %v10515_v35 = vld [vmem:[%s13114_s1 + $0xa4] ss:$8 sps:$4 sm:$0xff]   ;;  %v10582_v28 = vld [vmem:[%s13114_s1 + $0x1d0] ss:$8 sps:$4 sm:$0xff]  }
 0x123   : > { %v673_v38 = vadd.f32 %v11226_v26, %v672_v37  ;;  %v9405_v39 = vpop.f32.mrb[22].mxu0  ;;  %2080 = vmatpush1.bf16.msra.mxu1 %v759_v34  ;;  %9418 = vmatprep.subr.bf16.mxu0 %v10559_v31  ;;  %v10514_v34 = vld [vmem:[%s13114_s1 + $0x90] ss:$8 sps:$4 sm:$0xff]   ;;  %v10518_v37 = vld [vmem:[%s13114_s1 + $0xb4] ss:$8 sps:$4 sm:$0xff]  }
 0x124   : > { %v684_v40 = vadd.f32 %v9405_v39, %v11226_v26  ;;  %v675_v41 = vpop.f32.mrb[23].mxu0  ;;  %2081 = vmatprep.subr.bf16.mxu1 %v11105_v24  ;;  %v741_v43 = vmax.f32 %v681_v36, 0.0  ;;  %v10517_v36 = vld [vmem:[%s13114_s1 + $0xa0] ss:$8 sps:$4 sm:$0xff]   ;;  %v10521_v39 = vld [vmem:[%s13114_s1 + $0xc4] ss:$8 sps:$4 sm:$0xff]  }
 0x125   : > { %v676_v42 = vadd.f32 %v11226_v26, %v675_v41  ;;  %v739_v45 = vmax.f32 %v673_v38, 0.0  ;;  %v10520_v38 = vld [vmem:[%s13114_s1 + $0xb0] ss:$8 sps:$4 sm:$0xff]   ;;  %v10523_v41 = vld [vmem:[%s13114_s1 + $0xc0] ss:$8 sps:$4 sm:$0xff]  }
 0x126   : > { %v742_v44 = vmax.f32 %v684_v40, 0.0  ;;  %9419 = vmatpush3.bf16.msra.mxu0 %v10559_v31  ;;  %v10563_v40 = vld [vmem:[%s13117_s4 + $0x58] sm:$0xff]  }
 0x127   : > { %v740_v46 = vmax.f32 %v676_v42, 0.0  ;;  %2082 = vmatpush1.bf16.msra.mxu1 %v760_v33  ;;  %v10512_v33 = vld [vmem:[%s13114_s1 + $0x94] ss:$8 sps:$4 sm:$0xff]   ;;  %9420 = vmatprep.subr.bf16.mxu0 %v10563_v40 }
 0x128   : > { %v762_v47 = vpack.c.bf16 %v742_v44, %v741_v43  ;;  %2083 = vmatprep.subr.bf16.mxu1 %v11105_v24  ;;  %v10524_v42 = vld [vmem:[%s13114_s1 + $0xd4] ss:$8 sps:$4 sm:$0xff]   ;;  %v10567_v43 = vld [vmem:[%s13117_s4 + $0x60] sm:$0xff]   ;;  %v10526_v44 = vld [vmem:[%s13114_s1 + $0xd0] ss:$8 sps:$4 sm:$0xff]  }
 0x129   : > { %v761_v48 = vpack.c.bf16 %v740_v46, %v739_v45  ;;  %v9408_v49 = vpop.f32.mrb[24].mxu0  ;;  %v10527_v45 = vld [vmem:[%s13114_s1 + $0xe4] ss:$8 sps:$4 sm:$0xff]  }
 0x12a   : > { %v697_v50 = vadd.f32 %v9408_v49, %v11226_v26  ;;  %v688_v51 = vpop.f32.mrb[25].mxu0  ;;  %9421 = vmatpush3.bf16.msra.mxu0 %v10563_v40  ;;  %v10571_v46 = vld [vmem:[%s13117_s4 + $0x68] sm:$0xff]   ;;  %v10575_v49 = vld [vmem:[%s13117_s4 + $0x70] sm:$0xff]  }
 0x12b   : > { %v689_v52 = vadd.f32 %v11226_v26, %v688_v51  ;;  %v9409_v53 = vpop.f32.mrb[26].mxu0  ;;  %2084 = vmatpush1.bf16.msra.mxu1 %v761_v48  ;;  %9422 = vmatprep.subr.bf16.mxu0 %v10567_v43  ;;  %v10530_v48 = vld [vmem:[%s13114_s1 + $0xf4] ss:$8 sps:$4 sm:$0xff]   ;;  %v10533_v51 = vld [vmem:[%s13114_s1 + $0x104] ss:$8 sps:$4 sm:$0xff]  }
 0x12c   : > { %v700_v54 = vadd.f32 %v9409_v53, %v11226_v26  ;;  %v691_v55 = vpop.f32.mrb[27].mxu0  ;;  %2085 = vmatprep.subr.bf16.mxu1 %v11105_v24  ;;  %v745_v57 = vmax.f32 %v697_v50, 0.0  ;;  %v10532_v50 = vld [vmem:[%s13114_s1 + $0xf0] ss:$8 sps:$4 sm:$0xff]   ;;  %v10535_v53 = vld [vmem:[%s13114_s1 + $0x100] ss:$8 sps:$4 sm:$0xff]  }
 0x12d   : > { %v692_v56 = vadd.f32 %v11226_v26, %v691_v55  ;;  %v743_v59 = vmax.f32 %v689_v52, 0.0  ;;  %v10579_v52 = vld [vmem:[%s13117_s4 + $0x78] sm:$0xff]   ;;  %v11404_v55 = vld [vmem:[%s13117_s4] sm:$0xff]  }
 0x12e   : > { %v746_v58 = vmax.f32 %v700_v54, 0.0  ;;  %9423 = vmatpush3.bf16.msra.mxu0 %v10567_v43  ;;  %v10536_v54 = vld [vmem:[%s13114_s1 + $0x114] ss:$8 sps:$4 sm:$0xff]  }
 0x12f   : > { %v744_v60 = vmax.f32 %v692_v56, 0.0  ;;  %2086 = vmatpush1.bf16.msra.mxu1 %v762_v47  ;;  %9424 = vmatprep.subr.bf16.mxu0 %v10571_v46  ;;  %v10529_v47 = vld [vmem:[%s13114_s1 + $0xe0] ss:$8 sps:$4 sm:$0xff]   ;;  %v10538_v56 = vld [vmem:[%s13114_s1 + $0x110] ss:$8 sps:$4 sm:$0xff]  }
 0x130   : > { %v764_v61 = vpack.c.bf16 %v746_v58, %v745_v57  ;;  %2087 = vmatprep.subr.bf16.mxu1 %v11105_v24  ;;  %v10539_v57 = vld [vmem:[%s13114_s1 + $0x124] ss:$8 sps:$4 sm:$0xff]   ;;  %v10541_v58 = vld [vmem:[%s13114_s1 + $0x120] ss:$8 sps:$4 sm:$0xff]  }
 0x131   : > { %v763_v62 = vpack.c.bf16 %v744_v60, %v743_v59  ;;  %v9412_v63 = vpop.f32.mrb[28].mxu0  ;;  %v10542_v59 = vld [vmem:[%s13114_s1 + $0x134] ss:$8 sps:$4 sm:$0xff]   ;;  %v10544_v60 = vld [vmem:[%s13114_s1 + $0x130] ss:$8 sps:$4 sm:$0xff]  }
 0x132   : > { %v713_v0 = vadd.f32 %v9412_v63, %v11226_v26  ;;  %v704_v1 = vpop.f32.mrb[29].mxu0  ;;  %9425 = vmatpush3.bf16.msra.mxu0 %v10571_v46  ;;  %v10548_v63 = vld [vmem:[%s13114_s1 + $0x154] ss:$8 sps:$4 sm:$0xff]  }
 0x133   : > { %v705_v2 = vadd.f32 %v11226_v26, %v704_v1  ;;  %v9413_v3 = vpop.f32.mrb[30].mxu0  ;;  %2088 = vmatpush1.bf16.msra.mxu1 %v763_v62  ;;  %9426 = vmatprep.subr.bf16.mxu0 %v10575_v49  ;;  %v10547_v62 = vld [vmem:[%s13114_s1 + $0x140] ss:$8 sps:$4 sm:$0xff]   ;;  %v10552_v1 = vld [vmem:[%s13114_s1 + $0x164] ss:$8 sps:$4 sm:$0xff]  }
 0x134   : > { %v716_v4 = vadd.f32 %v9413_v3, %v11226_v26  ;;  %v707_v5 = vpop.f32.mrb[31].mxu0  ;;  %2089 = vmatprep.subr.bf16.mxu1 %v11105_v24  ;;  %v749_v7 = vmax.f32 %v713_v0, 0.0  ;;  %v10550_v0 = vld [vmem:[%s13114_s1 + $0x150] ss:$8 sps:$4 sm:$0xff]   ;;  %v10556_v3 = vld [vmem:[%s13114_s1 + $0x174] ss:$8 sps:$4 sm:$0xff]  }
 0x135   : > { %v708_v6 = vadd.f32 %v11226_v26, %v707_v5  ;;  %v747_v9 = vmax.f32 %v705_v2, 0.0  ;;  %v10488_v26 = vld [vmem:[%s13114_s1 + $0x14] ss:$8 sps:$4 sm:$0xff]   ;;  %v10554_v2 = vld [vmem:[%s13114_s1 + $0x160] ss:$8 sps:$4 sm:$0xff]  }
 0x136   : > { %v750_v8 = vmax.f32 %v716_v4, 0.0  ;;  %9427 = vmatpush3.bf16.msra.mxu0 %v10575_v49  ;;  %v10558_v4 = vld [vmem:[%s13114_s1 + $0x170] ss:$8 sps:$4 sm:$0xff]   ;;  %v10560_v5 = vld [vmem:[%s13114_s1 + $0x184] ss:$8 sps:$4 sm:$0xff]  }
 0x137   : > { %v748_v10 = vmax.f32 %v708_v6, 0.0  ;;  %2090 = vmatpush1.bf16.msra.mxu1 %v764_v61  ;;  %9428 = vmatprep.subr.bf16.mxu0 %v10579_v52  ;;  %v10545_v61 = vld [vmem:[%s13114_s1 + $0x144] ss:$8 sps:$4 sm:$0xff]   ;;  %v10562_v6 = vld [vmem:[%s13114_s1 + $0x180] ss:$8 sps:$4 sm:$0xff]  }
 0x138   : > { %v766_v11 = vpack.c.bf16 %v750_v8, %v749_v7  ;;  %2091 = vmatprep.subr.bf16.mxu1 %v11105_v24  ;;  %v10564_v7 = vld [vmem:[%s13114_s1 + $0x194] ss:$8 sps:$4 sm:$0xff]   ;;  %v10566_v8 = vld [vmem:[%s13114_s1 + $0x190] ss:$8 sps:$4 sm:$0xff]   ;;  %v10597_v49 = vld [vmem:[%s13114_s1 + $0x200] ss:$8 sps:$4 sm:$0xff]  }
 0x139   : > { %v765_v12 = vpack.c.bf16 %v748_v10, %v747_v9  ;;  %v10568_v9 = vld [vmem:[%s13114_s1 + $0x1a4] ss:$8 sps:$4 sm:$0xff]   ;;  %v10570_v10 = vld [vmem:[%s13114_s1 + $0x1a0] ss:$8 sps:$4 sm:$0xff]  }
 0x13a   : > { %9429 = vmatpush3.bf16.msra.mxu0 %v10579_v52 }
 0x13b   : > { %2092 = vmatpush1.bf16.msra.mxu1 %v765_v12  ;;  %9438 = vmatprep.subr.bf16.mxu0 %v11404_v55 }
 0x13c   : > { %2093 = vmatprep.subr.bf16.mxu1 %v11105_v24  ;;  %v10493_v24 = vld [vmem:[%s13114_s1 + $0x20] ss:$8 sps:$4 sm:$0xff]  }
 0x13f   : > { %2094 = vmatpush1.bf16.msra.mxu1 %v766_v11  ;;  %v10572_v11 = vld [vmem:[%s13114_s1 + $0x1b4] ss:$8 sps:$4 sm:$0xff]  }
 0x142   : > { %2096 = vmatmul.mubr.bf16.vlgmr.msra.gmra.mrb[0].mxu1 %v10485_v13 }
 0x143   : > { %2103 = vmatprep.mubr.bf16.mxu1 %v10488_v26  ;;  %v10574_v26 = vld [vmem:[%s13114_s1 + $0x1b0] ss:$8 sps:$4 sm:$0xff]  }
 0x14a   : > { %2104 = vmatmul.mubr.bf16.gmra.mrb[4].mxu1 %v10490_v14 }
 0x14b   : > { %2111 = vmatprep.mubr.bf16.mxu1 %v10491_v15  ;;  %v10576_v15 = vld [vmem:[%s13114_s1 + $0x1c4] ss:$8 sps:$4 sm:$0xff]  }
 0x152   : > { %2112 = vmatmul.mubr.bf16.gmra.mrb[8].mxu1 %v10493_v24 }
 0x153   : > { %2119 = vmatprep.mubr.bf16.mxu1 %v10494_v16 }
 0x15a   : > { %2120 = vmatmul.mubr.bf16.gmra.mrb[12].mxu1 %v10496_v17 }
 0x15b   : > { %2127 = vmatprep.mubr.bf16.mxu1 %v10497_v18 }
 0x162   : > { %2128 = vmatmul.mubr.bf16.gmra.mrb[16].mxu1 %v10499_v19  ;;  %v10578_v19 = vld [vmem:[%s13114_s1 + $0x1c0] ss:$8 sps:$4 sm:$0xff]  }
 0x163   : > { %2135 = vmatprep.mubr.bf16.mxu1 %v10500_v20 }
 0x16a   : > { %2136 = vmatmul.mubr.bf16.gmra.mrb[20].mxu1 %v10502_v21  ;;  %v10580_v21 = vld [vmem:[%s13114_s1 + $0x1d4] ss:$8 sps:$4 sm:$0xff]  }
 0x16b   : > { %2143 = vmatprep.mubr.bf16.mxu1 %v10503_v22 }
 0x172   : > { %2144 = vmatmul.mubr.bf16.gmra.mrb[24].mxu1 %v10505_v25 }
 0x173   : > { %2151 = vmatprep.mubr.bf16.mxu1 %v10506_v27 }
 0x17a   : > { %2152 = vmatmul.mubr.bf16.gmra.mrb[28].mxu1 %v10508_v29 }
 0x17b   : > { %2159 = vmatprep.mubr.bf16.mxu1 %v10509_v30  ;;  %v10585_v30 = vld [vmem:[%s13114_s1 + $0x1e4] ss:$8 sps:$4 sm:$0xff]  }
 0x182   : > { %2160 = vmatmul.mubr.bf16.gmra.mrb[32].mxu1 %v10511_v32 }
 0x183   : > { %2167 = vmatprep.mubr.bf16.mxu1 %v10512_v33 }
 0x18a   : > { %2168 = vmatmul.mubr.bf16.gmra.mrb[36].mxu1 %v10514_v34 }
 0x18b   : > { %2175 = vmatprep.mubr.bf16.mxu1 %v10515_v35  ;;  %v10587_v35 = vld [vmem:[%s13114_s1 + $0x1e0] ss:$8 sps:$4 sm:$0xff]  }
 0x192   : > { %2176 = vmatmul.mubr.bf16.gmra.mrb[40].mxu1 %v10517_v36 }
 0x193   : > { %2183 = vmatprep.mubr.bf16.mxu1 %v10518_v37  ;;  %v10590_v37 = vld [vmem:[%s13114_s1 + $0x1f4] ss:$8 sps:$4 sm:$0xff]  }
 0x19a   : > { %2184 = vmatmul.mubr.bf16.gmra.mrb[44].mxu1 %v10520_v38 }
 0x19b   : > { %2191 = vmatprep.mubr.bf16.mxu1 %v10521_v39 }
 0x1a2   : > { %2192 = vmatmul.mubr.bf16.gmra.mrb[48].mxu1 %v10523_v41 }
 0x1a3   : > { %2199 = vmatprep.mubr.bf16.mxu1 %v10524_v42  ;;  %v10592_v42 = vld [vmem:[%s13114_s1 + $0x1f0] ss:$8 sps:$4 sm:$0xff]  }
 0x1aa   : > { %2200 = vmatmul.mubr.bf16.gmra.mrb[52].mxu1 %v10526_v44  ;;  %v10595_v44 = vld [vmem:[%s13114_s1 + $0x204] ss:$8 sps:$4 sm:$0xff]  }
 0x1ab   : > { %2207 = vmatprep.mubr.bf16.mxu1 %v10527_v45 }
 0x1b2   : > { %2208 = vmatmul.mubr.bf16.gmra.mrb[56].mxu1 %v10529_v47 }
 0x1b3   : > { %2215 = vmatprep.mubr.bf16.mxu1 %v10530_v48 }
 0x1ba   : > { %2216 = vmatmul.mubr.bf16.gmra.mrb[60].mxu1 %v10532_v50 }
 0x1bb   : > { %2223 = vmatprep.mubr.bf16.mxu1 %v10533_v51  ;;  %v10600_v51 = vld [vmem:[%s13114_s1 + $0x214] ss:$8 sps:$4 sm:$0xff]  }
 0x1c2   : > { %2224 = vmatmul.mubr.bf16.gmra.mrb[64].mxu1 %v10535_v53 }
 0x1c3   : > { %2231 = vmatprep.mubr.bf16.mxu1 %v10536_v54  ;;  %v10584_v54 = vld [vmem:[%s13117_s4 + $0x8] sm:$0xff]  }
 0x1ca   : > { %2232 = vmatmul.mubr.bf16.gmra.mrb[68].mxu1 %v10538_v56  ;;  %v10588_v56 = vld [vmem:[%s13117_s4 + $0x10] sm:$0xff]  }
 0x1cb   : > { %2239 = vmatprep.mubr.bf16.mxu1 %v10539_v57 }
 0x1d2   : > { %2240 = vmatmul.mubr.bf16.gmra.mrb[72].mxu1 %v10541_v58 }
 0x1d3   : > { %2247 = vmatprep.mubr.bf16.mxu1 %v10542_v59  ;;  %v10602_v59 = vld [vmem:[%s13114_s1 + $0x210] ss:$8 sps:$4 sm:$0xff]  }
 0x1da   : > { %2248 = vmatmul.mubr.bf16.gmra.mrb[76].mxu1 %v10544_v60 }
 0x1db   : > { %2255 = vmatprep.mubr.bf16.mxu1 %v10545_v61  ;;  %v10605_v61 = vld [vmem:[%s13114_s1 + $0x224] ss:$8 sps:$4 sm:$0xff]  }
 0x1e2   : > { %2256 = vmatmul.mubr.bf16.gmra.mrb[80].mxu1 %v10547_v62 }
 0x1e3   : > { %2263 = vmatprep.mubr.bf16.mxu1 %v10548_v63  ;;  %v10589_v63 = vld [vmem:[%s13117_s4 + $0x18] sm:$0xff]  }
 0x1ea   : > { %2264 = vmatmul.mubr.bf16.gmra.mrb[84].mxu1 %v10550_v0  ;;  %v10593_v0 = vld [vmem:[%s13117_s4 + $0x20] sm:$0xff]  }
 0x1eb   : > { %2271 = vmatprep.mubr.bf16.mxu1 %v10552_v1 }
 0x1f2   : > { %2272 = vmatmul.mubr.bf16.gmra.mrb[88].mxu1 %v10554_v2 }
 0x1f3   : > { %2279 = vmatprep.mubr.bf16.mxu1 %v10556_v3  ;;  %v10607_v3 = vld [vmem:[%s13114_s1 + $0x220] ss:$8 sps:$4 sm:$0xff]  }
 0x1fa   : > { %2280 = vmatmul.mubr.bf16.gmra.mrb[92].mxu1 %v10558_v4 }
 0x1fb   : > { %2287 = vmatprep.mubr.bf16.mxu1 %v10560_v5 }
 0x202   : > { %2288 = vmatmul.mubr.bf16.gmra.mrb[96].mxu1 %v10562_v6 }
 0x203   : > { %2295 = vmatprep.mubr.bf16.mxu1 %v10564_v7  ;;  %v10594_v7 = vld [vmem:[%s13117_s4 + $0x28] sm:$0xff]  }
 0x20a   : > { %2296 = vmatmul.mubr.bf16.gmra.mrb[100].mxu1 %v10566_v8  ;;  %v10610_v8 = vld [vmem:[%s13114_s1 + $0x234] ss:$8 sps:$4 sm:$0xff]  }
 0x20b   : > { %2303 = vmatprep.mubr.bf16.mxu1 %v10568_v9  ;;  %v10598_v9 = vld [vmem:[%s13117_s4 + $0x30] sm:$0xff]  }
 0x212   : > { %2304 = vmatmul.mubr.bf16.gmra.mrb[104].mxu1 %v10570_v10 }
 0x213   : > { %2311 = vmatprep.mubr.bf16.mxu1 %v10572_v11  ;;  %v10612_v11 = vld [vmem:[%s13114_s1 + $0x230] ss:$8 sps:$4 sm:$0xff]  }
 0x215   : > { %v11467_v12 = vpop.f32.mrb[0].mxu1 }
 0x216   : > { %v2099_v13 = vpop.f32.mrb[1].mxu1 }
 0x217   : > { %v11472_v14 = vpop.f32.mrb[2].mxu1 }
 0x218   : > { %v2960_v24 = vpack.c.bf16 %v11472_v14, %v11467_v12  ;;  %v2102_v16 = vpop.f32.mrb[3].mxu1  ;;  %v10599_v12 = vld [vmem:[%s13117_s4 + $0x38] sm:$0xff]  }
 0x219   : > { %v10603_v16 = vld [vmem:[%s13117_s4 + $0x80] sm:$0xff]  }
 0x21a   : > { %2312 = vmatmul.mubr.bf16.gmra.mrb[108].mxu1 %v10574_v26 }
 0x21b   : > { %2319 = vmatprep.mubr.bf16.mxu1 %v10576_v15  ;;  %v10615_v15 = vld [vmem:[%s13114_s1 + $0x244] ss:$8 sps:$4 sm:$0xff]  }
 0x21d   : > { %v11479_v17 = vpop.f32.mrb[4].mxu1 }
 0x21e   : > { %v2107_v18 = vpop.f32.mrb[5].mxu1 }
 0x21f   : > { %v11484_v20 = vpop.f32.mrb[6].mxu1 }
 0x220   : > { %v2961_v22 = vpack.c.bf16 %v11484_v20, %v11479_v17  ;;  %v2110_v23 = vpop.f32.mrb[7].mxu1  ;;  %v10609_v20 = vld [vmem:[%s13117_s4 + $0x98] sm:$0xff]  }
 0x222   : > { %2320 = vmatmul.mubr.bf16.gmra.mrb[112].mxu1 %v10578_v19  ;;  %v10617_v19 = vld [vmem:[%s13114_s1 + $0x240] ss:$8 sps:$4 sm:$0xff]  }
 0x223   : > { %2327 = vmatprep.mubr.bf16.mxu1 %v10580_v21 }
 0x225   : > { %v11491_v25 = vpop.f32.mrb[8].mxu1 }
 0x226   : > { %v2115_v27 = vpop.f32.mrb[9].mxu1 }
 0x227   : > { %v11496_v29 = vpop.f32.mrb[10].mxu1  ;;  %v10604_v27 = vld [vmem:[%s13117_s4 + $0x88] sm:$0xff]  }
 0x228   : > { %v2962_v31 = vpack.c.bf16 %v11496_v29, %v11491_v25  ;;  %v2118_v32 = vpop.f32.mrb[11].mxu1  ;;  %v10625_v29 = vld [vmem:[%s13114_s1 + $0x264] ss:$8 sps:$4 sm:$0xff]  }
 0x229   : > { %v10620_v32 = vld [vmem:[%s13114_s1 + $0x254] ss:$8 sps:$4 sm:$0xff]  }
 0x22a   : > { %2328 = vmatmul.mubr.bf16.gmra.mrb[116].mxu1 %v10582_v28 }
 0x22b   : > { %2335 = vmatprep.mubr.bf16.mxu1 %v10585_v30 }
 0x22d   : > { %v11503_v33 = vpop.f32.mrb[12].mxu1 }
 0x22e   : > { %v2123_v34 = vpop.f32.mrb[13].mxu1 }
 0x22f   : > { %v11508_v36 = vpop.f32.mrb[14].mxu1  ;;  %v10608_v34 = vld [vmem:[%s13117_s4 + $0x90] sm:$0xff]  }
 0x230   : > { %v2963_v38 = vpack.c.bf16 %v11508_v36, %v11503_v33  ;;  %v2126_v39 = vpop.f32.mrb[15].mxu1  ;;  %v10630_v33 = vld [vmem:[%s13114_s1 + $0x274] ss:$8 sps:$4 sm:$0xff]   ;;  %v10614_v36 = vld [vmem:[%s13117_s4 + $0xa8] sm:$0xff]  }
 0x232   : > { %2336 = vmatmul.mubr.bf16.gmra.mrb[120].mxu1 %v10587_v35 }
 0x233   : > { %2343 = vmatprep.mubr.bf16.mxu1 %v10590_v37  ;;  %v10622_v37 = vld [vmem:[%s13114_s1 + $0x250] ss:$8 sps:$4 sm:$0xff]  }
 0x235   : > { %v2129_v40 = vpop.f32.mrb[16].mxu1 }
 0x236   : > { %v2131_v41 = vpop.f32.mrb[17].mxu1 }
 0x237   : > { %v2132_v43 = vpop.f32.mrb[18].mxu1  ;;  %v10627_v41 = vld [vmem:[%s13114_s1 + $0x260] ss:$8 sps:$4 sm:$0xff]  }
 0x238   : > { %v2964_v45 = vpack.c.bf16 %v2132_v43, %v2129_v40  ;;  %v2134_v46 = vpop.f32.mrb[19].mxu1 }
 0x23a   : > { %9430 = vmatprep.mubr.bf16.mxu0 %v2964_v45  ;;  %2344 = vmatmul.mubr.bf16.gmra.mrb[124].mxu1 %v10592_v42  ;;  %v10618_v45 = vld [vmem:[%s13117_s4 + $0xb0] sm:$0xff]  }
 0x23b   : > { %2351 = vmatprep.mubr.bf16.mxu1 %v10595_v44 }
 0x23d   : > { %v2137_v47 = vpop.f32.mrb[20].mxu1 }
 0x23e   : > { %v2139_v48 = vpop.f32.mrb[21].mxu1 }
 0x23f   : > { %v2140_v50 = vpop.f32.mrb[22].mxu1 }
 0x240   : > { %v2965_v52 = vpack.c.bf16 %v2140_v50, %v2137_v47  ;;  %v2142_v53 = vpop.f32.mrb[23].mxu1  ;;  %v10632_v47 = vld [vmem:[%s13114_s1 + $0x270] ss:$8 sps:$4 sm:$0xff]   ;;  %v10635_v50 = vld [vmem:[%s13114_s1 + $0x284] ss:$8 sps:$4 sm:$0xff]  }
 0x242   : > { %9431 = vmatmul.mubr.bf16.vlgmr.msra.gmra.mrb[32].mxu0 %v2965_v52  ;;  %2352 = vmatmul.mubr.bf16.gmra.mrb[128].mxu1 %v10597_v49 }
 0x243   : > { %9439 = vmatpush3.bf16.msra.mxu0 %v11404_v55  ;;  %2359 = vmatprep.mubr.bf16.mxu1 %v10600_v51  ;;  %v10619_v51 = vld [vmem:[%s13117_s4 + $0xb8] sm:$0xff]  }
 0x244   : > { %9440 = vmatprep.subr.bf16.mxu0 %v10584_v54 }
 0x245   : > { %v2145_v57 = vpop.f32.mrb[24].mxu1 }
 0x246   : > { %v2147_v58 = vpop.f32.mrb[25].mxu1 }
 0x247   : > { %9441 = vmatpush3.bf16.msra.mxu0 %v10584_v54  ;;  %v2148_v60 = vpop.f32.mrb[26].mxu1  ;;  %v10623_v54 = vld [vmem:[%s13117_s4 + $0xc0] sm:$0xff]  }
 0x248   : > { %9442 = vmatprep.subr.bf16.mxu0 %v10588_v56  ;;  %v2966_v55 = vpack.c.bf16 %v2148_v60, %v2145_v57  ;;  %v2150_v62 = vpop.f32.mrb[27].mxu1  ;;  %v10637_v57 = vld [vmem:[%s13114_s1 + $0x280] ss:$8 sps:$4 sm:$0xff]  }
 0x249   : > { %v10624_v60 = vld [vmem:[%s13117_s4 + $0xc8] sm:$0xff]   ;;  %v10640_v62 = vld [vmem:[%s13114_s1 + $0x294] ss:$8 sps:$4 sm:$0xff]  }
 0x24a   : > { %9434 = vmatprep.mubr.bf16.mxu0 %v2966_v55  ;;  %2360 = vmatmul.mubr.bf16.gmra.mrb[132].mxu1 %v10602_v59 }
 0x24b   : > { %9443 = vmatpush3.bf16.msra.mxu0 %v10588_v56  ;;  %2367 = vmatprep.mubr.bf16.mxu1 %v10605_v61 }
 0x24c   : > { %9444 = vmatprep.subr.bf16.mxu0 %v10589_v63 }
 0x24d   : > { %v2153_v1 = vpop.f32.mrb[28].mxu1 }
 0x24e   : > { %v2155_v2 = vpop.f32.mrb[29].mxu1 }
 0x24f   : > { %9445 = vmatpush3.bf16.msra.mxu0 %v10589_v63  ;;  %v2156_v4 = vpop.f32.mrb[30].mxu1  ;;  %v10628_v63 = vld [vmem:[%s13117_s4 + $0xd0] sm:$0xff]  }
 0x250   : > { %v2967_v5 = vpack.c.bf16 %v2156_v4, %v2153_v1  ;;  %9446 = vmatprep.subr.bf16.mxu0 %v10593_v0  ;;  %v2158_v6 = vpop.f32.mrb[31].mxu1  ;;  %v10642_v1 = vld [vmem:[%s13114_s1 + $0x290] ss:$8 sps:$4 sm:$0xff]  }
 0x251   : > { %v10629_v4 = vld [vmem:[%s13117_s4 + $0xd8] sm:$0xff]  }
 0x252   : > { %9435 = vmatmul.mubr.bf16.gmra.mrb[36].mxu0 %v2967_v5  ;;  %2368 = vmatmul.mubr.bf16.gmra.mrb[136].mxu1 %v10607_v3 }
 0x253   : > { %9447 = vmatpush3.bf16.msra.mxu0 %v10593_v0  ;;  %9454 = vmatprep.mubr.bf16.mxu0 %v2960_v24 }
 0x254   : > { %9448 = vmatprep.subr.bf16.mxu0 %v10594_v7  ;;  %2375 = vmatprep.mubr.bf16.mxu1 %v10610_v8  ;;  %v11106_v8 = vmov 0.0  }
 0x255   : > { %v2161_v10 = vpop.f32.mrb[32].mxu1  ;;  %10062 = vmatprep.subr.bf16.mxu1 %v11106_v8 }
 0x256   : > { %v2163_v13 = vpop.f32.mrb[33].mxu1 }
 0x257   : > { %9449 = vmatpush3.bf16.msra.mxu0 %v10594_v7  ;;  %v2164_v26 = vpop.f32.mrb[34].mxu1  ;;  %v10645_v7 = vld [vmem:[%s13114_s1 + $0x2a4] ss:$8 sps:$4 sm:$0xff]   ;;  %v10647_v13 = vld [vmem:[%s13114_s1 + $0x2a0] ss:$8 sps:$4 sm:$0xff]  }
 0x258   : > { %9450 = vmatprep.subr.bf16.mxu0 %v10598_v9  ;;  %v2968_v14 = vpack.c.bf16 %v2164_v26, %v2161_v10  ;;  %v2166_v24 = vpop.f32.mrb[35].mxu1  ;;  %v10633_v10 = vld [vmem:[%s13117_s4 + $0xe0] sm:$0xff]  }
 0x25a   : > { %2376 = vmatmul.mubr.bf16.gmra.mrb[140].mxu1 %v10612_v11 }
 0x25b   : > { %9451 = vmatpush3.bf16.msra.mxu0 %v10598_v9  ;;  %2383 = vmatprep.mubr.bf16.mxu1 %v10615_v15  ;;  %v10709_v9 = vld [vmem:[%s13119_s6 + $0x40] sm:$0xff]  }
 0x25c   : > { %9452 = vmatprep.subr.bf16.mxu0 %v10599_v12  ;;  %10063 = vmatpush3.bf16.msra.mxu1 %v10709_v9  ;;  %v10680_v9 = vld [vmem:[%s13114_s1 + $0x314] ss:$8 sps:$4 sm:$0xff]  }
 0x25d   : > { %v11573_v18 = vpop.f32.mrb[36].mxu1  ;;  %10064 = vmatprep.subr.bf16.mxu1 %v11106_v8 }
 0x25e   : > { %v2171_v21 = vpop.f32.mrb[37].mxu1 }
 0x25f   : > { %9453 = vmatpush3.bf16.msra.mxu0 %v10599_v12  ;;  %v11578_v23 = vpop.f32.mrb[38].mxu1  ;;  %v10650_v12 = vld [vmem:[%s13114_s1 + $0x2b4] ss:$8 sps:$4 sm:$0xff]   ;;  %v10652_v21 = vld [vmem:[%s13114_s1 + $0x2b0] ss:$8 sps:$4 sm:$0xff]  }
 0x260   : > { %9462 = vmatprep.subr.bf16.mxu0 %v10603_v16  ;;  %v2969_v28 = vpack.c.bf16 %v11578_v23, %v11573_v18  ;;  %v2174_v30 = vpop.f32.mrb[39].mxu1  ;;  %v10638_v18 = vld [vmem:[%s13117_s4 + $0xf0] sm:$0xff]  }
 0x261   : > { %v10639_v30 = vld [vmem:[%s13117_s4 + $0xf8] sm:$0xff]  }
 0x262   : > { %9455 = vmatmul.mubr.bf16.vlgmr.msra.gmra.mrb[32].mxu0 %v2961_v22  ;;  %2384 = vmatmul.mubr.bf16.gmra.mrb[144].mxu1 %v10617_v19 }
 0x263   : > { %9458 = vmatprep.mubr.bf16.mxu0 %v2962_v31  ;;  %9463 = vmatpush3.bf16.msra.mxu0 %v10603_v16  ;;  %v10613_v31 = vld [vmem:[%s13117_s4 + $0xa0] sm:$0xff]  }
 0x264   : > { %9464 = vmatprep.subr.bf16.mxu0 %v10604_v27  ;;  %2391 = vmatprep.mubr.bf16.mxu1 %v10620_v32 }
 0x265   : > { %v2177_v35 = vpop.f32.mrb[40].mxu1 }
 0x266   : > { %v2179_v39 = vpop.f32.mrb[41].mxu1 }
 0x267   : > { %9465 = vmatpush3.bf16.msra.mxu0 %v10604_v27  ;;  %v2180_v17 = vpop.f32.mrb[42].mxu1  ;;  %v10657_v39 = vld [vmem:[%s13114_s1 + $0x2c0] ss:$8 sps:$4 sm:$0xff]  }
 0x268   : > { %9466 = vmatprep.subr.bf16.mxu0 %v10608_v34  ;;  %v2970_v22 = vpack.c.bf16 %v2180_v17, %v2177_v35  ;;  %v2182_v25 = vpop.f32.mrb[43].mxu1  ;;  %v10643_v35 = vld [vmem:[%s13117_s4 + $0x100] sm:$0xff]  }
 0x26a   : > { %9459 = vmatmul.mubr.bf16.gmra.mrb[36].mxu0 %v2963_v38  ;;  %2392 = vmatmul.mubr.bf16.gmra.mrb[148].mxu1 %v10622_v37 }
 0x26b   : > { %9467 = vmatpush3.bf16.msra.mxu0 %v10608_v34  ;;  %9478 = vmatprep.mubr.bf16.mxu0 %v2968_v14  ;;  %v10634_v14 = vld [vmem:[%s13117_s4 + $0xe8] sm:$0xff]  }
 0x26c   : > { %9468 = vmatprep.subr.bf16.mxu0 %v10609_v20  ;;  %2399 = vmatprep.mubr.bf16.mxu1 %v10625_v29 }
 0x26d   : > { %v2185_v40 = vpop.f32.mrb[44].mxu1 }
 0x26e   : > { %v2187_v42 = vpop.f32.mrb[45].mxu1 }
 0x26f   : > { %9469 = vmatpush3.bf16.msra.mxu0 %v10609_v20  ;;  %v2188_v43 = vpop.f32.mrb[46].mxu1  ;;  %v10662_v42 = vld [vmem:[%s13114_s1 + $0x2d0] ss:$8 sps:$4 sm:$0xff]  }
 0x270   : > { %9470 = vmatprep.subr.bf16.mxu0 %v10613_v31  ;;  %v2971_v38 = vpack.c.bf16 %v2188_v43, %v2185_v40  ;;  %v2190_v44 = vpop.f32.mrb[47].mxu1  ;;  %v10648_v40 = vld [vmem:[%s13117_s4 + $0x110] sm:$0xff]  }
 0x272   : > { %2400 = vmatmul.mubr.bf16.gmra.mrb[152].mxu1 %v10627_v41 }
 0x273   : > { %9471 = vmatpush3.bf16.msra.mxu0 %v10613_v31  ;;  %2407 = vmatprep.mubr.bf16.mxu1 %v10630_v33  ;;  %v10660_v31 = vld [vmem:[%s13114_s1 + $0x2d4] ss:$8 sps:$4 sm:$0xff]  }
 0x274   : > { %9472 = vmatprep.subr.bf16.mxu0 %v10614_v36 }
 0x275   : > { %v2193_v46 = vpop.f32.mrb[48].mxu1 }
 0x276   : > { %v2195_v48 = vpop.f32.mrb[49].mxu1 }
 0x277   : > { %9473 = vmatpush3.bf16.msra.mxu0 %v10614_v36  ;;  %v2196_v49 = vpop.f32.mrb[50].mxu1  ;;  %v10649_v36 = vld [vmem:[%s13117_s4 + $0x118] sm:$0xff]   ;;  %v10667_v48 = vld [vmem:[%s13114_s1 + $0x2e0] ss:$8 sps:$4 sm:$0xff]  }
 0x278   : > { %9474 = vmatprep.subr.bf16.mxu0 %v10618_v45  ;;  %v2972_v52 = vpack.c.bf16 %v2196_v49, %v2193_v46  ;;  %v2198_v53 = vpop.f32.mrb[51].mxu1  ;;  %v10653_v46 = vld [vmem:[%s13117_s4 + $0x120] sm:$0xff]  }
 0x27a   : > { %2408 = vmatmul.mubr.bf16.gmra.mrb[156].mxu1 %v10632_v47 }
 0x27b   : > { %9475 = vmatpush3.bf16.msra.mxu0 %v10618_v45  ;;  %2415 = vmatprep.mubr.bf16.mxu1 %v10635_v50  ;;  %v10665_v45 = vld [vmem:[%s13114_s1 + $0x2e4] ss:$8 sps:$4 sm:$0xff]  }
 0x27c   : > { %9476 = vmatprep.subr.bf16.mxu0 %v10619_v51 }
 0x27d   : > { %v11636_v56 = vpop.f32.mrb[52].mxu1 }
 0x27e   : > { %v2203_v58 = vpop.f32.mrb[53].mxu1 }
 0x27f   : > { %9477 = vmatpush3.bf16.msra.mxu0 %v10619_v51  ;;  %v11641_v59 = vpop.f32.mrb[54].mxu1  ;;  %v10670_v51 = vld [vmem:[%s13114_s1 + $0x2f4] ss:$8 sps:$4 sm:$0xff]   ;;  %v10672_v58 = vld [vmem:[%s13114_s1 + $0x2f0] ss:$8 sps:$4 sm:$0xff]  }
 0x280   : > { %9486 = vmatprep.subr.bf16.mxu0 %v10623_v54  ;;  %v2973_v61 = vpack.c.bf16 %v11641_v59, %v11636_v56  ;;  %v2206_v55 = vpop.f32.mrb[55].mxu1  ;;  %v10658_v56 = vld [vmem:[%s13117_s4 + $0x130] sm:$0xff]  }
 0x281   : > { %v10659_v55 = vld [vmem:[%s13117_s4 + $0x138] sm:$0xff]  }
 0x282   : > { %9479 = vmatmul.mubr.bf16.vlgmr.msra.gmra.mrb[32].mxu0 %v2969_v28  ;;  %2416 = vmatmul.mubr.bf16.gmra.mrb[160].mxu1 %v10637_v57  ;;  %v10655_v28 = vld [vmem:[%s13114_s1 + $0x2c4] ss:$8 sps:$4 sm:$0xff]  }
 0x283   : > { %9487 = vmatpush3.bf16.msra.mxu0 %v10623_v54  ;;  %9482 = vmatprep.mubr.bf16.mxu0 %v2970_v22  ;;  %v10644_v22 = vld [vmem:[%s13117_s4 + $0x108] sm:$0xff]  }
 0x284   : > { %9488 = vmatprep.subr.bf16.mxu0 %v10624_v60  ;;  %2423 = vmatprep.mubr.bf16.mxu1 %v10640_v62 }
 0x285   : > { %v11657_v0 = vpop.f32.mrb[56].mxu1 }
 0x286   : > { %v2211_v2 = vpop.f32.mrb[57].mxu1 }
 0x287   : > { %9489 = vmatpush3.bf16.msra.mxu0 %v10624_v60  ;;  %v2212_v3 = vpop.f32.mrb[58].mxu1  ;;  %v10677_v2 = vld [vmem:[%s13114_s1 + $0x300] ss:$8 sps:$4 sm:$0xff]  }
 0x288   : > { %9490 = vmatprep.subr.bf16.mxu0 %v10628_v63  ;;  %v2974_v5 = vpack.c.bf16 %v2212_v3, %v11657_v0  ;;  %v2214_v6 = vpop.f32.mrb[59].mxu1  ;;  %v10663_v0 = vld [vmem:[%s13117_s4 + $0x140] sm:$0xff]  }
 0x28a   : > { %9483 = vmatmul.mubr.bf16.gmra.mrb[36].mxu0 %v2971_v38  ;;  %2424 = vmatmul.mubr.bf16.gmra.mrb[164].mxu1 %v10642_v1 }
 0x28b   : > { %9491 = vmatpush3.bf16.msra.mxu0 %v10628_v63  ;;  %9502 = vmatprep.mubr.bf16.mxu0 %v2972_v52  ;;  %v10654_v52 = vld [vmem:[%s13117_s4 + $0x128] sm:$0xff]  }
 0x28c   : > { %9492 = vmatprep.subr.bf16.mxu0 %v10629_v4  ;;  %2431 = vmatprep.mubr.bf16.mxu1 %v10645_v7 }
 0x28d   : > { %v2217_v11 = vpop.f32.mrb[60].mxu1 }
 0x28e   : > { %v2219_v26 = vpop.f32.mrb[61].mxu1 }
 0x28f   : > { %9493 = vmatpush3.bf16.msra.mxu0 %v10629_v4  ;;  %v2220_v15 = vpop.f32.mrb[62].mxu1 }
 0x290   : > { %9494 = vmatprep.subr.bf16.mxu0 %v10633_v10  ;;  %v2975_v24 = vpack.c.bf16 %v2220_v15, %v2217_v11  ;;  %v2222_v16 = vpop.f32.mrb[63].mxu1 }
 0x291   : > { %v10685_v16 = vld [vmem:[%s13114_s1 + $0x324] ss:$8 sps:$4 sm:$0xff]  }
 0x292   : > { %2432 = vmatmul.mubr.bf16.gmra.mrb[168].mxu1 %v10647_v13  ;;  %v10682_v13 = vld [vmem:[%s13114_s1 + $0x310] ss:$8 sps:$4 sm:$0xff]  }
 0x293   : > { %9495 = vmatpush3.bf16.msra.mxu0 %v10633_v10  ;;  %2439 = vmatprep.mubr.bf16.mxu1 %v10650_v12  ;;  %v10668_v10 = vld [vmem:[%s13117_s4 + $0x150] sm:$0xff]   ;;  %v10669_v12 = vld [vmem:[%s13117_s4 + $0x158] sm:$0xff]  }
 0x294   : > { %9496 = vmatprep.subr.bf16.mxu0 %v10634_v14 }
 0x295   : > { %v2225_v19 = vpop.f32.mrb[64].mxu1 }
 0x296   : > { %v2227_v23 = vpop.f32.mrb[65].mxu1 }
 0x297   : > { %9497 = vmatpush3.bf16.msra.mxu0 %v10634_v14  ;;  %v2228_v27 = vpop.f32.mrb[66].mxu1 }
 0x298   : > { %9498 = vmatprep.subr.bf16.mxu0 %v10638_v18  ;;  %v2976_v32 = vpack.c.bf16 %v2228_v27, %v2225_v19  ;;  %v2230_v34 = vpop.f32.mrb[67].mxu1 }
 0x29a   : > { %2440 = vmatmul.mubr.bf16.gmra.mrb[172].mxu1 %v10652_v21  ;;  %v10687_v21 = vld [vmem:[%s13114_s1 + $0x320] ss:$8 sps:$4 sm:$0xff]  }
 0x29b   : > { %9499 = vmatpush3.bf16.msra.mxu0 %v10638_v18  ;;  %2447 = vmatprep.mubr.bf16.mxu1 %v10655_v28  ;;  %v10673_v18 = vld [vmem:[%s13117_s4 + $0x160] sm:$0xff]   ;;  %v10690_v28 = vld [vmem:[%s13114_s1 + $0x334] ss:$8 sps:$4 sm:$0xff]  }
 0x29c   : > { %9500 = vmatprep.subr.bf16.mxu0 %v10639_v30 }
 0x29d   : > { %v11701_v37 = vpop.f32.mrb[68].mxu1 }
 0x29e   : > { %v2235_v17 = vpop.f32.mrb[69].mxu1 }
 0x29f   : > { %9501 = vmatpush3.bf16.msra.mxu0 %v10639_v30  ;;  %v11706_v20 = vpop.f32.mrb[70].mxu1  ;;  %v10674_v30 = vld [vmem:[%s13117_s4 + $0x168] sm:$0xff]  }
 0x2a0   : > { %9510 = vmatprep.subr.bf16.mxu0 %v10643_v35  ;;  %v2977_v25 = vpack.c.bf16 %v11706_v20, %v11701_v37  ;;  %v2238_v29 = vpop.f32.mrb[71].mxu1 }
 0x2a2   : > { %9503 = vmatmul.mubr.bf16.vlgmr.msra.gmra.mrb[32].mxu0 %v2973_v61  ;;  %2448 = vmatmul.mubr.bf16.gmra.mrb[176].mxu1 %v10657_v39  ;;  %v10675_v61 = vld [vmem:[%s13114_s1 + $0x304] ss:$8 sps:$4 sm:$0xff]   ;;  %v10692_v39 = vld [vmem:[%s13114_s1 + $0x330] ss:$8 sps:$4 sm:$0xff]  }
 0x2a3   : > { %9511 = vmatpush3.bf16.msra.mxu0 %v10643_v35  ;;  %9506 = vmatprep.mubr.bf16.mxu0 %v2974_v5  ;;  %v10664_v5 = vld [vmem:[%s13117_s4 + $0x148] sm:$0xff]   ;;  %v10678_v35 = vld [vmem:[%s13117_s4 + $0x170] sm:$0xff]  }
 0x2a4   : > { %9512 = vmatprep.subr.bf16.mxu0 %v10644_v22  ;;  %2455 = vmatprep.mubr.bf16.mxu1 %v10660_v31 }
 0x2a5   : > { %v2241_v41 = vpop.f32.mrb[72].mxu1 }
 0x2a6   : > { %v2243_v43 = vpop.f32.mrb[73].mxu1 }
 0x2a7   : > { %9513 = vmatpush3.bf16.msra.mxu0 %v10644_v22  ;;  %v2244_v33 = vpop.f32.mrb[74].mxu1  ;;  %v10695_v22 = vld [vmem:[%s13114_s1 + $0x344] ss:$8 sps:$4 sm:$0xff]  }
 0x2a8   : > { %9514 = vmatprep.subr.bf16.mxu0 %v10648_v40  ;;  %v2978_v38 = vpack.c.bf16 %v2244_v33, %v2241_v41  ;;  %v2246_v44 = vpop.f32.mrb[75].mxu1 }
 0x2aa   : > { %9507 = vmatmul.mubr.bf16.gmra.mrb[36].mxu0 %v2975_v24  ;;  %2456 = vmatmul.mubr.bf16.gmra.mrb[180].mxu1 %v10662_v42  ;;  %v10697_v42 = vld [vmem:[%s13114_s1 + $0x340] ss:$8 sps:$4 sm:$0xff]  }
 0x2ab   : > { %9515 = vmatpush3.bf16.msra.mxu0 %v10648_v40  ;;  %9526 = vmatprep.mubr.bf16.mxu0 %v2976_v32  ;;  %v10683_v40 = vld [vmem:[%s13117_s4 + $0x180] sm:$0xff]  }
 0x2ac   : > { %9516 = vmatprep.subr.bf16.mxu0 %v10649_v36  ;;  %2463 = vmatprep.mubr.bf16.mxu1 %v10665_v45  ;;  %v10700_v45 = vld [vmem:[%s13114_s1 + $0x354] ss:$8 sps:$4 sm:$0xff]  }
 0x2ad   : > { %v2249_v47 = vpop.f32.mrb[76].mxu1 }
 0x2ae   : > { %v2251_v49 = vpop.f32.mrb[77].mxu1 }
 0x2af   : > { %9517 = vmatpush3.bf16.msra.mxu0 %v10649_v36  ;;  %v2252_v50 = vpop.f32.mrb[78].mxu1  ;;  %v10684_v36 = vld [vmem:[%s13117_s4 + $0x188] sm:$0xff]  }
 0x2b0   : > { %9518 = vmatprep.subr.bf16.mxu0 %v10653_v46  ;;  %v2979_v53 = vpack.c.bf16 %v2252_v50, %v2249_v47  ;;  %v2254_v54 = vpop.f32.mrb[79].mxu1 }
 0x2b1   : > { %v10705_v54 = vld [vmem:[%s13114_s1 + $0x364] ss:$8 sps:$4 sm:$0xff]  }
 0x2b2   : > { %2464 = vmatmul.mubr.bf16.gmra.mrb[184].mxu1 %v10667_v48  ;;  %v10702_v48 = vld [vmem:[%s13114_s1 + $0x350] ss:$8 sps:$4 sm:$0xff]  }
 0x2b3   : > { %9519 = vmatpush3.bf16.msra.mxu0 %v10653_v46  ;;  %2471 = vmatprep.mubr.bf16.mxu1 %v10670_v51  ;;  %v10688_v46 = vld [vmem:[%s13117_s4 + $0x190] sm:$0xff]   ;;  %v10689_v51 = vld [vmem:[%s13117_s4 + $0x198] sm:$0xff]  }
 0x2b4   : > { %9520 = vmatprep.subr.bf16.mxu0 %v10654_v52 }
 0x2b5   : > { %v2257_v57 = vpop.f32.mrb[80].mxu1 }
 0x2b6   : > { %v2259_v59 = vpop.f32.mrb[81].mxu1 }
 0x2b7   : > { %9521 = vmatpush3.bf16.msra.mxu0 %v10654_v52  ;;  %v2260_v60 = vpop.f32.mrb[82].mxu1 }
 0x2b8   : > { %9522 = vmatprep.subr.bf16.mxu0 %v10658_v56  ;;  %v2980_v62 = vpack.c.bf16 %v2260_v60, %v2257_v57  ;;  %v2262_v63 = vpop.f32.mrb[83].mxu1 }
 0x2ba   : > { %2472 = vmatmul.mubr.bf16.gmra.mrb[188].mxu1 %v10672_v58  ;;  %v10707_v58 = vld [vmem:[%s13114_s1 + $0x360] ss:$8 sps:$4 sm:$0xff]  }
 0x2bb   : > { %9523 = vmatpush3.bf16.msra.mxu0 %v10658_v56  ;;  %2479 = vmatprep.mubr.bf16.mxu1 %v10675_v61  ;;  %v10693_v56 = vld [vmem:[%s13117_s4 + $0x1a0] sm:$0xff]   ;;  %v10711_v61 = vld [vmem:[%s13114_s1 + $0x374] ss:$8 sps:$4 sm:$0xff]  }
 0x2bc   : > { %9524 = vmatprep.subr.bf16.mxu0 %v10659_v55 }
 0x2bd   : > { %v11758_v1 = vpop.f32.mrb[84].mxu1 }
 0x2be   : > { %v2267_v3 = vpop.f32.mrb[85].mxu1 }
 0x2bf   : > { %9525 = vmatpush3.bf16.msra.mxu0 %v10659_v55  ;;  %v11763_v4 = vpop.f32.mrb[86].mxu1  ;;  %v10694_v55 = vld [vmem:[%s13117_s4 + $0x1a8] sm:$0xff]  }
 0x2c0   : > { %9534 = vmatprep.subr.bf16.mxu0 %v10663_v0  ;;  %v2981_v6 = vpack.c.bf16 %v11763_v4, %v11758_v1  ;;  %v2270_v7 = vpop.f32.mrb[87].mxu1 }
 0x2c1   : > { %v10699_v7 = vld [vmem:[%s13117_s4 + $0x1b8] sm:$0xff]  }
 0x2c2   : > { %9527 = vmatmul.mubr.bf16.vlgmr.msra.gmra.mrb[32].mxu0 %v2977_v25  ;;  %2480 = vmatmul.mubr.bf16.gmra.mrb[192].mxu1 %v10677_v2  ;;  %v10679_v25 = vld [vmem:[%s13117_s4 + $0x178] sm:$0xff]  }
 0x2c3   : > { %9535 = vmatpush3.bf16.msra.mxu0 %v10663_v0  ;;  %9530 = vmatprep.mubr.bf16.mxu0 %v2978_v38  ;;  %v10698_v0 = vld [vmem:[%s13117_s4 + $0x1b0] sm:$0xff]  }
 0x2c4   : > { %9536 = vmatprep.subr.bf16.mxu0 %v10664_v5  ;;  %2487 = vmatprep.mubr.bf16.mxu1 %v10680_v9  ;;  %v10713_v2 = vld [vmem:[%s13114_s1 + $0x370] ss:$8 sps:$4 sm:$0xff]  }
 0x2c5   : > { %v2273_v11 = vpop.f32.mrb[88].mxu1 }
 0x2c6   : > { %v2275_v26 = vpop.f32.mrb[89].mxu1 }
 0x2c7   : > { %9537 = vmatpush3.bf16.msra.mxu0 %v10664_v5  ;;  %v2276_v15 = vpop.f32.mrb[90].mxu1  ;;  %v10716_v5 = vld [vmem:[%s13114_s1 + $0x384] ss:$8 sps:$4 sm:$0xff]   ;;  %v10718_v26 = vld [vmem:[%s13114_s1 + $0x380] ss:$8 sps:$4 sm:$0xff]  }
 0x2c8   : > { %9538 = vmatprep.subr.bf16.mxu0 %v10668_v10  ;;  %v2982_v14 = vpack.c.bf16 %v2276_v15, %v2273_v11  ;;  %v2278_v24 = vpop.f32.mrb[91].mxu1  ;;  %v10703_v11 = vld [vmem:[%s13117_s4 + $0x1c0] sm:$0xff]  }
 0x2ca   : > { %9531 = vmatmul.mubr.bf16.gmra.mrb[36].mxu0 %v2979_v53  ;;  %2488 = vmatmul.mubr.bf16.gmra.mrb[196].mxu1 %v10682_v13 }
 0x2cb   : > { %9539 = vmatpush3.bf16.msra.mxu0 %v10668_v10  ;;  %9550 = vmatprep.mubr.bf16.mxu0 %v2980_v62 }
 0x2cc   : > { %9540 = vmatprep.subr.bf16.mxu0 %v10669_v12  ;;  %2495 = vmatprep.mubr.bf16.mxu1 %v10685_v16 }
 0x2cd   : > { %v2281_v19 = vpop.f32.mrb[92].mxu1 }
 0x2ce   : > { %v2283_v23 = vpop.f32.mrb[93].mxu1 }
 0x2cf   : > { %9541 = vmatpush3.bf16.msra.mxu0 %v10669_v12  ;;  %v2284_v27 = vpop.f32.mrb[94].mxu1  ;;  %v10723_v23 = vld [vmem:[%s13114_s1 + $0x390] ss:$8 sps:$4 sm:$0xff]  }
 0x2d0   : > { %9542 = vmatprep.subr.bf16.mxu0 %v10673_v18  ;;  %v2983_v32 = vpack.c.bf16 %v2284_v27, %v2281_v19  ;;  %v2286_v34 = vpop.f32.mrb[95].mxu1  ;;  %v10708_v19 = vld [vmem:[%s13117_s4 + $0x1d0] sm:$0xff]  }
 0x2d2   : > { %2496 = vmatmul.mubr.bf16.gmra.mrb[200].mxu1 %v10687_v21 }
 0x2d3   : > { %9543 = vmatpush3.bf16.msra.mxu0 %v10673_v18  ;;  %2503 = vmatprep.mubr.bf16.mxu1 %v10690_v28  ;;  %v10721_v18 = vld [vmem:[%s13114_s1 + $0x394] ss:$8 sps:$4 sm:$0xff]  }
 0x2d4   : > { %9544 = vmatprep.subr.bf16.mxu0 %v10674_v30 }
 0x2d5   : > { %v2289_v37 = vpop.f32.mrb[96].mxu1 }
 0x2d6   : > { %v2291_v17 = vpop.f32.mrb[97].mxu1 }
 0x2d7   : > { %9545 = vmatpush3.bf16.msra.mxu0 %v10674_v30  ;;  %v2292_v20 = vpop.f32.mrb[98].mxu1  ;;  %v10710_v30 = vld [vmem:[%s13117_s4 + $0x1d8] sm:$0xff]   ;;  %v10728_v17 = vld [vmem:[%s13114_s1 + $0x3a0] ss:$8 sps:$4 sm:$0xff]  }
 0x2d8   : > { %9546 = vmatprep.subr.bf16.mxu0 %v10678_v35  ;;  %v2984_v29 = vpack.c.bf16 %v2292_v20, %v2289_v37  ;;  %v2294_v31 = vpop.f32.mrb[99].mxu1  ;;  %v10714_v37 = vld [vmem:[%s13117_s4 + $0x1e0] sm:$0xff]  }
 0x2da   : > { %2504 = vmatmul.mubr.bf16.gmra.mrb[204].mxu1 %v10692_v39 }
 0x2db   : > { %9547 = vmatpush3.bf16.msra.mxu0 %v10678_v35  ;;  %2511 = vmatprep.mubr.bf16.mxu1 %v10695_v22  ;;  %v10726_v35 = vld [vmem:[%s13114_s1 + $0x3a4] ss:$8 sps:$4 sm:$0xff]  }
 0x2dc   : > { %9548 = vmatprep.subr.bf16.mxu0 %v10679_v25 }
 0x2dd   : > { %v11815_v41 = vpop.f32.mrb[100].mxu1 }
 0x2de   : > { %v2299_v43 = vpop.f32.mrb[101].mxu1 }
 0x2df   : > { %9549 = vmatpush3.bf16.msra.mxu0 %v10679_v25  ;;  %v11820_v33 = vpop.f32.mrb[102].mxu1  ;;  %v10731_v25 = vld [vmem:[%s13114_s1 + $0x3b4] ss:$8 sps:$4 sm:$0xff]   ;;  %v10733_v43 = vld [vmem:[%s13114_s1 + $0x3b0] ss:$8 sps:$4 sm:$0xff]  }
 0x2e0   : > { %9558 = vmatprep.subr.bf16.mxu0 %v10683_v40  ;;  %v2985_v38 = vpack.c.bf16 %v11820_v33, %v11815_v41  ;;  %v2302_v44 = vpop.f32.mrb[103].mxu1  ;;  %v10719_v41 = vld [vmem:[%s13117_s4 + $0x1f0] sm:$0xff]  }
 0x2e1   : > { %v10720_v44 = vld [vmem:[%s13117_s4 + $0x1f8] sm:$0xff]  }
 0x2e2   : > { %9551 = vmatmul.mubr.bf16.vlgmr.msra.gmra.mrb[32].mxu0 %v2981_v6  ;;  %2512 = vmatmul.mubr.bf16.gmra.mrb[208].mxu1 %v10697_v42  ;;  %v10776_v6 = vld [vmem:[%s13119_s6 + $0x48] sm:$0xff]  }
 0x2e3   : > { %9559 = vmatpush3.bf16.msra.mxu0 %v10683_v40  ;;  %9554 = vmatprep.mubr.bf16.mxu0 %v2982_v14  ;;  %v10704_v14 = vld [vmem:[%s13117_s4 + $0x1c8] sm:$0xff]  }
 0x2e4   : > { %9560 = vmatprep.subr.bf16.mxu0 %v10684_v36  ;;  %2519 = vmatprep.mubr.bf16.mxu1 %v10700_v45 }
 0x2e5   : > { %v11836_v47 = vpop.f32.mrb[104].mxu1  ;;  %10065 = vmatpush3.bf16.msra.mxu1 %v10776_v6  ;;  %v10751_v6 = vld [vmem:[%s13114_s1 + $0x3f4] ss:$8 sps:$4 sm:$0xff]  }
 0x2e6   : > { %v2307_v49 = vpop.f32.mrb[105].mxu1  ;;  %10066 = vmatprep.subr.bf16.mxu1 %v11106_v8 }
 0x2e7   : > { %9561 = vmatpush3.bf16.msra.mxu0 %v10684_v36  ;;  %v2308_v50 = vpop.f32.mrb[106].mxu1  ;;  %v10738_v49 = vld [vmem:[%s13114_s1 + $0x3c0] ss:$8 sps:$4 sm:$0xff]  }
 0x2e8   : > { %9562 = vmatprep.subr.bf16.mxu0 %v10688_v46  ;;  %v2986_v52 = vpack.c.bf16 %v2308_v50, %v11836_v47  ;;  %v2310_v53 = vpop.f32.mrb[107].mxu1  ;;  %v10724_v47 = vld [vmem:[%s13117_s4 + $0x200] sm:$0xff]  }
 0x2ea   : > { %9555 = vmatmul.mubr.bf16.gmra.mrb[36].mxu0 %v2983_v32  ;;  %2520 = vmatmul.mubr.bf16.gmra.mrb[212].mxu1 %v10702_v48 }
 0x2eb   : > { %9563 = vmatpush3.bf16.msra.mxu0 %v10688_v46  ;;  %9574 = vmatprep.mubr.bf16.mxu0 %v2984_v29  ;;  %v10715_v29 = vld [vmem:[%s13117_s4 + $0x1e8] sm:$0xff]  }
 0x2ec   : > { %9564 = vmatprep.subr.bf16.mxu0 %v10689_v51  ;;  %2527 = vmatprep.mubr.bf16.mxu1 %v10705_v54 }
 0x2ed   : > { %v2313_v57 = vpop.f32.mrb[108].mxu1 }
 0x2ee   : > { %v2315_v59 = vpop.f32.mrb[109].mxu1 }
 0x2ef   : > { %9565 = vmatpush3.bf16.msra.mxu0 %v10689_v51  ;;  %v2316_v60 = vpop.f32.mrb[110].mxu1  ;;  %v10743_v59 = vld [vmem:[%s13114_s1 + $0x3d0] ss:$8 sps:$4 sm:$0xff]  }
 0x2f0   : > { %9566 = vmatprep.subr.bf16.mxu0 %v10693_v56  ;;  %v2987_v62 = vpack.c.bf16 %v2316_v60, %v2313_v57  ;;  %v2318_v63 = vpop.f32.mrb[111].mxu1  ;;  %v10729_v57 = vld [vmem:[%s13117_s4 + $0x210] sm:$0xff]  }
 0x2f2   : > { %2528 = vmatmul.mubr.bf16.gmra.mrb[216].mxu1 %v10707_v58 }
 0x2f3   : > { %9567 = vmatpush3.bf16.msra.mxu0 %v10693_v56  ;;  %2535 = vmatprep.mubr.bf16.mxu1 %v10711_v61  ;;  %v10741_v56 = vld [vmem:[%s13114_s1 + $0x3d4] ss:$8 sps:$4 sm:$0xff]  }
 0x2f4   : > { %9568 = vmatprep.subr.bf16.mxu0 %v10694_v55 }
 0x2f5   : > { %v2321_v1 = vpop.f32.mrb[112].mxu1 }
 0x2f6   : > { %v2323_v3 = vpop.f32.mrb[113].mxu1 }
 0x2f7   : > { %9569 = vmatpush3.bf16.msra.mxu0 %v10694_v55  ;;  %v2324_v4 = vpop.f32.mrb[114].mxu1  ;;  %v10730_v55 = vld [vmem:[%s13117_s4 + $0x218] sm:$0xff]   ;;  %v10748_v3 = vld [vmem:[%s13114_s1 + $0x3e0] ss:$8 sps:$4 sm:$0xff]  }
 0x2f8   : > { %9570 = vmatprep.subr.bf16.mxu0 %v10698_v0  ;;  %v2988_v9 = vpack.c.bf16 %v2324_v4, %v2321_v1  ;;  %v2326_v10 = vpop.f32.mrb[115].mxu1  ;;  %v10734_v1 = vld [vmem:[%s13117_s4 + $0x220] sm:$0xff]  }
 0x2fa   : > { %2536 = vmatmul.mubr.bf16.gmra.mrb[220].mxu1 %v10713_v2 }
 0x2fb   : > { %9571 = vmatpush3.bf16.msra.mxu0 %v10698_v0  ;;  %2543 = vmatprep.mubr.bf16.mxu1 %v10716_v5  ;;  %v10746_v0 = vld [vmem:[%s13114_s1 + $0x3e4] ss:$8 sps:$4 sm:$0xff]  }
 0x2fc   : > { %9572 = vmatprep.subr.bf16.mxu0 %v10699_v7 }
 0x2fd   : > { %v11879_v13 = vpop.f32.mrb[116].mxu1 }
 0x2fe   : > { %v2331_v15 = vpop.f32.mrb[117].mxu1 }
 0x2ff   : > { %9573 = vmatpush3.bf16.msra.mxu0 %v10699_v7  ;;  %v11884_v12 = vpop.f32.mrb[118].mxu1  ;;  %v10735_v7 = vld [vmem:[%s13117_s4 + $0x228] sm:$0xff]  }
 0x300   : > { %9582 = vmatprep.subr.bf16.mxu0 %v10703_v11  ;;  %v2989_v24 = vpack.c.bf16 %v11884_v12, %v11879_v13  ;;  %v2334_v16 = vpop.f32.mrb[119].mxu1 }
 0x302   : > { %9575 = vmatmul.mubr.bf16.vlgmr.msra.gmra.mrb[32].mxu0 %v2985_v38  ;;  %2544 = vmatmul.mubr.bf16.gmra.mrb[224].mxu1 %v10718_v26  ;;  %v10736_v38 = vld [vmem:[%s13114_s1 + $0x3c4] ss:$8 sps:$4 sm:$0xff]   ;;  %v10753_v26 = vld [vmem:[%s13114_s1 + $0x3f0] ss:$8 sps:$4 sm:$0xff]  }
 0x303   : > { %9583 = vmatpush3.bf16.msra.mxu0 %v10703_v11  ;;  %9578 = vmatprep.mubr.bf16.mxu0 %v2986_v52  ;;  %v10725_v52 = vld [vmem:[%s13117_s4 + $0x208] sm:$0xff]   ;;  %v10739_v11 = vld [vmem:[%s13117_s4 + $0x230] sm:$0xff]  }
 0x304   : > { %9584 = vmatprep.subr.bf16.mxu0 %v10704_v14  ;;  %2551 = vmatprep.mubr.bf16.mxu1 %v10721_v18 }
 0x305   : > { %v2337_v21 = vpop.f32.mrb[120].mxu1 }
 0x306   : > { %v2339_v27 = vpop.f32.mrb[121].mxu1 }
 0x307   : > { %9585 = vmatpush3.bf16.msra.mxu0 %v10704_v14  ;;  %v2340_v28 = vpop.f32.mrb[122].mxu1  ;;  %v10758_v14 = vld [vmem:[%s13114_s1 + $0x404] ss:$8 sps:$4 sm:$0xff]  }
 0x308   : > { %9586 = vmatprep.subr.bf16.mxu0 %v10708_v19  ;;  %v2990_v32 = vpack.c.bf16 %v2340_v28, %v2337_v21  ;;  %v2342_v34 = vpop.f32.mrb[123].mxu1 }
 0x30a   : > { %9579 = vmatmul.mubr.bf16.gmra.mrb[36].mxu0 %v2987_v62  ;;  %2552 = vmatmul.mubr.bf16.gmra.mrb[228].mxu1 %v10723_v23  ;;  %v10756_v23 = vld [vmem:[%s13114_s1 + $0x400] ss:$8 sps:$4 sm:$0xff]  }
 0x30b   : > { %9587 = vmatpush3.bf16.msra.mxu0 %v10708_v19  ;;  %9598 = vmatprep.mubr.bf16.mxu0 %v2988_v9  ;;  %v10744_v19 = vld [vmem:[%s13117_s4 + $0x240] sm:$0xff]  }
 0x30c   : > { %9588 = vmatprep.subr.bf16.mxu0 %v10710_v30  ;;  %2559 = vmatprep.mubr.bf16.mxu1 %v10726_v35  ;;  %v10763_v35 = vld [vmem:[%s13114_s1 + $0x414] ss:$8 sps:$4 sm:$0xff]  }
 0x30d   : > { %v2345_v39 = vpop.f32.mrb[124].mxu1 }
 0x30e   : > { %v2347_v20 = vpop.f32.mrb[125].mxu1 }
 0x30f   : > { %9589 = vmatpush3.bf16.msra.mxu0 %v10710_v30  ;;  %v2348_v22 = vpop.f32.mrb[126].mxu1  ;;  %v10745_v30 = vld [vmem:[%s13117_s4 + $0x248] sm:$0xff]  }
 0x310   : > { %9590 = vmatprep.subr.bf16.mxu0 %v10714_v37  ;;  %v2991_v31 = vpack.c.bf16 %v2348_v22, %v2345_v39  ;;  %v2350_v40 = vpop.f32.mrb[127].mxu1 }
 0x311   : > { %v10768_v40 = vld [vmem:[%s13114_s1 + $0x424] ss:$8 sps:$4 sm:$0xff]  }
 0x312   : > { %2560 = vmatmul.mubr.bf16.gmra.mrb[232].mxu1 %v10728_v17  ;;  %v10761_v17 = vld [vmem:[%s13114_s1 + $0x410] ss:$8 sps:$4 sm:$0xff]  }
 0x313   : > { %9591 = vmatpush3.bf16.msra.mxu0 %v10714_v37  ;;  %2567 = vmatprep.mubr.bf16.mxu1 %v10731_v25  ;;  %v10749_v37 = vld [vmem:[%s13117_s4 + $0x250] sm:$0xff]   ;;  %v10750_v25 = vld [vmem:[%s13117_s4 + $0x258] sm:$0xff]  }
 0x314   : > { %9592 = vmatprep.subr.bf16.mxu0 %v10715_v29 }
 0x315   : > { %v2353_v42 = vpop.f32.mrb[128].mxu1 }
 0x316   : > { %v2355_v33 = vpop.f32.mrb[129].mxu1 }
 0x317   : > { %9593 = vmatpush3.bf16.msra.mxu0 %v10715_v29  ;;  %v2356_v36 = vpop.f32.mrb[130].mxu1 }
 0x318   : > { %9594 = vmatprep.subr.bf16.mxu0 %v10719_v41  ;;  %v2992_v45 = vpack.c.bf16 %v2356_v36, %v2353_v42  ;;  %v2358_v46 = vpop.f32.mrb[131].mxu1 }
 0x31a   : > { %2568 = vmatmul.mubr.bf16.gmra.mrb[236].mxu1 %v10733_v43  ;;  %v10766_v43 = vld [vmem:[%s13114_s1 + $0x420] ss:$8 sps:$4 sm:$0xff]  }
 0x31b   : > { %9595 = vmatpush3.bf16.msra.mxu0 %v10719_v41  ;;  %2575 = vmatprep.mubr.bf16.mxu1 %v10736_v38  ;;  %v10754_v41 = vld [vmem:[%s13117_s4 + $0x260] sm:$0xff]   ;;  %v10773_v38 = vld [vmem:[%s13114_s1 + $0x434] ss:$8 sps:$4 sm:$0xff]  }
 0x31c   : > { %9596 = vmatprep.subr.bf16.mxu0 %v10720_v44 }
 0x31d   : > { %v11936_v48 = vpop.f32.mrb[132].mxu1 }
 0x31e   : > { %v2363_v50 = vpop.f32.mrb[133].mxu1 }
 0x31f   : > { %9597 = vmatpush3.bf16.msra.mxu0 %v10720_v44  ;;  %v11941_v51 = vpop.f32.mrb[134].mxu1  ;;  %v10755_v44 = vld [vmem:[%s13117_s4 + $0x268] sm:$0xff]  }
 0x320   : > { %9606 = vmatprep.subr.bf16.mxu0 %v10724_v47  ;;  %v2993_v53 = vpack.c.bf16 %v11941_v51, %v11936_v48  ;;  %v2366_v54 = vpop.f32.mrb[135].mxu1 }
 0x322   : > { %9599 = vmatmul.mubr.bf16.vlgmr.msra.gmra.mrb[32].mxu0 %v2989_v24  ;;  %2576 = vmatmul.mubr.bf16.gmra.mrb[240].mxu1 %v10738_v49  ;;  %v10740_v24 = vld [vmem:[%s13117_s4 + $0x238] sm:$0xff]  }
 0x323   : > { %9607 = vmatpush3.bf16.msra.mxu0 %v10724_v47  ;;  %9602 = vmatprep.mubr.bf16.mxu0 %v2990_v32  ;;  %v10759_v47 = vld [vmem:[%s13117_s4 + $0x270] sm:$0xff]  }
 0x324   : > { %9608 = vmatprep.subr.bf16.mxu0 %v10725_v52  ;;  %2583 = vmatprep.mubr.bf16.mxu1 %v10741_v56  ;;  %v10771_v49 = vld [vmem:[%s13114_s1 + $0x430] ss:$8 sps:$4 sm:$0xff]  }
 0x325   : > { %v2369_v58 = vpop.f32.mrb[136].mxu1 }
 0x326   : > { %v2371_v60 = vpop.f32.mrb[137].mxu1 }
 0x327   : > { %9609 = vmatpush3.bf16.msra.mxu0 %v10725_v52  ;;  %v2372_v61 = vpop.f32.mrb[138].mxu1  ;;  %v10779_v52 = vld [vmem:[%s13114_s1 + $0x444] ss:$8 sps:$4 sm:$0xff]  }
 0x328   : > { %9610 = vmatprep.subr.bf16.mxu0 %v10729_v57  ;;  %v2994_v62 = vpack.c.bf16 %v2372_v61, %v2369_v58  ;;  %v2374_v63 = vpop.f32.mrb[139].mxu1 }
 0x32a   : > { %9603 = vmatmul.mubr.bf16.gmra.mrb[36].mxu0 %v2991_v31  ;;  %2584 = vmatmul.mubr.bf16.gmra.mrb[244].mxu1 %v10743_v59  ;;  %v10777_v59 = vld [vmem:[%s13114_s1 + $0x440] ss:$8 sps:$4 sm:$0xff]  }
 0x32b   : > { %9611 = vmatpush3.bf16.msra.mxu0 %v10729_v57  ;;  %9622 = vmatprep.mubr.bf16.mxu0 %v2992_v45  ;;  %v10764_v57 = vld [vmem:[%s13117_s4 + $0x280] sm:$0xff]  }
 0x32c   : > { %9612 = vmatprep.subr.bf16.mxu0 %v10730_v55  ;;  %2591 = vmatprep.mubr.bf16.mxu1 %v10746_v0  ;;  %v10784_v0 = vld [vmem:[%s13114_s1 + $0x454] ss:$8 sps:$4 sm:$0xff]  }
 0x32d   : > { %v2377_v2 = vpop.f32.mrb[140].mxu1 }
 0x32e   : > { %v2379_v4 = vpop.f32.mrb[141].mxu1 }
 0x32f   : > { %9613 = vmatpush3.bf16.msra.mxu0 %v10730_v55  ;;  %v2380_v5 = vpop.f32.mrb[142].mxu1  ;;  %v10765_v55 = vld [vmem:[%s13117_s4 + $0x288] sm:$0xff]   ;;  %v10782_v4 = vld [vmem:[%s13114_s1 + $0x450] ss:$8 sps:$4 sm:$0xff]  }
 0x330   : > { %9614 = vmatprep.subr.bf16.mxu0 %v10734_v1  ;;  %v2995_v9 = vpack.c.bf16 %v2380_v5, %v2377_v2  ;;  %v2382_v10 = vpop.f32.mrb[143].mxu1  ;;  %v10769_v2 = vld [vmem:[%s13117_s4 + $0x290] sm:$0xff]  }
 0x332   : > { %2592 = vmatmul.mubr.bf16.gmra.mrb[248].mxu1 %v10748_v3 }
 0x333   : > { %9615 = vmatpush3.bf16.msra.mxu0 %v10734_v1  ;;  %2599 = vmatprep.mubr.bf16.mxu1 %v10751_v6  ;;  %v10846_v1 = vld [vmem:[%s13119_s6 + $0x50] sm:$0xff]  }
 0x334   : > { %9616 = vmatprep.subr.bf16.mxu0 %v10735_v7  ;;  %10067 = vmatpush3.bf16.msra.mxu1 %v10846_v1 }
 0x335   : > { %v2385_v13 = vpop.f32.mrb[144].mxu1  ;;  %10068 = vmatprep.subr.bf16.mxu1 %v11106_v8 }
 0x336   : > { %v2387_v15 = vpop.f32.mrb[145].mxu1 }
 0x337   : > { %9617 = vmatpush3.bf16.msra.mxu0 %v10735_v7  ;;  %v2388_v12 = vpop.f32.mrb[146].mxu1  ;;  %v10770_v7 = vld [vmem:[%s13117_s4 + $0x298] sm:$0xff]   ;;  %v10787_v15 = vld [vmem:[%s13114_s1 + $0x460] ss:$8 sps:$4 sm:$0xff]  }
 0x338   : > { %9618 = vmatprep.subr.bf16.mxu0 %v10739_v11  ;;  %v2996_v16 = vpack.c.bf16 %v2388_v12, %v2385_v13  ;;  %v2390_v18 = vpop.f32.mrb[147].mxu1  ;;  %v10774_v13 = vld [vmem:[%s13117_s4 + $0x2a0] sm:$0xff]  }
 0x33a   : > { %2600 = vmatmul.mubr.bf16.gmra.mrb[252].mxu1 %v10753_v26 }
 0x33b   : > { %9619 = vmatpush3.bf16.msra.mxu0 %v10739_v11  ;;  %2607 = vmatprep.mubr.bf16.mxu1 %v10758_v14  ;;  %v10789_v11 = vld [vmem:[%s13114_s1 + $0x464] ss:$8 sps:$4 sm:$0xff]  }
 0x33c   : > { %9620 = vmatprep.subr.bf16.mxu0 %v10740_v24 }
 0x33d   : > { %v11993_v21 = vpop.f32.mrb[148].mxu1 }
 0x33e   : > { %v2395_v27 = vpop.f32.mrb[149].mxu1 }
 0x33f   : > { %9621 = vmatpush3.bf16.msra.mxu0 %v10740_v24  ;;  %v11998_v28 = vpop.f32.mrb[150].mxu1  ;;  %v10794_v24 = vld [vmem:[%s13114_s1 + $0x474] ss:$8 sps:$4 sm:$0xff]   ;;  %v10792_v27 = vld [vmem:[%s13114_s1 + $0x470] ss:$8 sps:$4 sm:$0xff]  }
 0x340   : > { %9630 = vmatprep.subr.bf16.mxu0 %v10744_v19  ;;  %v2997_v32 = vpack.c.bf16 %v11998_v28, %v11993_v21  ;;  %v2398_v34 = vpop.f32.mrb[151].mxu1  ;;  %v10780_v21 = vld [vmem:[%s13117_s4 + $0x2b0] sm:$0xff]  }
 0x341   : > { %v10781_v34 = vld [vmem:[%s13117_s4 + $0x2b8] sm:$0xff]  }
 0x342   : > { %9623 = vmatmul.mubr.bf16.vlgmr.msra.gmra.mrb[32].mxu0 %v2993_v53  ;;  %2608 = vmatmul.mubr.bf16.gmra.mrb[0].mxu1 %v10756_v23  ;;  %v10760_v53 = vld [vmem:[%s13117_s4 + $0x278] sm:$0xff]  }
 0x343   : > { %9631 = vmatpush3.bf16.msra.mxu0 %v10744_v19  ;;  %9626 = vmatprep.mubr.bf16.mxu0 %v2994_v62 }
 0x344   : > { %9632 = vmatprep.subr.bf16.mxu0 %v10745_v30  ;;  %2615 = vmatprep.mubr.bf16.mxu1 %v10763_v35 }
 0x345   : > { %v2401_v39 = vpop.f32.mrb[152].mxu1 }
 0x346   : > { %v2403_v20 = vpop.f32.mrb[153].mxu1 }
 0x347   : > { %9633 = vmatpush3.bf16.msra.mxu0 %v10745_v30  ;;  %v2404_v22 = vpop.f32.mrb[154].mxu1  ;;  %v10797_v20 = vld [vmem:[%s13114_s1 + $0x480] ss:$8 sps:$4 sm:$0xff]  }
 0x348   : > { %9634 = vmatprep.subr.bf16.mxu0 %v10749_v37  ;;  %v2998_v29 = vpack.c.bf16 %v2404_v22, %v2401_v39  ;;  %v2406_v31 = vpop.f32.mrb[155].mxu1  ;;  %v10785_v39 = vld [vmem:[%s13117_s4 + $0x2c0] sm:$0xff]  }
 0x34a   : > { %9627 = vmatmul.mubr.bf16.gmra.mrb[36].mxu0 %v2995_v9  ;;  %2616 = vmatmul.mubr.bf16.gmra.mrb[4].mxu1 %v10761_v17 }
 0x34b   : > { %9635 = vmatpush3.bf16.msra.mxu0 %v10749_v37  ;;  %9646 = vmatprep.mubr.bf16.mxu0 %v2996_v16  ;;  %v10775_v16 = vld [vmem:[%s13117_s4 + $0x2a8] sm:$0xff]  }
 0x34c   : > { %9636 = vmatprep.subr.bf16.mxu0 %v10750_v25  ;;  %2623 = vmatprep.mubr.bf16.mxu1 %v10768_v40 }
 0x34d   : > { %v2409_v42 = vpop.f32.mrb[156].mxu1 }
 0x34e   : > { %v2411_v33 = vpop.f32.mrb[157].mxu1 }
 0x34f   : > { %9637 = vmatpush3.bf16.msra.mxu0 %v10750_v25  ;;  %v2412_v36 = vpop.f32.mrb[158].mxu1  ;;  %v10802_v33 = vld [vmem:[%s13114_s1 + $0x490] ss:$8 sps:$4 sm:$0xff]  }
 0x350   : > { %9638 = vmatprep.subr.bf16.mxu0 %v10754_v41  ;;  %v2999_v45 = vpack.c.bf16 %v2412_v36, %v2409_v42  ;;  %v2414_v46 = vpop.f32.mrb[159].mxu1  ;;  %v10790_v42 = vld [vmem:[%s13117_s4 + $0x2d0] sm:$0xff]  }
 0x352   : > { %2624 = vmatmul.mubr.bf16.gmra.mrb[8].mxu1 %v10766_v43 }
 0x353   : > { %9639 = vmatpush3.bf16.msra.mxu0 %v10754_v41  ;;  %2631 = vmatprep.mubr.bf16.mxu1 %v10773_v38  ;;  %v10804_v41 = vld [vmem:[%s13114_s1 + $0x494] ss:$8 sps:$4 sm:$0xff]  }
 0x354   : > { %9640 = vmatprep.subr.bf16.mxu0 %v10755_v44 }
 0x355   : > { %v2417_v48 = vpop.f32.mrb[160].mxu1 }
 0x356   : > { %v2419_v50 = vpop.f32.mrb[161].mxu1 }
 0x357   : > { %9641 = vmatpush3.bf16.msra.mxu0 %v10755_v44  ;;  %v2420_v51 = vpop.f32.mrb[162].mxu1  ;;  %v10791_v44 = vld [vmem:[%s13117_s4 + $0x2d8] sm:$0xff]   ;;  %v10807_v50 = vld [vmem:[%s13114_s1 + $0x4a0] ss:$8 sps:$4 sm:$0xff]  }
 0x358   : > { %9642 = vmatprep.subr.bf16.mxu0 %v10759_v47  ;;  %v3000_v54 = vpack.c.bf16 %v2420_v51, %v2417_v48  ;;  %v2422_v56 = vpop.f32.mrb[163].mxu1  ;;  %v10795_v48 = vld [vmem:[%s13117_s4 + $0x2e0] sm:$0xff]  }
 0x35a   : > { %2632 = vmatmul.mubr.bf16.gmra.mrb[12].mxu1 %v10771_v49 }
 0x35b   : > { %9643 = vmatpush3.bf16.msra.mxu0 %v10759_v47  ;;  %2639 = vmatprep.mubr.bf16.mxu1 %v10779_v52  ;;  %v10809_v47 = vld [vmem:[%s13114_s1 + $0x4a4] ss:$8 sps:$4 sm:$0xff]  }
 0x35c   : > { %9644 = vmatprep.subr.bf16.mxu0 %v10760_v53 }
 0x35d   : > { %v12050_v58 = vpop.f32.mrb[164].mxu1 }
 0x35e   : > { %v2427_v60 = vpop.f32.mrb[165].mxu1 }
 0x35f   : > { %9645 = vmatpush3.bf16.msra.mxu0 %v10760_v53  ;;  %v12055_v61 = vpop.f32.mrb[166].mxu1  ;;  %v10814_v53 = vld [vmem:[%s13114_s1 + $0x4b4] ss:$8 sps:$4 sm:$0xff]   ;;  %v10812_v60 = vld [vmem:[%s13114_s1 + $0x4b0] ss:$8 sps:$4 sm:$0xff]  }
 0x360   : > { %9654 = vmatprep.subr.bf16.mxu0 %v10764_v57  ;;  %v3001_v62 = vpack.c.bf16 %v12055_v61, %v12050_v58  ;;  %v2430_v63 = vpop.f32.mrb[167].mxu1  ;;  %v10800_v58 = vld [vmem:[%s13117_s4 + $0x2f0] sm:$0xff]  }
 0x361   : > { %v10801_v63 = vld [vmem:[%s13117_s4 + $0x2f8] sm:$0xff]  }
 0x362   : > { %9647 = vmatmul.mubr.bf16.vlgmr.msra.gmra.mrb[32].mxu0 %v2997_v32  ;;  %2640 = vmatmul.mubr.bf16.gmra.mrb[16].mxu1 %v10777_v59  ;;  %v10799_v32 = vld [vmem:[%s13114_s1 + $0x484] ss:$8 sps:$4 sm:$0xff]  }
 0x363   : > { %9655 = vmatpush3.bf16.msra.mxu0 %v10764_v57  ;;  %9650 = vmatprep.mubr.bf16.mxu0 %v2998_v29  ;;  %v10786_v29 = vld [vmem:[%s13117_s4 + $0x2c8] sm:$0xff]  }
 0x364   : > { %9656 = vmatprep.subr.bf16.mxu0 %v10765_v55  ;;  %2647 = vmatprep.mubr.bf16.mxu1 %v10784_v0 }
 0x365   : > { %v2433_v3 = vpop.f32.mrb[168].mxu1 }
 0x366   : > { %v2435_v5 = vpop.f32.mrb[169].mxu1 }
 0x367   : > { %9657 = vmatpush3.bf16.msra.mxu0 %v10765_v55  ;;  %v2436_v6 = vpop.f32.mrb[170].mxu1 }
 0x368   : > { %9658 = vmatprep.subr.bf16.mxu0 %v10769_v2  ;;  %v3002_v9 = vpack.c.bf16 %v2436_v6, %v2433_v3  ;;  %v2438_v10 = vpop.f32.mrb[171].mxu1 }
 0x36a   : > { %9651 = vmatmul.mubr.bf16.gmra.mrb[36].mxu0 %v2999_v45  ;;  %2648 = vmatmul.mubr.bf16.gmra.mrb[20].mxu1 %v10782_v4  ;;  %v10817_v4 = vld [vmem:[%s13114_s1 + $0x4c0] ss:$8 sps:$4 sm:$0xff]  }
 0x36b   : > { %9659 = vmatpush3.bf16.msra.mxu0 %v10769_v2  ;;  %9670 = vmatprep.mubr.bf16.mxu0 %v3000_v54  ;;  %v10796_v54 = vld [vmem:[%s13117_s4 + $0x2e8] sm:$0xff]   ;;  %v10805_v2 = vld [vmem:[%s13117_s4 + $0x300] sm:$0xff]  }
 0x36c   : > { %9660 = vmatprep.subr.bf16.mxu0 %v10770_v7  ;;  %2655 = vmatprep.mubr.bf16.mxu1 %v10789_v11  ;;  %v10824_v11 = vld [vmem:[%s13114_s1 + $0x4d4] ss:$8 sps:$4 sm:$0xff]  }
 0x36d   : > { %v2441_v26 = vpop.f32.mrb[172].mxu1 }
 0x36e   : > { %v2443_v12 = vpop.f32.mrb[173].mxu1 }
 0x36f   : > { %9661 = vmatpush3.bf16.msra.mxu0 %v10770_v7  ;;  %v2444_v14 = vpop.f32.mrb[174].mxu1  ;;  %v10806_v7 = vld [vmem:[%s13117_s4 + $0x308] sm:$0xff]  }
 0x370   : > { %9662 = vmatprep.subr.bf16.mxu0 %v10774_v13  ;;  %v3003_v18 = vpack.c.bf16 %v2444_v14, %v2441_v26  ;;  %v2446_v19 = vpop.f32.mrb[175].mxu1 }
 0x371   : > { %v10829_v19 = vld [vmem:[%s13114_s1 + $0x4e4] ss:$8 sps:$4 sm:$0xff]  }
 0x372   : > { %2656 = vmatmul.mubr.bf16.gmra.mrb[24].mxu1 %v10787_v15  ;;  %v10822_v15 = vld [vmem:[%s13114_s1 + $0x4d0] ss:$8 sps:$4 sm:$0xff]  }
 0x373   : > { %9663 = vmatpush3.bf16.msra.mxu0 %v10774_v13  ;;  %2663 = vmatprep.mubr.bf16.mxu1 %v10794_v24  ;;  %v10810_v13 = vld [vmem:[%s13117_s4 + $0x310] sm:$0xff]   ;;  %v10811_v24 = vld [vmem:[%s13117_s4 + $0x318] sm:$0xff]  }
 0x374   : > { %9664 = vmatprep.subr.bf16.mxu0 %v10775_v16 }
 0x375   : > { %v2449_v23 = vpop.f32.mrb[176].mxu1 }
 0x376   : > { %v2451_v28 = vpop.f32.mrb[177].mxu1 }
 0x377   : > { %9665 = vmatpush3.bf16.msra.mxu0 %v10775_v16  ;;  %v2452_v30 = vpop.f32.mrb[178].mxu1 }
 0x378   : > { %9666 = vmatprep.subr.bf16.mxu0 %v10780_v21  ;;  %v3004_v35 = vpack.c.bf16 %v2452_v30, %v2449_v23  ;;  %v2454_v37 = vpop.f32.mrb[179].mxu1 }
 0x37a   : > { %2664 = vmatmul.mubr.bf16.gmra.mrb[28].mxu1 %v10792_v27  ;;  %v10827_v27 = vld [vmem:[%s13114_s1 + $0x4e0] ss:$8 sps:$4 sm:$0xff]  }
 0x37b   : > { %9667 = vmatpush3.bf16.msra.mxu0 %v10780_v21  ;;  %2671 = vmatprep.mubr.bf16.mxu1 %v10799_v32  ;;  %v10815_v21 = vld [vmem:[%s13117_s4 + $0x320] sm:$0xff]   ;;  %v10834_v32 = vld [vmem:[%s13114_s1 + $0x4f4] ss:$8 sps:$4 sm:$0xff]  }
 0x37c   : > { %9668 = vmatprep.subr.bf16.mxu0 %v10781_v34 }
 0x37d   : > { %v12111_v17 = vpop.f32.mrb[180].mxu1 }
 0x37e   : > { %v2459_v22 = vpop.f32.mrb[181].mxu1 }
 0x37f   : > { %9669 = vmatpush3.bf16.msra.mxu0 %v10781_v34  ;;  %v12116_v25 = vpop.f32.mrb[182].mxu1  ;;  %v10816_v34 = vld [vmem:[%s13117_s4 + $0x328] sm:$0xff]  }
 0x380   : > { %9678 = vmatprep.subr.bf16.mxu0 %v10785_v39  ;;  %v3005_v31 = vpack.c.bf16 %v12116_v25, %v12111_v17  ;;  %v2462_v40 = vpop.f32.mrb[183].mxu1 }
 0x382   : > { %9671 = vmatmul.mubr.bf16.vlgmr.msra.gmra.mrb[32].mxu0 %v3001_v62  ;;  %2672 = vmatmul.mubr.bf16.gmra.mrb[32].mxu1 %v10797_v20  ;;  %v10819_v62 = vld [vmem:[%s13114_s1 + $0x4c4] ss:$8 sps:$4 sm:$0xff]   ;;  %v10832_v20 = vld [vmem:[%s13114_s1 + $0x4f0] ss:$8 sps:$4 sm:$0xff]  }
 0x383   : > { %9679 = vmatpush3.bf16.msra.mxu0 %v10785_v39  ;;  %9674 = vmatprep.mubr.bf16.mxu0 %v3002_v9  ;;  %v10820_v39 = vld [vmem:[%s13117_s4 + $0x330] sm:$0xff]  }
 0x384   : > { %9680 = vmatprep.subr.bf16.mxu0 %v10786_v29  ;;  %2679 = vmatprep.mubr.bf16.mxu1 %v10804_v41 }
 0x385   : > { %v2465_v43 = vpop.f32.mrb[184].mxu1 }
 0x386   : > { %v2467_v36 = vpop.f32.mrb[185].mxu1 }
 0x387   : > { %9681 = vmatpush3.bf16.msra.mxu0 %v10786_v29  ;;  %v2468_v38 = vpop.f32.mrb[186].mxu1  ;;  %v10839_v29 = vld [vmem:[%s13114_s1 + $0x504] ss:$8 sps:$4 sm:$0xff]  }
 0x388   : > { %9682 = vmatprep.subr.bf16.mxu0 %v10790_v42  ;;  %v3006_v45 = vpack.c.bf16 %v2468_v38, %v2465_v43  ;;  %v2470_v46 = vpop.f32.mrb[187].mxu1 }
 0x38a   : > { %9675 = vmatmul.mubr.bf16.gmra.mrb[36].mxu0 %v3003_v18  ;;  %2680 = vmatmul.mubr.bf16.gmra.mrb[36].mxu1 %v10802_v33  ;;  %v10837_v33 = vld [vmem:[%s13114_s1 + $0x500] ss:$8 sps:$4 sm:$0xff]  }
 0x38b   : > { %9683 = vmatpush3.bf16.msra.mxu0 %v10790_v42  ;;  %9694 = vmatprep.mubr.bf16.mxu0 %v3004_v35  ;;  %v10825_v42 = vld [vmem:[%s13117_s4 + $0x340] sm:$0xff]  }
 0x38c   : > { %9684 = vmatprep.subr.bf16.mxu0 %v10791_v44  ;;  %2687 = vmatprep.mubr.bf16.mxu1 %v10809_v47  ;;  %v10844_v47 = vld [vmem:[%s13114_s1 + $0x514] ss:$8 sps:$4 sm:$0xff]  }
 0x38d   : > { %v2473_v49 = vpop.f32.mrb[188].mxu1 }
 0x38e   : > { %v2475_v51 = vpop.f32.mrb[189].mxu1 }
 0x38f   : > { %9685 = vmatpush3.bf16.msra.mxu0 %v10791_v44  ;;  %v2476_v52 = vpop.f32.mrb[190].mxu1  ;;  %v10826_v44 = vld [vmem:[%s13117_s4 + $0x348] sm:$0xff]  }
 0x390   : > { %9686 = vmatprep.subr.bf16.mxu0 %v10795_v48  ;;  %v3007_v56 = vpack.c.bf16 %v2476_v52, %v2473_v49  ;;  %v2478_v57 = vpop.f32.mrb[191].mxu1 }
 0x391   : > { %v10850_v57 = vld [vmem:[%s13114_s1 + $0x524] ss:$8 sps:$4 sm:$0xff]  }
 0x392   : > { %2688 = vmatmul.mubr.bf16.gmra.mrb[40].mxu1 %v10807_v50  ;;  %v10842_v50 = vld [vmem:[%s13114_s1 + $0x510] ss:$8 sps:$4 sm:$0xff]  }
 0x393   : > { %9687 = vmatpush3.bf16.msra.mxu0 %v10795_v48  ;;  %2695 = vmatprep.mubr.bf16.mxu1 %v10814_v53  ;;  %v10830_v48 = vld [vmem:[%s13117_s4 + $0x350] sm:$0xff]   ;;  %v10831_v53 = vld [vmem:[%s13117_s4 + $0x358] sm:$0xff]  }
 0x394   : > { %9688 = vmatprep.subr.bf16.mxu0 %v10796_v54 }
 0x395   : > { %v2481_v59 = vpop.f32.mrb[192].mxu1 }
 0x396   : > { %v2483_v61 = vpop.f32.mrb[193].mxu1 }
 0x397   : > { %9689 = vmatpush3.bf16.msra.mxu0 %v10796_v54  ;;  %v2484_v55 = vpop.f32.mrb[194].mxu1 }
 0x398   : > { %9690 = vmatprep.subr.bf16.mxu0 %v10800_v58  ;;  %v3008_v0 = vpack.c.bf16 %v2484_v55, %v2481_v59  ;;  %v2486_v1 = vpop.f32.mrb[195].mxu1 }
 0x39a   : > { %2696 = vmatmul.mubr.bf16.gmra.mrb[44].mxu1 %v10812_v60  ;;  %v10848_v60 = vld [vmem:[%s13114_s1 + $0x520] ss:$8 sps:$4 sm:$0xff]  }
 0x39b   : > { %9691 = vmatpush3.bf16.msra.mxu0 %v10800_v58  ;;  %2703 = vmatprep.mubr.bf16.mxu1 %v10819_v62  ;;  %v10835_v58 = vld [vmem:[%s13117_s4 + $0x360] sm:$0xff]   ;;  %v10855_v62 = vld [vmem:[%s13114_s1 + $0x534] ss:$8 sps:$4 sm:$0xff]  }
 0x39c   : > { %9692 = vmatprep.subr.bf16.mxu0 %v10801_v63 }
 0x39d   : > { %v12168_v3 = vpop.f32.mrb[196].mxu1 }
 0x39e   : > { %v2491_v5 = vpop.f32.mrb[197].mxu1 }
 0x39f   : > { %9693 = vmatpush3.bf16.msra.mxu0 %v10801_v63  ;;  %v12173_v6 = vpop.f32.mrb[198].mxu1  ;;  %v10913_v63 = vld [vmem:[%s13119_s6 + $0x58] sm:$0xff]  }
 0x3a0   : > { %9702 = vmatprep.subr.bf16.mxu0 %v10805_v2  ;;  %v3009_v9 = vpack.c.bf16 %v12173_v6, %v12168_v3  ;;  %v2494_v10 = vpop.f32.mrb[199].mxu1  ;;  %10069 = vmatpush3.bf16.msra.mxu1 %v10913_v63  ;;  %v10840_v3 = vld [vmem:[%s13117_s4 + $0x370] sm:$0xff]   ;;  %v10872_v63 = vld [vmem:[%s13117_s4 + $0x3d8] sm:$0xff]  }
 0x3a1   : > { %10070 = vmatprep.subr.bf16.mxu1 %v11106_v8  ;;  %v10853_v5 = vld [vmem:[%s13114_s1 + $0x530] ss:$8 sps:$4 sm:$0xff]  }
 0x3a2   : > { %9695 = vmatmul.mubr.bf16.vlgmr.msra.gmra.mrb[32].mxu0 %v3005_v31  ;;  %2704 = vmatmul.mubr.bf16.gmra.mrb[48].mxu1 %v10817_v4  ;;  %v10821_v31 = vld [vmem:[%s13117_s4 + $0x338] sm:$0xff]  }
 0x3a3   : > { %9703 = vmatpush3.bf16.msra.mxu0 %v10805_v2  ;;  %9698 = vmatprep.mubr.bf16.mxu0 %v3006_v45  ;;  %v10841_v10 = vld [vmem:[%s13117_s4 + $0x378] sm:$0xff]  }
 0x3a4   : > { %9704 = vmatprep.subr.bf16.mxu0 %v10806_v7  ;;  %2711 = vmatprep.mubr.bf16.mxu1 %v10824_v11 }
 0x3a5   : > { %v2497_v26 = vpop.f32.mrb[200].mxu1 }
 0x3a6   : > { %v2499_v12 = vpop.f32.mrb[201].mxu1 }
 0x3a7   : > { %9705 = vmatpush3.bf16.msra.mxu0 %v10806_v7  ;;  %v2500_v14 = vpop.f32.mrb[202].mxu1  ;;  %v10858_v12 = vld [vmem:[%s13114_s1 + $0x540] ss:$8 sps:$4 sm:$0xff]  }
 0x3a8   : > { %9706 = vmatprep.subr.bf16.mxu0 %v10810_v13  ;;  %v3010_v16 = vpack.c.bf16 %v2500_v14, %v2497_v26  ;;  %v2502_v18 = vpop.f32.mrb[203].mxu1  ;;  %v10845_v26 = vld [vmem:[%s13117_s4 + $0x380] sm:$0xff]  }
 0x3aa   : > { %9699 = vmatmul.mubr.bf16.gmra.mrb[36].mxu0 %v3007_v56  ;;  %2712 = vmatmul.mubr.bf16.gmra.mrb[52].mxu1 %v10822_v15 }
 0x3ab   : > { %9707 = vmatpush3.bf16.msra.mxu0 %v10810_v13  ;;  %9718 = vmatprep.mubr.bf16.mxu0 %v3008_v0  ;;  %v10836_v0 = vld [vmem:[%s13117_s4 + $0x368] sm:$0xff]  }
 0x3ac   : > { %9708 = vmatprep.subr.bf16.mxu0 %v10811_v24  ;;  %2719 = vmatprep.mubr.bf16.mxu1 %v10829_v19 }
 0x3ad   : > { %v2505_v23 = vpop.f32.mrb[204].mxu1 }
 0x3ae   : > { %v2507_v28 = vpop.f32.mrb[205].mxu1 }
 0x3af   : > { %9709 = vmatpush3.bf16.msra.mxu0 %v10811_v24  ;;  %v2508_v30 = vpop.f32.mrb[206].mxu1  ;;  %v10863_v28 = vld [vmem:[%s13114_s1 + $0x550] ss:$8 sps:$4 sm:$0xff]  }
 0x3b0   : > { %9710 = vmatprep.subr.bf16.mxu0 %v10815_v21  ;;  %v3011_v35 = vpack.c.bf16 %v2508_v30, %v2505_v23  ;;  %v2510_v37 = vpop.f32.mrb[207].mxu1  ;;  %v10851_v23 = vld [vmem:[%s13117_s4 + $0x390] sm:$0xff]  }
 0x3b2   : > { %2720 = vmatmul.mubr.bf16.gmra.mrb[56].mxu1 %v10827_v27 }
 0x3b3   : > { %9711 = vmatpush3.bf16.msra.mxu0 %v10815_v21  ;;  %2727 = vmatprep.mubr.bf16.mxu1 %v10834_v32  ;;  %v10865_v21 = vld [vmem:[%s13114_s1 + $0x554] ss:$8 sps:$4 sm:$0xff]  }
 0x3b4   : > { %9712 = vmatprep.subr.bf16.mxu0 %v10816_v34 }
 0x3b5   : > { %v2513_v17 = vpop.f32.mrb[208].mxu1 }
 0x3b6   : > { %v2515_v22 = vpop.f32.mrb[209].mxu1 }
 0x3b7   : > { %9713 = vmatpush3.bf16.msra.mxu0 %v10816_v34  ;;  %v2516_v25 = vpop.f32.mrb[210].mxu1  ;;  %v10852_v34 = vld [vmem:[%s13117_s4 + $0x398] sm:$0xff]   ;;  %v10868_v22 = vld [vmem:[%s13114_s1 + $0x560] ss:$8 sps:$4 sm:$0xff]  }
 0x3b8   : > { %9714 = vmatprep.subr.bf16.mxu0 %v10820_v39  ;;  %v3012_v40 = vpack.c.bf16 %v2516_v25, %v2513_v17  ;;  %v2518_v41 = vpop.f32.mrb[211].mxu1  ;;  %v10856_v17 = vld [vmem:[%s13117_s4 + $0x3a0] sm:$0xff]  }
 0x3ba   : > { %2728 = vmatmul.mubr.bf16.gmra.mrb[60].mxu1 %v10832_v20 }
 0x3bb   : > { %9715 = vmatpush3.bf16.msra.mxu0 %v10820_v39  ;;  %2735 = vmatprep.mubr.bf16.mxu1 %v10839_v29  ;;  %v10870_v39 = vld [vmem:[%s13114_s1 + $0x564] ss:$8 sps:$4 sm:$0xff]  }
 0x3bc   : > { %9716 = vmatprep.subr.bf16.mxu0 %v10821_v31 }
 0x3bd   : > { %v12225_v43 = vpop.f32.mrb[212].mxu1 }
 0x3be   : > { %v2523_v36 = vpop.f32.mrb[213].mxu1 }
 0x3bf   : > { %9717 = vmatpush3.bf16.msra.mxu0 %v10821_v31  ;;  %v12230_v38 = vpop.f32.mrb[214].mxu1  ;;  %v10875_v31 = vld [vmem:[%s13114_s1 + $0x574] ss:$8 sps:$4 sm:$0xff]   ;;  %v10873_v36 = vld [vmem:[%s13114_s1 + $0x570] ss:$8 sps:$4 sm:$0xff]  }
 0x3c0   : > { %9726 = vmatprep.subr.bf16.mxu0 %v10825_v42  ;;  %v3013_v45 = vpack.c.bf16 %v12230_v38, %v12225_v43  ;;  %v2526_v46 = vpop.f32.mrb[215].mxu1  ;;  %v10861_v43 = vld [vmem:[%s13117_s4 + $0x3b0] sm:$0xff]  }
 0x3c1   : > { %v10862_v46 = vld [vmem:[%s13117_s4 + $0x3b8] sm:$0xff]  }
 0x3c2   : > { %9719 = vmatmul.mubr.bf16.vlgmr.msra.gmra.mrb[32].mxu0 %v3009_v9  ;;  %2736 = vmatmul.mubr.bf16.gmra.mrb[64].mxu1 %v10837_v33  ;;  %v10860_v9 = vld [vmem:[%s13114_s1 + $0x544] ss:$8 sps:$4 sm:$0xff]  }
 0x3c3   : > { %9727 = vmatpush3.bf16.msra.mxu0 %v10825_v42  ;;  %9722 = vmatprep.mubr.bf16.mxu0 %v3010_v16  ;;  %v10847_v16 = vld [vmem:[%s13117_s4 + $0x388] sm:$0xff]  }
 0x3c4   : > { %9728 = vmatprep.subr.bf16.mxu0 %v10826_v44  ;;  %2743 = vmatprep.mubr.bf16.mxu1 %v10844_v47 }
 0x3c5   : > { %v12246_v49 = vpop.f32.mrb[216].mxu1 }
 0x3c6   : > { %v2531_v51 = vpop.f32.mrb[217].mxu1 }
 0x3c7   : > { %9729 = vmatpush3.bf16.msra.mxu0 %v10826_v44  ;;  %v2532_v52 = vpop.f32.mrb[218].mxu1  ;;  %v10878_v51 = vld [vmem:[%s13114_s1 + $0x580] ss:$8 sps:$4 sm:$0xff]  }
 0x3c8   : > { %9730 = vmatprep.subr.bf16.mxu0 %v10830_v48  ;;  %v3014_v54 = vpack.c.bf16 %v2532_v52, %v12246_v49  ;;  %v2534_v56 = vpop.f32.mrb[219].mxu1  ;;  %v10866_v49 = vld [vmem:[%s13117_s4 + $0x3c0] sm:$0xff]  }
 0x3ca   : > { %9723 = vmatmul.mubr.bf16.gmra.mrb[36].mxu0 %v3011_v35  ;;  %2744 = vmatmul.mubr.bf16.gmra.mrb[68].mxu1 %v10842_v50 }
 0x3cb   : > { %9731 = vmatpush3.bf16.msra.mxu0 %v10830_v48  ;;  %9742 = vmatprep.mubr.bf16.mxu0 %v3012_v40  ;;  %v10857_v40 = vld [vmem:[%s13117_s4 + $0x3a8] sm:$0xff]  }
 0x3cc   : > { %9732 = vmatprep.subr.bf16.mxu0 %v10831_v53  ;;  %2751 = vmatprep.mubr.bf16.mxu1 %v10850_v57 }
 0x3cd   : > { %v2537_v59 = vpop.f32.mrb[220].mxu1 }
 0x3ce   : > { %v2539_v61 = vpop.f32.mrb[221].mxu1 }
 0x3cf   : > { %9733 = vmatpush3.bf16.msra.mxu0 %v10831_v53  ;;  %v2540_v55 = vpop.f32.mrb[222].mxu1  ;;  %v10883_v61 = vld [vmem:[%s13114_s1 + $0x590] ss:$8 sps:$4 sm:$0xff]  }
 0x3d0   : > { %9734 = vmatprep.subr.bf16.mxu0 %v10835_v58  ;;  %v3015_v1 = vpack.c.bf16 %v2540_v55, %v2537_v59  ;;  %v2542_v2 = vpop.f32.mrb[223].mxu1  ;;  %v10871_v59 = vld [vmem:[%s13117_s4 + $0x3d0] sm:$0xff]  }
 0x3d1   : > { %v10890_v2 = vld [vmem:[%s13114_s1 + $0x5a4] ss:$8 sps:$4 sm:$0xff]  }
 0x3d2   : > { %2752 = vmatmul.mubr.bf16.gmra.mrb[72].mxu1 %v10848_v60 }
 0x3d3   : > { %9735 = vmatpush3.bf16.msra.mxu0 %v10835_v58  ;;  %2759 = vmatprep.mubr.bf16.mxu1 %v10855_v62  ;;  %v10885_v58 = vld [vmem:[%s13114_s1 + $0x594] ss:$8 sps:$4 sm:$0xff]  }
 0x3d4   : > { %9736 = vmatprep.subr.bf16.mxu0 %v10836_v0 }
 0x3d5   : > { %v2545_v4 = vpop.f32.mrb[224].mxu1 }
 0x3d6   : > { %v2547_v6 = vpop.f32.mrb[225].mxu1 }
 0x3d7   : > { %9737 = vmatpush3.bf16.msra.mxu0 %v10836_v0  ;;  %v2548_v7 = vpop.f32.mrb[226].mxu1 }
 0x3d8   : > { %9738 = vmatprep.subr.bf16.mxu0 %v10840_v3  ;;  %v3016_v11 = vpack.c.bf16 %v2548_v7, %v2545_v4  ;;  %v2550_v13 = vpop.f32.mrb[227].mxu1 }
 0x3da   : > { %2760 = vmatmul.mubr.bf16.gmra.mrb[76].mxu1 %v10853_v5  ;;  %v10888_v5 = vld [vmem:[%s13114_s1 + $0x5a0] ss:$8 sps:$4 sm:$0xff]  }
 0x3db   : > { %9739 = vmatpush3.bf16.msra.mxu0 %v10840_v3  ;;  %2767 = vmatprep.mubr.bf16.mxu1 %v10860_v9  ;;  %v10876_v3 = vld [vmem:[%s13117_s4 + $0x3e0] sm:$0xff]   ;;  %v10895_v9 = vld [vmem:[%s13114_s1 + $0x5b4] ss:$8 sps:$4 sm:$0xff]  }
 0x3dc   : > { %9740 = vmatprep.subr.bf16.mxu0 %v10841_v10 }
 0x3dd   : > { %v12289_v15 = vpop.f32.mrb[228].mxu1 }
 0x3de   : > { %v2555_v14 = vpop.f32.mrb[229].mxu1 }
 0x3df   : > { %9741 = vmatpush3.bf16.msra.mxu0 %v10841_v10  ;;  %v12294_v24 = vpop.f32.mrb[230].mxu1  ;;  %v10877_v10 = vld [vmem:[%s13117_s4 + $0x3e8] sm:$0xff]  }
 0x3e0   : > { %9750 = vmatprep.subr.bf16.mxu0 %v10845_v26  ;;  %v3017_v18 = vpack.c.bf16 %v12294_v24, %v12289_v15  ;;  %v2558_v19 = vpop.f32.mrb[231].mxu1 }
 0x3e2   : > { %9743 = vmatmul.mubr.bf16.vlgmr.msra.gmra.mrb[32].mxu0 %v3013_v45  ;;  %2768 = vmatmul.mubr.bf16.gmra.mrb[80].mxu1 %v10858_v12  ;;  %v10880_v45 = vld [vmem:[%s13114_s1 + $0x584] ss:$8 sps:$4 sm:$0xff]   ;;  %v10893_v12 = vld [vmem:[%s13114_s1 + $0x5b0] ss:$8 sps:$4 sm:$0xff]  }
 0x3e3   : > { %9751 = vmatpush3.bf16.msra.mxu0 %v10845_v26  ;;  %9746 = vmatprep.mubr.bf16.mxu0 %v3014_v54  ;;  %v10867_v54 = vld [vmem:[%s13117_s4 + $0x3c8] sm:$0xff]   ;;  %v10881_v26 = vld [vmem:[%s13117_s4 + $0x3f0] sm:$0xff]  }
 0x3e4   : > { %9752 = vmatprep.subr.bf16.mxu0 %v10847_v16  ;;  %2775 = vmatprep.mubr.bf16.mxu1 %v10865_v21 }
 0x3e5   : > { %v2561_v27 = vpop.f32.mrb[232].mxu1 }
 0x3e6   : > { %v2563_v30 = vpop.f32.mrb[233].mxu1 }
 0x3e7   : > { %9753 = vmatpush3.bf16.msra.mxu0 %v10847_v16  ;;  %v2564_v32 = vpop.f32.mrb[234].mxu1  ;;  %v10900_v16 = vld [vmem:[%s13114_s1 + $0x5c4] ss:$8 sps:$4 sm:$0xff]  }
 0x3e8   : > { %9754 = vmatprep.subr.bf16.mxu0 %v10851_v23  ;;  %v3018_v35 = vpack.c.bf16 %v2564_v32, %v2561_v27  ;;  %v2566_v37 = vpop.f32.mrb[235].mxu1 }
 0x3ea   : > { %9747 = vmatmul.mubr.bf16.gmra.mrb[36].mxu0 %v3015_v1  ;;  %2776 = vmatmul.mubr.bf16.gmra.mrb[84].mxu1 %v10863_v28  ;;  %v10898_v28 = vld [vmem:[%s13114_s1 + $0x5c0] ss:$8 sps:$4 sm:$0xff]  }
 0x3eb   : > { %9755 = vmatpush3.bf16.msra.mxu0 %v10851_v23  ;;  %9766 = vmatprep.mubr.bf16.mxu0 %v3016_v11  ;;  %v10886_v23 = vld [vmem:[%s13117_s4 + $0x400] sm:$0xff]  }
 0x3ec   : > { %9756 = vmatprep.subr.bf16.mxu0 %v10852_v34  ;;  %2783 = vmatprep.mubr.bf16.mxu1 %v10870_v39  ;;  %v10905_v39 = vld [vmem:[%s13114_s1 + $0x5d4] ss:$8 sps:$4 sm:$0xff]  }
 0x3ed   : > { %v2569_v20 = vpop.f32.mrb[236].mxu1 }
 0x3ee   : > { %v2571_v25 = vpop.f32.mrb[237].mxu1 }
 0x3ef   : > { %9757 = vmatpush3.bf16.msra.mxu0 %v10852_v34  ;;  %v2572_v29 = vpop.f32.mrb[238].mxu1  ;;  %v10887_v34 = vld [vmem:[%s13117_s4 + $0x408] sm:$0xff]  }
 0x3f0   : > { %9758 = vmatprep.subr.bf16.mxu0 %v10856_v17  ;;  %v3019_v41 = vpack.c.bf16 %v2572_v29, %v2569_v20  ;;  %v2574_v42 = vpop.f32.mrb[239].mxu1 }
 0x3f1   : > { %v10910_v42 = vld [vmem:[%s13114_s1 + $0x5e4] ss:$8 sps:$4 sm:$0xff]  }
 0x3f2   : > { %2784 = vmatmul.mubr.bf16.gmra.mrb[88].mxu1 %v10868_v22  ;;  %v10903_v22 = vld [vmem:[%s13114_s1 + $0x5d0] ss:$8 sps:$4 sm:$0xff]  }
 0x3f3   : > { %9759 = vmatpush3.bf16.msra.mxu0 %v10856_v17  ;;  %2791 = vmatprep.mubr.bf16.mxu1 %v10875_v31  ;;  %v10891_v17 = vld [vmem:[%s13117_s4 + $0x410] sm:$0xff]   ;;  %v10892_v31 = vld [vmem:[%s13117_s4 + $0x418] sm:$0xff]  }
 0x3f4   : > { %9760 = vmatprep.subr.bf16.mxu0 %v10857_v40 }
 0x3f5   : > { %v2577_v33 = vpop.f32.mrb[240].mxu1 }
 0x3f6   : > { %v2579_v38 = vpop.f32.mrb[241].mxu1 }
 0x3f7   : > { %9761 = vmatpush3.bf16.msra.mxu0 %v10857_v40  ;;  %v2580_v44 = vpop.f32.mrb[242].mxu1 }
 0x3f8   : > { %9762 = vmatprep.subr.bf16.mxu0 %v10861_v43  ;;  %v3020_v47 = vpack.c.bf16 %v2580_v44, %v2577_v33  ;;  %v2582_v48 = vpop.f32.mrb[243].mxu1 }
 0x3fa   : > { %2792 = vmatmul.mubr.bf16.gmra.mrb[92].mxu1 %v10873_v36  ;;  %v10908_v36 = vld [vmem:[%s13114_s1 + $0x5e0] ss:$8 sps:$4 sm:$0xff]  }
 0x3fb   : > { %9763 = vmatpush3.bf16.msra.mxu0 %v10861_v43  ;;  %2799 = vmatprep.mubr.bf16.mxu1 %v10880_v45  ;;  %v10896_v43 = vld [vmem:[%s13117_s4 + $0x420] sm:$0xff]   ;;  %v10916_v45 = vld [vmem:[%s13114_s1 + $0x5f4] ss:$8 sps:$4 sm:$0xff]  }
 0x3fc   : > { %9764 = vmatprep.subr.bf16.mxu0 %v10862_v46 }
 0x3fd   : > { %v12346_v50 = vpop.f32.mrb[244].mxu1 }
 0x3fe   : > { %v2587_v52 = vpop.f32.mrb[245].mxu1 }
 0x3ff   : > { %9765 = vmatpush3.bf16.msra.mxu0 %v10862_v46  ;;  %v12351_v53 = vpop.f32.mrb[246].mxu1  ;;  %v10897_v46 = vld [vmem:[%s13117_s4 + $0x428] sm:$0xff]  }
 0x400   : > { %9774 = vmatprep.subr.bf16.mxu0 %v10866_v49  ;;  %v3021_v56 = vpack.c.bf16 %v12351_v53, %v12346_v50  ;;  %v2590_v57 = vpop.f32.mrb[247].mxu1 }
 0x402   : > { %9767 = vmatmul.mubr.bf16.vlgmr.msra.gmra.mrb[32].mxu0 %v3017_v18  ;;  %2800 = vmatmul.mubr.bf16.gmra.mrb[96].mxu1 %v10878_v51  ;;  %v10882_v18 = vld [vmem:[%s13117_s4 + $0x3f8] sm:$0xff]  }
 0x403   : > { %9775 = vmatpush3.bf16.msra.mxu0 %v10866_v49  ;;  %9770 = vmatprep.mubr.bf16.mxu0 %v3018_v35  ;;  %v10901_v49 = vld [vmem:[%s13117_s4 + $0x430] sm:$0xff]  }
 0x404   : > { %9776 = vmatprep.subr.bf16.mxu0 %v10867_v54  ;;  %2807 = vmatprep.mubr.bf16.mxu1 %v10885_v58  ;;  %v10914_v51 = vld [vmem:[%s13114_s1 + $0x5f0] ss:$8 sps:$4 sm:$0xff]  }
 0x405   : > { %v2593_v60 = vpop.f32.mrb[248].mxu1 }
 0x406   : > { %v2595_v55 = vpop.f32.mrb[249].mxu1 }
 0x407   : > { %9777 = vmatpush3.bf16.msra.mxu0 %v10867_v54  ;;  %v2596_v62 = vpop.f32.mrb[250].mxu1  ;;  %v10921_v54 = vld [vmem:[%s13114_s1 + $0x604] ss:$8 sps:$4 sm:$0xff]   ;;  %v10919_v55 = vld [vmem:[%s13114_s1 + $0x600] ss:$8 sps:$4 sm:$0xff]  }
 0x408   : > { %9778 = vmatprep.subr.bf16.mxu0 %v10871_v59  ;;  %v3022_v0 = vpack.c.bf16 %v2596_v62, %v2593_v60  ;;  %v2598_v1 = vpop.f32.mrb[251].mxu1  ;;  %v10906_v60 = vld [vmem:[%s13117_s4 + $0x440] sm:$0xff]  }
 0x40a   : > { %9771 = vmatmul.mubr.bf16.gmra.mrb[36].mxu0 %v3019_v41  ;;  %2808 = vmatmul.mubr.bf16.gmra.mrb[100].mxu1 %v10883_v61 }
 0x40b   : > { %9779 = vmatpush3.bf16.msra.mxu0 %v10871_v59  ;;  %9790 = vmatprep.mubr.bf16.mxu0 %v3020_v47  ;;  %v10980_v59 = vld [vmem:[%s13119_s6 + $0x60] sm:$0xff]  }
 0x40c   : > { %9780 = vmatprep.subr.bf16.mxu0 %v10872_v63  ;;  %2815 = vmatprep.mubr.bf16.mxu1 %v10890_v2 }
 0x40d   : > { %v2601_v4 = vpop.f32.mrb[252].mxu1  ;;  %10071 = vmatpush3.bf16.msra.mxu1 %v10980_v59 }
 0x40e   : > { %v2603_v6 = vpop.f32.mrb[253].mxu1  ;;  %10072 = vmatprep.subr.bf16.mxu1 %v11106_v8 }
 0x40f   : > { %9781 = vmatpush3.bf16.msra.mxu0 %v10872_v63  ;;  %v2604_v7 = vpop.f32.mrb[254].mxu1  ;;  %v10924_v6 = vld [vmem:[%s13114_s1 + $0x610] ss:$8 sps:$4 sm:$0xff]  }
 0x410   : > { %9782 = vmatprep.subr.bf16.mxu0 %v10876_v3  ;;  %v3023_v11 = vpack.c.bf16 %v2604_v7, %v2601_v4  ;;  %v2606_v13 = vpop.f32.mrb[255].mxu1  ;;  %v10911_v4 = vld [vmem:[%s13117_s4 + $0x450] sm:$0xff]  }
 0x412   : > { %2816 = vmatmul.mubr.bf16.gmra.mrb[104].mxu1 %v10888_v5 }
 0x413   : > { %9783 = vmatpush3.bf16.msra.mxu0 %v10876_v3  ;;  %2823 = vmatprep.mubr.bf16.mxu1 %v10895_v9  ;;  %v10926_v3 = vld [vmem:[%s13114_s1 + $0x614] ss:$8 sps:$4 sm:$0xff]  }
 0x414   : > { %9784 = vmatprep.subr.bf16.mxu0 %v10877_v10 }
 0x415   : > { %v2609_v15 = vpop.f32.mrb[0].mxu1 }
 0x416   : > { %v2611_v14 = vpop.f32.mrb[1].mxu1 }
 0x417   : > { %9785 = vmatpush3.bf16.msra.mxu0 %v10877_v10  ;;  %v2612_v24 = vpop.f32.mrb[2].mxu1  ;;  %v10912_v10 = vld [vmem:[%s13117_s4 + $0x458] sm:$0xff]   ;;  %v10929_v14 = vld [vmem:[%s13114_s1 + $0x620] ss:$8 sps:$4 sm:$0xff]  }
 0x418   : > { %9786 = vmatprep.subr.bf16.mxu0 %v10881_v26  ;;  %v3024_v19 = vpack.c.bf16 %v2612_v24, %v2609_v15  ;;  %v2614_v21 = vpop.f32.mrb[3].mxu1  ;;  %v10917_v15 = vld [vmem:[%s13117_s4 + $0x460] sm:$0xff]  }
 0x41a   : > { %2824 = vmatmul.mubr.bf16.gmra.mrb[108].mxu1 %v10893_v12 }
 0x41b   : > { %9787 = vmatpush3.bf16.msra.mxu0 %v10881_v26  ;;  %2831 = vmatprep.mubr.bf16.mxu1 %v10900_v16  ;;  %v10931_v26 = vld [vmem:[%s13114_s1 + $0x624] ss:$8 sps:$4 sm:$0xff]  }
 0x41c   : > { %9788 = vmatprep.subr.bf16.mxu0 %v10882_v18 }
 0x41d   : > { %v12403_v27 = vpop.f32.mrb[4].mxu1 }
 0x41e   : > { %v2619_v30 = vpop.f32.mrb[5].mxu1 }
 0x41f   : > { %9789 = vmatpush3.bf16.msra.mxu0 %v10882_v18  ;;  %v12408_v32 = vpop.f32.mrb[6].mxu1  ;;  %v10936_v18 = vld [vmem:[%s13114_s1 + $0x634] ss:$8 sps:$4 sm:$0xff]   ;;  %v10934_v30 = vld [vmem:[%s13114_s1 + $0x630] ss:$8 sps:$4 sm:$0xff]  }
 0x420   : > { %9798 = vmatprep.subr.bf16.mxu0 %v10886_v23  ;;  %v3025_v35 = vpack.c.bf16 %v12408_v32, %v12403_v27  ;;  %v2622_v37 = vpop.f32.mrb[7].mxu1  ;;  %v10922_v27 = vld [vmem:[%s13117_s4 + $0x470] sm:$0xff]  }
 0x421   : > { %v10923_v37 = vld [vmem:[%s13117_s4 + $0x478] sm:$0xff]  }
 0x422   : > { %9791 = vmatmul.mubr.bf16.vlgmr.msra.gmra.mrb[32].mxu0 %v3021_v56  ;;  %2832 = vmatmul.mubr.bf16.gmra.mrb[112].mxu1 %v10898_v28  ;;  %v10902_v56 = vld [vmem:[%s13117_s4 + $0x438] sm:$0xff]  }
 0x423   : > { %9799 = vmatpush3.bf16.msra.mxu0 %v10886_v23  ;;  %9794 = vmatprep.mubr.bf16.mxu0 %v3022_v0  ;;  %v10907_v0 = vld [vmem:[%s13117_s4 + $0x448] sm:$0xff]  }
 0x424   : > { %9800 = vmatprep.subr.bf16.mxu0 %v10887_v34  ;;  %2839 = vmatprep.mubr.bf16.mxu1 %v10905_v39 }
 0x425   : > { %v12424_v20 = vpop.f32.mrb[8].mxu1 }
 0x426   : > { %v2627_v25 = vpop.f32.mrb[9].mxu1 }
 0x427   : > { %9801 = vmatpush3.bf16.msra.mxu0 %v10887_v34  ;;  %v2628_v29 = vpop.f32.mrb[10].mxu1  ;;  %v10939_v25 = vld [vmem:[%s13114_s1 + $0x640] ss:$8 sps:$4 sm:$0xff]  }
 0x428   : > { %9802 = vmatprep.subr.bf16.mxu0 %v10891_v17  ;;  %v3026_v40 = vpack.c.bf16 %v2628_v29, %v12424_v20  ;;  %v2630_v41 = vpop.f32.mrb[11].mxu1  ;;  %v10927_v20 = vld [vmem:[%s13117_s4 + $0x480] sm:$0xff]  }
 0x42a   : > { %9795 = vmatmul.mubr.bf16.gmra.mrb[36].mxu0 %v3023_v11  ;;  %2840 = vmatmul.mubr.bf16.gmra.mrb[116].mxu1 %v10903_v22 }
 0x42b   : > { %9803 = vmatpush3.bf16.msra.mxu0 %v10891_v17  ;;  %9814 = vmatprep.mubr.bf16.mxu0 %v3024_v19  ;;  %v10918_v19 = vld [vmem:[%s13117_s4 + $0x468] sm:$0xff]  }
 0x42c   : > { %9804 = vmatprep.subr.bf16.mxu0 %v10892_v31  ;;  %2847 = vmatprep.mubr.bf16.mxu1 %v10910_v42 }
 0x42d   : > { %v2633_v33 = vpop.f32.mrb[12].mxu1 }
 0x42e   : > { %v2635_v38 = vpop.f32.mrb[13].mxu1 }
 0x42f   : > { %9805 = vmatpush3.bf16.msra.mxu0 %v10892_v31  ;;  %v2636_v44 = vpop.f32.mrb[14].mxu1  ;;  %v10944_v38 = vld [vmem:[%s13114_s1 + $0x650] ss:$8 sps:$4 sm:$0xff]  }
 0x430   : > { %9806 = vmatprep.subr.bf16.mxu0 %v10896_v43  ;;  %v3027_v47 = vpack.c.bf16 %v2636_v44, %v2633_v33  ;;  %v2638_v48 = vpop.f32.mrb[15].mxu1  ;;  %v10932_v33 = vld [vmem:[%s13117_s4 + $0x490] sm:$0xff]  }
 0x432   : > { %2848 = vmatmul.mubr.bf16.gmra.mrb[120].mxu1 %v10908_v36 }
 0x433   : > { %9807 = vmatpush3.bf16.msra.mxu0 %v10896_v43  ;;  %2855 = vmatprep.mubr.bf16.mxu1 %v10916_v45  ;;  %v10946_v43 = vld [vmem:[%s13114_s1 + $0x654] ss:$8 sps:$4 sm:$0xff]  }
 0x434   : > { %9808 = vmatprep.subr.bf16.mxu0 %v10897_v46 }
 0x435   : > { %v2641_v50 = vpop.f32.mrb[16].mxu1 }
 0x436   : > { %v2643_v52 = vpop.f32.mrb[17].mxu1 }
 0x437   : > { %9809 = vmatpush3.bf16.msra.mxu0 %v10897_v46  ;;  %v2644_v53 = vpop.f32.mrb[18].mxu1  ;;  %v10933_v46 = vld [vmem:[%s13117_s4 + $0x498] sm:$0xff]   ;;  %v10949_v52 = vld [vmem:[%s13114_s1 + $0x660] ss:$8 sps:$4 sm:$0xff]  }
 0x438   : > { %9810 = vmatprep.subr.bf16.mxu0 %v10901_v49  ;;  %v3028_v57 = vpack.c.bf16 %v2644_v53, %v2641_v50  ;;  %v2646_v58 = vpop.f32.mrb[19].mxu1  ;;  %v10937_v50 = vld [vmem:[%s13117_s4 + $0x4a0] sm:$0xff]  }
 0x43a   : > { %2856 = vmatmul.mubr.bf16.gmra.mrb[124].mxu1 %v10914_v51 }
 0x43b   : > { %9811 = vmatpush3.bf16.msra.mxu0 %v10901_v49  ;;  %2863 = vmatprep.mubr.bf16.mxu1 %v10921_v54  ;;  %v10951_v49 = vld [vmem:[%s13114_s1 + $0x664] ss:$8 sps:$4 sm:$0xff]  }
 0x43c   : > { %9812 = vmatprep.subr.bf16.mxu0 %v10902_v56 }
 0x43d   : > { %v12466_v61 = vpop.f32.mrb[20].mxu1 }
 0x43e   : > { %v2651_v62 = vpop.f32.mrb[21].mxu1 }
 0x43f   : > { %9813 = vmatpush3.bf16.msra.mxu0 %v10902_v56  ;;  %v12472_v63 = vpop.f32.mrb[22].mxu1  ;;  %v10956_v56 = vld [vmem:[%s13114_s1 + $0x674] ss:$8 sps:$4 sm:$0xff]  }
 0x440   : > { %9822 = vmatprep.subr.bf16.mxu0 %v10906_v60  ;;  %v3029_v1 = vpack.c.bf16 %v12472_v63, %v12466_v61  ;;  %v2654_v2 = vpop.f32.mrb[23].mxu1 }
 0x442   : > { %9815 = vmatmul.mubr.bf16.vlgmr.msra.gmra.mrb[32].mxu0 %v3025_v35  ;;  %2864 = vmatmul.mubr.bf16.gmra.mrb[128].mxu1 %v10919_v55  ;;  %v10941_v35 = vld [vmem:[%s13114_s1 + $0x644] ss:$8 sps:$4 sm:$0xff]   ;;  %v10954_v55 = vld [vmem:[%s13114_s1 + $0x670] ss:$8 sps:$4 sm:$0xff]  }
 0x443   : > { %9823 = vmatpush3.bf16.msra.mxu0 %v10906_v60  ;;  %9818 = vmatprep.mubr.bf16.mxu0 %v3026_v40  ;;  %v10928_v40 = vld [vmem:[%s13117_s4 + $0x488] sm:$0xff]   ;;  %v10942_v60 = vld [vmem:[%s13117_s4 + $0x4b0] sm:$0xff]  }
 0x444   : > { %9824 = vmatprep.subr.bf16.mxu0 %v10907_v0  ;;  %2871 = vmatprep.mubr.bf16.mxu1 %v10926_v3 }
 0x445   : > { %v2657_v5 = vpop.f32.mrb[24].mxu1 }
 0x446   : > { %v2659_v7 = vpop.f32.mrb[25].mxu1 }
 0x447   : > { %9825 = vmatpush3.bf16.msra.mxu0 %v10907_v0  ;;  %v2660_v9 = vpop.f32.mrb[26].mxu1  ;;  %v10961_v0 = vld [vmem:[%s13114_s1 + $0x684] ss:$8 sps:$4 sm:$0xff]  }
 0x448   : > { %9826 = vmatprep.subr.bf16.mxu0 %v10911_v4  ;;  %v3030_v11 = vpack.c.bf16 %v2660_v9, %v2657_v5  ;;  %v2662_v13 = vpop.f32.mrb[27].mxu1 }
 0x44a   : > { %9819 = vmatmul.mubr.bf16.gmra.mrb[36].mxu0 %v3027_v47  ;;  %2872 = vmatmul.mubr.bf16.gmra.mrb[132].mxu1 %v10924_v6  ;;  %v10959_v6 = vld [vmem:[%s13114_s1 + $0x680] ss:$8 sps:$4 sm:$0xff]  }
 0x44b   : > { %9827 = vmatpush3.bf16.msra.mxu0 %v10911_v4  ;;  %9838 = vmatprep.mubr.bf16.mxu0 %v3028_v57  ;;  %v10938_v57 = vld [vmem:[%s13117_s4 + $0x4a8] sm:$0xff]   ;;  %v10947_v4 = vld [vmem:[%s13117_s4 + $0x4c0] sm:$0xff]  }
 0x44c   : > { %9828 = vmatprep.subr.bf16.mxu0 %v10912_v10  ;;  %2879 = vmatprep.mubr.bf16.mxu1 %v10931_v26  ;;  %v10966_v26 = vld [vmem:[%s13114_s1 + $0x694] ss:$8 sps:$4 sm:$0xff]  }
 0x44d   : > { %v2665_v12 = vpop.f32.mrb[28].mxu1 }
 0x44e   : > { %v2667_v24 = vpop.f32.mrb[29].mxu1 }
 0x44f   : > { %9829 = vmatpush3.bf16.msra.mxu0 %v10912_v10  ;;  %v2668_v16 = vpop.f32.mrb[30].mxu1  ;;  %v10948_v10 = vld [vmem:[%s13117_s4 + $0x4c8] sm:$0xff]  }
 0x450   : > { %9830 = vmatprep.subr.bf16.mxu0 %v10917_v15  ;;  %v3031_v21 = vpack.c.bf16 %v2668_v16, %v2665_v12  ;;  %v2670_v23 = vpop.f32.mrb[31].mxu1 }
 0x451   : > { %v10971_v23 = vld [vmem:[%s13114_s1 + $0x6a4] ss:$8 sps:$4 sm:$0xff]  }
 0x452   : > { %2880 = vmatmul.mubr.bf16.gmra.mrb[136].mxu1 %v10929_v14  ;;  %v10964_v14 = vld [vmem:[%s13114_s1 + $0x690] ss:$8 sps:$4 sm:$0xff]  }
 0x453   : > { %9831 = vmatpush3.bf16.msra.mxu0 %v10917_v15  ;;  %2887 = vmatprep.mubr.bf16.mxu1 %v10936_v18  ;;  %v10952_v15 = vld [vmem:[%s13117_s4 + $0x4d0] sm:$0xff]   ;;  %v10953_v18 = vld [vmem:[%s13117_s4 + $0x4d8] sm:$0xff]  }
 0x454   : > { %9832 = vmatprep.subr.bf16.mxu0 %v10918_v19 }
 0x455   : > { %v2673_v28 = vpop.f32.mrb[32].mxu1 }
 0x456   : > { %v2675_v32 = vpop.f32.mrb[33].mxu1 }
 0x457   : > { %9833 = vmatpush3.bf16.msra.mxu0 %v10918_v19  ;;  %v2676_v34 = vpop.f32.mrb[34].mxu1 }
 0x458   : > { %9834 = vmatprep.subr.bf16.mxu0 %v10922_v27  ;;  %v3032_v39 = vpack.c.bf16 %v2676_v34, %v2673_v28  ;;  %v2678_v17 = vpop.f32.mrb[35].mxu1 }
 0x45a   : > { %2888 = vmatmul.mubr.bf16.gmra.mrb[140].mxu1 %v10934_v30  ;;  %v10969_v30 = vld [vmem:[%s13114_s1 + $0x6a0] ss:$8 sps:$4 sm:$0xff]  }
 0x45b   : > { %9835 = vmatpush3.bf16.msra.mxu0 %v10922_v27  ;;  %2895 = vmatprep.mubr.bf16.mxu1 %v10941_v35  ;;  %v10957_v27 = vld [vmem:[%s13117_s4 + $0x4e0] sm:$0xff]   ;;  %v10976_v35 = vld [vmem:[%s13114_s1 + $0x6b4] ss:$8 sps:$4 sm:$0xff]  }
 0x45c   : > { %9836 = vmatprep.subr.bf16.mxu0 %v10923_v37 }
 0x45d   : > { %v12524_v22 = vpop.f32.mrb[36].mxu1 }
 0x45e   : > { %v2683_v29 = vpop.f32.mrb[37].mxu1 }
 0x45f   : > { %9837 = vmatpush3.bf16.msra.mxu0 %v10923_v37  ;;  %v12529_v31 = vpop.f32.mrb[38].mxu1  ;;  %v10958_v37 = vld [vmem:[%s13117_s4 + $0x4e8] sm:$0xff]  }
 0x460   : > { %9846 = vmatprep.subr.bf16.mxu0 %v10927_v20  ;;  %v3033_v41 = vpack.c.bf16 %v12529_v31, %v12524_v22  ;;  %v2686_v42 = vpop.f32.mrb[39].mxu1 }
 0x462   : > { %9839 = vmatmul.mubr.bf16.vlgmr.msra.gmra.mrb[32].mxu0 %v3029_v1  ;;  %2896 = vmatmul.mubr.bf16.gmra.mrb[144].mxu1 %v10939_v25  ;;  %v10943_v1 = vld [vmem:[%s13117_s4 + $0x4b8] sm:$0xff]  }
 0x463   : > { %9847 = vmatpush3.bf16.msra.mxu0 %v10927_v20  ;;  %9842 = vmatprep.mubr.bf16.mxu0 %v3030_v11  ;;  %v10962_v20 = vld [vmem:[%s13117_s4 + $0x4f0] sm:$0xff]  }
 0x464   : > { %9848 = vmatprep.subr.bf16.mxu0 %v10928_v40  ;;  %2903 = vmatprep.mubr.bf16.mxu1 %v10946_v43  ;;  %v10974_v25 = vld [vmem:[%s13114_s1 + $0x6b0] ss:$8 sps:$4 sm:$0xff]   ;;  %v10967_v43 = vld [vmem:[%s13117_s4 + $0x500] sm:$0xff]  }
 0x465   : > { %v2689_v36 = vpop.f32.mrb[40].mxu1 }
 0x466   : > { %v2691_v44 = vpop.f32.mrb[41].mxu1 }
 0x467   : > { %9849 = vmatpush3.bf16.msra.mxu0 %v10928_v40  ;;  %v2692_v45 = vpop.f32.mrb[42].mxu1  ;;  %v10963_v40 = vld [vmem:[%s13117_s4 + $0x4f8] sm:$0xff]   ;;  %v10968_v44 = vld [vmem:[%s13117_s4 + $0x508] sm:$0xff]  }
 0x468   : > { %9850 = vmatprep.subr.bf16.mxu0 %v10932_v33  ;;  %v3034_v47 = vpack.c.bf16 %v2692_v45, %v2689_v36  ;;  %v2694_v48 = vpop.f32.mrb[43].mxu1 }
 0x46a   : > { %9843 = vmatmul.mubr.bf16.gmra.mrb[36].mxu0 %v3031_v21  ;;  %2904 = vmatmul.mubr.bf16.gmra.mrb[148].mxu1 %v10944_v38 }
 0x46b   : > { %9851 = vmatpush3.bf16.msra.mxu0 %v10932_v33  ;;  %9862 = vmatprep.mubr.bf16.mxu0 %v3032_v39 }
 0x46c   : > { %9852 = vmatprep.subr.bf16.mxu0 %v10933_v46  ;;  %2911 = vmatprep.mubr.bf16.mxu1 %v10951_v49 }
 0x46d   : > { %v2697_v51 = vpop.f32.mrb[44].mxu1 }
 0x46e   : > { %v2699_v53 = vpop.f32.mrb[45].mxu1 }
 0x46f   : > { %9853 = vmatpush3.bf16.msra.mxu0 %v10933_v46  ;;  %v2700_v54 = vpop.f32.mrb[46].mxu1 }
 0x470   : > { %9854 = vmatprep.subr.bf16.mxu0 %v10937_v50  ;;  %v3035_v58 = vpack.c.bf16 %v2700_v54, %v2697_v51  ;;  %v2702_v59 = vpop.f32.mrb[47].mxu1  ;;  %v11008_v51 = vld [vmem:[%s13119_s6 + $0x68] sm:$0xff]  }
 0x471   : > { %10073 = vmatpush3.bf16.msra.mxu1 %v11008_v51 }
 0x472   : > { %2912 = vmatmul.mubr.bf16.gmra.mrb[152].mxu1 %v10949_v52  ;;  %v10973_v52 = vld [vmem:[%s13117_s4 + $0x518] sm:$0xff]   ;;  %10074 = vmatprep.subr.bf16.mxu1 %v11106_v8 }
 0x473   : > { %9855 = vmatpush3.bf16.msra.mxu0 %v10937_v50  ;;  %2919 = vmatprep.mubr.bf16.mxu1 %v10956_v56  ;;  %v10977_v56 = vld [vmem:[%s13117_s4 + $0x520] sm:$0xff]  }
 0x474   : > { %9856 = vmatprep.subr.bf16.mxu0 %v10938_v57 }
 0x475   : > { %v2705_v61 = vpop.f32.mrb[48].mxu1 }
 0x476   : > { %v2707_v62 = vpop.f32.mrb[49].mxu1 }
 0x477   : > { %9857 = vmatpush3.bf16.msra.mxu0 %v10938_v57  ;;  %v2708_v63 = vpop.f32.mrb[50].mxu1  ;;  %v10979_v62 = vld [vmem:[%s13117_s4 + $0x530] sm:$0xff]  }
 0x478   : > { %9858 = vmatprep.subr.bf16.mxu0 %v10942_v60  ;;  %v3036_v2 = vpack.c.bf16 %v2708_v63, %v2705_v61  ;;  %v2710_v3 = vpop.f32.mrb[51].mxu1 }
 0x47a   : > { %2920 = vmatmul.mubr.bf16.gmra.mrb[156].mxu1 %v10954_v55 }
 0x47b   : > { %9859 = vmatpush3.bf16.msra.mxu0 %v10942_v60  ;;  %2927 = vmatprep.mubr.bf16.mxu1 %v10961_v0  ;;  %v10978_v60 = vld [vmem:[%s13117_s4 + $0x528] sm:$0xff]  }
 0x47c   : > { %9860 = vmatprep.subr.bf16.mxu0 %v10943_v1 }
 0x47d   : > { %v12581_v5 = vpop.f32.mrb[52].mxu1 }
 0x47e   : > { %v2715_v7 = vpop.f32.mrb[53].mxu1 }
 0x47f   : > { %9861 = vmatpush3.bf16.msra.mxu0 %v10943_v1  ;;  %v12586_v9 = vpop.f32.mrb[54].mxu1 }
 0x480   : > { %9870 = vmatprep.subr.bf16.mxu0 %v10947_v4  ;;  %v3037_v11 = vpack.c.bf16 %v12586_v9, %v12581_v5  ;;  %v2718_v13 = vpop.f32.mrb[55].mxu1  ;;  %v10982_v5 = vld [vmem:[%s13117_s4 + $0x540] sm:$0xff]  }
 0x482   : > { %9863 = vmatmul.mubr.bf16.vlgmr.msra.gmra.mrb[32].mxu0 %v3033_v41  ;;  %2928 = vmatmul.mubr.bf16.gmra.mrb[160].mxu1 %v10959_v6 }
 0x483   : > { %9871 = vmatpush3.bf16.msra.mxu0 %v10947_v4  ;;  %9866 = vmatprep.mubr.bf16.mxu0 %v3034_v47  ;;  %v10972_v47 = vld [vmem:[%s13117_s4 + $0x510] sm:$0xff]  }
 0x484   : > { %9872 = vmatprep.subr.bf16.mxu0 %v10948_v10  ;;  %2935 = vmatprep.mubr.bf16.mxu1 %v10966_v26  ;;  %v10984_v26 = vld [vmem:[%s13117_s4 + $0x550] sm:$0xff]  }
 0x485   : > { %v2721_v12 = vpop.f32.mrb[56].mxu1 }
 0x486   : > { %v2723_v24 = vpop.f32.mrb[57].mxu1 }
 0x487   : > { %9873 = vmatpush3.bf16.msra.mxu0 %v10948_v10  ;;  %v2724_v16 = vpop.f32.mrb[58].mxu1  ;;  %v10983_v10 = vld [vmem:[%s13117_s4 + $0x548] sm:$0xff]   ;;  %v10985_v24 = vld [vmem:[%s13117_s4 + $0x558] sm:$0xff]  }
 0x488   : > { %9874 = vmatprep.subr.bf16.mxu0 %v10952_v15  ;;  %v3038_v19 = vpack.c.bf16 %v2724_v16, %v2721_v12  ;;  %v2726_v21 = vpop.f32.mrb[59].mxu1 }
 0x48a   : > { %9867 = vmatmul.mubr.bf16.gmra.mrb[36].mxu0 %v3035_v58  ;;  %2936 = vmatmul.mubr.bf16.gmra.mrb[164].mxu1 %v10964_v14 }
 0x48b   : > { %9875 = vmatpush3.bf16.msra.mxu0 %v10952_v15  ;;  %9886 = vmatprep.mubr.bf16.mxu0 %v3036_v2  ;;  %v10981_v2 = vld [vmem:[%s13117_s4 + $0x538] sm:$0xff]  }
 0x48c   : > { %9876 = vmatprep.subr.bf16.mxu0 %v10953_v18  ;;  %2943 = vmatprep.mubr.bf16.mxu1 %v10971_v23 }
 0x48d   : > { %v2729_v28 = vpop.f32.mrb[60].mxu1 }
 0x48e   : > { %v2731_v32 = vpop.f32.mrb[61].mxu1 }
 0x48f   : > { %9877 = vmatpush3.bf16.msra.mxu0 %v10953_v18  ;;  %v2732_v34 = vpop.f32.mrb[62].mxu1 }
 0x490   : > { %9878 = vmatprep.subr.bf16.mxu0 %v10957_v27  ;;  %v3039_v39 = vpack.c.bf16 %v2732_v34, %v2729_v28  ;;  %v2734_v17 = vpop.f32.mrb[63].mxu1  ;;  %v10987_v28 = vld [vmem:[%s13117_s4 + $0x568] sm:$0xff]   ;;  %v10988_v34 = vld [vmem:[%s13117_s4 + $0x570] sm:$0xff]  }
 0x491   : > { %v10989_v17 = vld [vmem:[%s13117_s4 + $0x578] sm:$0xff]  }
 0x492   : > { %2944 = vmatmul.mubr.bf16.gmra.mrb[168].mxu1 %v10969_v30 }
 0x493   : > { %9879 = vmatpush3.bf16.msra.mxu0 %v10957_v27  ;;  %2951 = vmatprep.mubr.bf16.mxu1 %v10976_v35 }
 0x494   : > { %9880 = vmatprep.subr.bf16.mxu0 %v10958_v37 }
 0x495   : > { %v2737_v22 = vpop.f32.mrb[64].mxu1 }
 0x496   : > { %v2739_v29 = vpop.f32.mrb[65].mxu1 }
 0x497   : > { %9881 = vmatpush3.bf16.msra.mxu0 %v10958_v37  ;;  %v2740_v31 = vpop.f32.mrb[66].mxu1 }
 0x498   : > { %9882 = vmatprep.subr.bf16.mxu0 %v10962_v20  ;;  %v3040_v41 = vpack.c.bf16 %v2740_v31, %v2737_v22  ;;  %v2742_v42 = vpop.f32.mrb[67].mxu1 }
 0x49a   : > { %2952 = vmatmul.mubr.bf16.gmra.mrb[172].mxu1 %v10974_v25  ;;  %v10990_v25 = vld [vmem:[%s13117_s4 + $0x580] sm:$0xff]  }
 0x49b   : > { %9883 = vmatpush3.bf16.msra.mxu0 %v10962_v20  ;;  %10078 = vmatprep.mubr.msk.bf16.mxu1 %vm11107_vm0, %v11106_v8 }
 0x49c   : > { %9884 = vmatprep.subr.bf16.mxu0 %v10963_v40 }
 0x49d   : > { %v2745_v33 = vpop.f32.mrb[68].mxu1 }
 0x49e   : > { %v2747_v36 = vpop.f32.mrb[69].mxu1 }
 0x49f   : > { %9885 = vmatpush3.bf16.msra.mxu0 %v10963_v40  ;;  %v2748_v38 = vpop.f32.mrb[70].mxu1 }
 0x4a0   : > { %9894 = vmatprep.subr.bf16.mxu0 %v10967_v43  ;;  %v3041_v45 = vpack.c.bf16 %v2748_v38, %v2745_v33  ;;  %v2750_v46 = vpop.f32.mrb[71].mxu1  ;;  %v10992_v33 = vld [vmem:[%s13117_s4 + $0x590] sm:$0xff]  }
 0x4a2   : > { %9887 = vmatmul.mubr.bf16.vlgmr.msra.gmra.mrb[32].mxu0 %v3037_v11 }
 0x4a3   : > { %9895 = vmatpush3.bf16.msra.mxu0 %v10967_v43  ;;  %9890 = vmatprep.mubr.bf16.mxu0 %v3038_v19  ;;  %v10986_v19 = vld [vmem:[%s13117_s4 + $0x560] sm:$0xff]  }
 0x4a4   : > { %9896 = vmatprep.subr.bf16.mxu0 %v10968_v44 }
 0x4a5   : > { %v2753_v48 = vpop.f32.mrb[72].mxu1 }
 0x4a6   : > { %v2755_v49 = vpop.f32.mrb[73].mxu1 }
 0x4a7   : > { %9897 = vmatpush3.bf16.msra.mxu0 %v10968_v44  ;;  %v2756_v50 = vpop.f32.mrb[74].mxu1 }
 0x4a8   : > { %9898 = vmatprep.subr.bf16.mxu0 %v10972_v47  ;;  %v3042_v53 = vpack.c.bf16 %v2756_v50, %v2753_v48  ;;  %v2758_v54 = vpop.f32.mrb[75].mxu1  ;;  %v10994_v48 = vld [vmem:[%s13117_s4 + $0x5a0] sm:$0xff]  }
 0x4aa   : > { %9891 = vmatmul.mubr.bf16.gmra.mrb[36].mxu0 %v3039_v39 }
 0x4ab   : > { %9899 = vmatpush3.bf16.msra.mxu0 %v10972_v47  ;;  %9910 = vmatprep.mubr.bf16.mxu0 %v3040_v41  ;;  %v10991_v41 = vld [vmem:[%s13117_s4 + $0x588] sm:$0xff]  }
 0x4ac   : > { %9900 = vmatprep.subr.bf16.mxu0 %v10973_v52 }
 0x4ad   : > { %v2761_v57 = vpop.f32.mrb[76].mxu1 }
 0x4ae   : > { %v2763_v58 = vpop.f32.mrb[77].mxu1 }
 0x4af   : > { %9901 = vmatpush3.bf16.msra.mxu0 %v10973_v52  ;;  %v2764_v59 = vpop.f32.mrb[78].mxu1  ;;  %v10995_v52 = vld [vmem:[%s13117_s4 + $0x5a8] sm:$0xff]  }
 0x4b0   : > { %9902 = vmatprep.subr.bf16.mxu0 %v10977_v56  ;;  %v3043_v61 = vpack.c.bf16 %v2764_v59, %v2761_v57  ;;  %v2766_v55 = vpop.f32.mrb[79].mxu1 }
 0x4b3   : > { %9903 = vmatpush3.bf16.msra.mxu0 %v10977_v56  ;;  %v10996_v56 = vld [vmem:[%s13117_s4 + $0x5b0] sm:$0xff]  }
 0x4b4   : > { %9904 = vmatprep.subr.bf16.mxu0 %v10978_v60 }
 0x4b5   : > { %v2769_v63 = vpop.f32.mrb[80].mxu1 }
 0x4b6   : > { %v2771_v0 = vpop.f32.mrb[81].mxu1 }
 0x4b7   : > { %9905 = vmatpush3.bf16.msra.mxu0 %v10978_v60  ;;  %v2772_v1 = vpop.f32.mrb[82].mxu1  ;;  %v10997_v60 = vld [vmem:[%s13117_s4 + $0x5b8] sm:$0xff]  }
 0x4b8   : > { %9906 = vmatprep.subr.bf16.mxu0 %v10979_v62  ;;  %v3044_v3 = vpack.c.bf16 %v2772_v1, %v2769_v63  ;;  %v2774_v4 = vpop.f32.mrb[83].mxu1 }
 0x4bb   : > { %9907 = vmatpush3.bf16.msra.mxu0 %v10979_v62  ;;  %v10998_v62 = vld [vmem:[%s13117_s4 + $0x5c0] sm:$0xff]  }
 0x4bc   : > { %9908 = vmatprep.subr.bf16.mxu0 %v10981_v2 }
 0x4bd   : > { %v2777_v6 = vpop.f32.mrb[84].mxu1 }
 0x4be   : > { %v2779_v7 = vpop.f32.mrb[85].mxu1 }
 0x4bf   : > { %9909 = vmatpush3.bf16.msra.mxu0 %v10981_v2  ;;  %v2780_v9 = vpop.f32.mrb[86].mxu1  ;;  %v10999_v2 = vld [vmem:[%s13117_s4 + $0x5c8] sm:$0xff]  }
 0x4c0   : > { %9918 = vmatprep.subr.bf16.mxu0 %v10982_v5  ;;  %v3045_v11 = vpack.c.bf16 %v2780_v9, %v2777_v6  ;;  %v2782_v13 = vpop.f32.mrb[87].mxu1 }
 0x4c2   : > { %9911 = vmatmul.mubr.bf16.vlgmr.msra.gmra.mrb[32].mxu0 %v3041_v45  ;;  %v10993_v45 = vld [vmem:[%s13117_s4 + $0x598] sm:$0xff]  }
 0x4c3   : > { %9919 = vmatpush3.bf16.msra.mxu0 %v10982_v5  ;;  %9914 = vmatprep.mubr.bf16.mxu0 %v3042_v53  ;;  %v11000_v5 = vld [vmem:[%s13117_s4 + $0x5d0] sm:$0xff]  }
 0x4c4   : > { %9920 = vmatprep.subr.bf16.mxu0 %v10983_v10 }
 0x4c5   : > { %v2785_v15 = vpop.f32.mrb[88].mxu1 }
 0x4c6   : > { %v2787_v12 = vpop.f32.mrb[89].mxu1 }
 0x4c7   : > { %9921 = vmatpush3.bf16.msra.mxu0 %v10983_v10  ;;  %v2788_v14 = vpop.f32.mrb[90].mxu1  ;;  %v11001_v10 = vld [vmem:[%s13117_s4 + $0x5d8] sm:$0xff]  }
 0x4c8   : > { %9922 = vmatprep.subr.bf16.mxu0 %v10984_v26  ;;  %v3046_v16 = vpack.c.bf16 %v2788_v14, %v2785_v15  ;;  %v2790_v18 = vpop.f32.mrb[91].mxu1  ;;  %v11002_v15 = vld [vmem:[%s13117_s4 + $0x5e0] sm:$0xff]   ;;  %v11032_v12 = vld [vmem:[%s13119_s6 + $0x78] sm:$0xff]  }
 0x4c9   : > { %v11003_v18 = vld [vmem:[%s13117_s4 + $0x5e8] sm:$0xff]  }
 0x4ca   : > { %9915 = vmatmul.mubr.bf16.gmra.mrb[36].mxu0 %v3043_v61 }
 0x4cb   : > { %9923 = vmatpush3.bf16.msra.mxu0 %v10984_v26  ;;  %9934 = vmatprep.mubr.bf16.mxu0 %v3044_v3  ;;  %v11031_v26 = vld [vmem:[%s13119_s6 + $0x70] sm:$0xff]  }
 0x4cc   : > { %9924 = vmatprep.subr.bf16.mxu0 %v10985_v24  ;;  %10075 = vmatpush3.bf16.msra.mxu1 %v11031_v26 }
 0x4cd   : > { %v2793_v21 = vpop.f32.mrb[92].mxu1  ;;  %10076 = vmatprep.subr.bf16.mxu1 %v11106_v8 }
 0x4ce   : > { %v2795_v23 = vpop.f32.mrb[93].mxu1 }
 0x4cf   : > { %9925 = vmatpush3.bf16.msra.mxu0 %v10985_v24  ;;  %v2796_v27 = vpop.f32.mrb[94].mxu1  ;;  %v11004_v23 = vld [vmem:[%s13117_s4 + $0x5f0] sm:$0xff]  }
 0x4d0   : > { %9926 = vmatprep.subr.bf16.mxu0 %v10986_v19  ;;  %v3047_v30 = vpack.c.bf16 %v2796_v27, %v2793_v21  ;;  %v2798_v32 = vpop.f32.mrb[95].mxu1  ;;  %10077 = vmatpush3.bf16.msra.mxu1 %v11032_v12  ;;  %v11021_v12 = vld [vmem:[%s13117_s4 + $0x670] sm:$0xff]  }
 0x4d1   : > { %10102 = vmatprep.subr.bf16.mxu1 %v11106_v8  ;;  %v11005_v32 = vld [vmem:[%s13117_s4 + $0x5f8] sm:$0xff]  }
 0x4d3   : > { %9927 = vmatpush3.bf16.msra.mxu0 %v10986_v19 }
 0x4d4   : > { %9928 = vmatprep.subr.bf16.mxu0 %v10987_v28 }
 0x4d5   : > { %v2801_v35 = vpop.f32.mrb[96].mxu1 }
 0x4d6   : > { %v2803_v37 = vpop.f32.mrb[97].mxu1 }
 0x4d7   : > { %9929 = vmatpush3.bf16.msra.mxu0 %v10987_v28  ;;  %v2804_v39 = vpop.f32.mrb[98].mxu1  ;;  %v11006_v37 = vld [vmem:[%s13117_s4 + $0x600] sm:$0xff]  }
 0x4d8   : > { %9930 = vmatprep.subr.bf16.mxu0 %v10988_v34  ;;  %v3048_v20 = vpack.c.bf16 %v2804_v39, %v2801_v35  ;;  %v2806_v22 = vpop.f32.mrb[99].mxu1 }
 0x4d9   : > { %v11007_v22 = vld [vmem:[%s13117_s4 + $0x608] sm:$0xff]  }
 0x4db   : > { %9931 = vmatpush3.bf16.msra.mxu0 %v10988_v34 }
 0x4dc   : > { %9932 = vmatprep.subr.bf16.mxu0 %v10989_v17 }
 0x4dd   : > { %v2809_v29 = vpop.f32.mrb[100].mxu1 }
 0x4de   : > { %v2811_v31 = vpop.f32.mrb[101].mxu1 }
 0x4df   : > { %9933 = vmatpush3.bf16.msra.mxu0 %v10989_v17  ;;  %v2812_v40 = vpop.f32.mrb[102].mxu1  ;;  %v11009_v31 = vld [vmem:[%s13117_s4 + $0x610] sm:$0xff]  }
 0x4e0   : > { %9942 = vmatprep.subr.bf16.mxu0 %v10990_v25  ;;  %v3049_v42 = vpack.c.bf16 %v2812_v40, %v2809_v29  ;;  %v2814_v43 = vpop.f32.mrb[103].mxu1 }
 0x4e1   : > { %v11010_v43 = vld [vmem:[%s13117_s4 + $0x618] sm:$0xff]  }
 0x4e2   : > { %9935 = vmatmul.mubr.bf16.vlgmr.msra.gmra.mrb[32].mxu0 %v3045_v11 }
 0x4e3   : > { %9943 = vmatpush3.bf16.msra.mxu0 %v10990_v25  ;;  %9938 = vmatprep.mubr.bf16.mxu0 %v3046_v16 }
 0x4e4   : > { %9944 = vmatprep.subr.bf16.mxu0 %v10991_v41 }
 0x4e5   : > { %v2817_v36 = vpop.f32.mrb[104].mxu1 }
 0x4e6   : > { %v2819_v38 = vpop.f32.mrb[105].mxu1 }
 0x4e7   : > { %9945 = vmatpush3.bf16.msra.mxu0 %v10991_v41  ;;  %v2820_v44 = vpop.f32.mrb[106].mxu1  ;;  %v11011_v38 = vld [vmem:[%s13117_s4 + $0x620] sm:$0xff]  }
 0x4e8   : > { %9946 = vmatprep.subr.bf16.mxu0 %v10992_v33  ;;  %v3050_v46 = vpack.c.bf16 %v2820_v44, %v2817_v36  ;;  %v2822_v47 = vpop.f32.mrb[107].mxu1 }
 0x4e9   : > { %v11012_v47 = vld [vmem:[%s13117_s4 + $0x628] sm:$0xff]  }
 0x4ea   : > { %9939 = vmatmul.mubr.bf16.gmra.mrb[36].mxu0 %v3047_v30 }
 0x4eb   : > { %9947 = vmatpush3.bf16.msra.mxu0 %v10992_v33  ;;  %9958 = vmatprep.mubr.bf16.mxu0 %v3048_v20 }
 0x4ec   : > { %9948 = vmatprep.subr.bf16.mxu0 %v10993_v45 }
 0x4ed   : > { %v2825_v49 = vpop.f32.mrb[108].mxu1 }
 0x4ee   : > { %v2827_v50 = vpop.f32.mrb[109].mxu1 }
 0x4ef   : > { %9949 = vmatpush3.bf16.msra.mxu0 %v10993_v45  ;;  %v2828_v51 = vpop.f32.mrb[110].mxu1  ;;  %v11013_v50 = vld [vmem:[%s13117_s4 + $0x630] sm:$0xff]  }
 0x4f0   : > { %9950 = vmatprep.subr.bf16.mxu0 %v10994_v48  ;;  %v3051_v53 = vpack.c.bf16 %v2828_v51, %v2825_v49  ;;  %v2830_v54 = vpop.f32.mrb[111].mxu1 }
 0x4f1   : > { %v11014_v54 = vld [vmem:[%s13117_s4 + $0x638] sm:$0xff]  }
 0x4f3   : > { %9951 = vmatpush3.bf16.msra.mxu0 %v10994_v48 }
 0x4f4   : > { %9952 = vmatprep.subr.bf16.mxu0 %v10995_v52 }
 0x4f5   : > { %v2833_v57 = vpop.f32.mrb[112].mxu1 }
 0x4f6   : > { %v2835_v58 = vpop.f32.mrb[113].mxu1 }
 0x4f7   : > { %9953 = vmatpush3.bf16.msra.mxu0 %v10995_v52  ;;  %v2836_v59 = vpop.f32.mrb[114].mxu1  ;;  %v11015_v58 = vld [vmem:[%s13117_s4 + $0x640] sm:$0xff]  }
 0x4f8   : > { %9954 = vmatprep.subr.bf16.mxu0 %v10996_v56  ;;  %v3052_v61 = vpack.c.bf16 %v2836_v59, %v2833_v57  ;;  %v2838_v55 = vpop.f32.mrb[115].mxu1 }
 0x4f9   : > { %v11016_v55 = vld [vmem:[%s13117_s4 + $0x648] sm:$0xff]  }
 0x4fb   : > { %9955 = vmatpush3.bf16.msra.mxu0 %v10996_v56 }
 0x4fc   : > { %9956 = vmatprep.subr.bf16.mxu0 %v10997_v60 }
 0x4fd   : > { %v2841_v63 = vpop.f32.mrb[116].mxu1 }
 0x4fe   : > { %v2843_v0 = vpop.f32.mrb[117].mxu1 }
 0x4ff   : > { %9957 = vmatpush3.bf16.msra.mxu0 %v10997_v60  ;;  %v2844_v1 = vpop.f32.mrb[118].mxu1  ;;  %v11017_v0 = vld [vmem:[%s13117_s4 + $0x650] sm:$0xff]  }
 0x500   : > { %9966 = vmatprep.subr.bf16.mxu0 %v10998_v62  ;;  %v3053_v3 = vpack.c.bf16 %v2844_v1, %v2841_v63  ;;  %v2846_v4 = vpop.f32.mrb[119].mxu1 }
 0x501   : > { %v11018_v4 = vld [vmem:[%s13117_s4 + $0x658] sm:$0xff]  }
 0x502   : > { %9959 = vmatmul.mubr.bf16.vlgmr.msra.gmra.mrb[32].mxu0 %v3049_v42 }
 0x503   : > { %9967 = vmatpush3.bf16.msra.mxu0 %v10998_v62  ;;  %9962 = vmatprep.mubr.bf16.mxu0 %v3050_v46 }
 0x504   : > { %9968 = vmatprep.subr.bf16.mxu0 %v10999_v2 }
 0x505   : > { %v2849_v6 = vpop.f32.mrb[120].mxu1 }
 0x506   : > { %v2851_v7 = vpop.f32.mrb[121].mxu1 }
 0x507   : > { %9969 = vmatpush3.bf16.msra.mxu0 %v10999_v2  ;;  %v2852_v9 = vpop.f32.mrb[122].mxu1  ;;  %v11019_v7 = vld [vmem:[%s13117_s4 + $0x660] sm:$0xff]  }
 0x508   : > { %9970 = vmatprep.subr.bf16.mxu0 %v11000_v5  ;;  %v3054_v11 = vpack.c.bf16 %v2852_v9, %v2849_v6  ;;  %v2854_v13 = vpop.f32.mrb[123].mxu1 }
 0x509   : > { %v11020_v13 = vld [vmem:[%s13117_s4 + $0x668] sm:$0xff]  }
 0x50a   : > { %9963 = vmatmul.mubr.bf16.gmra.mrb[36].mxu0 %v3051_v53 }
 0x50b   : > { %9971 = vmatpush3.bf16.msra.mxu0 %v11000_v5  ;;  %9982 = vmatprep.mubr.bf16.mxu0 %v3052_v61 }
 0x50c   : > { %9972 = vmatprep.subr.bf16.mxu0 %v11001_v10 }
 0x50d   : > { %v2857_v14 = vpop.f32.mrb[124].mxu1 }
 0x50e   : > { %v2859_v24 = vpop.f32.mrb[125].mxu1 }
 0x50f   : > { %9973 = vmatpush3.bf16.msra.mxu0 %v11001_v10  ;;  %v2860_v16 = vpop.f32.mrb[126].mxu1 }
 0x510   : > { %9974 = vmatprep.subr.bf16.mxu0 %v11002_v15  ;;  %v3055_v19 = vpack.c.bf16 %v2860_v16, %v2857_v14  ;;  %v2862_v21 = vpop.f32.mrb[127].mxu1 }
 0x513   : > { %9975 = vmatpush3.bf16.msra.mxu0 %v11002_v15 }
 0x514   : > { %9976 = vmatprep.subr.bf16.mxu0 %v11003_v18 }
 0x515   : > { %v2865_v27 = vpop.f32.mrb[128].mxu1 }
 0x516   : > { %v2867_v28 = vpop.f32.mrb[129].mxu1 }
 0x517   : > { %9977 = vmatpush3.bf16.msra.mxu0 %v11003_v18  ;;  %v2868_v30 = vpop.f32.mrb[130].mxu1  ;;  %v11022_v18 = vld [vmem:[%s13117_s4 + $0x678] sm:$0xff]  }
 0x518   : > { %9978 = vmatprep.subr.bf16.mxu0 %v11004_v23  ;;  %v3056_v34 = vpack.c.bf16 %v2868_v30, %v2865_v27  ;;  %v2870_v35 = vpop.f32.mrb[131].mxu1 }
 0x51b   : > { %9979 = vmatpush3.bf16.msra.mxu0 %v11004_v23  ;;  %v11023_v23 = vld [vmem:[%s13117_s4 + $0x680] sm:$0xff]  }
 0x51c   : > { %9980 = vmatprep.subr.bf16.mxu0 %v11005_v32 }
 0x51d   : > { %v2873_v39 = vpop.f32.mrb[132].mxu1 }
 0x51e   : > { %v2875_v17 = vpop.f32.mrb[133].mxu1 }
 0x51f   : > { %9981 = vmatpush3.bf16.msra.mxu0 %v11005_v32  ;;  %v2876_v20 = vpop.f32.mrb[134].mxu1  ;;  %v11024_v32 = vld [vmem:[%s13117_s4 + $0x688] sm:$0xff]  }
 0x520   : > { %9990 = vmatprep.subr.bf16.mxu0 %v11006_v37  ;;  %v3057_v25 = vpack.c.bf16 %v2876_v20, %v2873_v39  ;;  %v2878_v29 = vpop.f32.mrb[135].mxu1 }
 0x522   : > { %9983 = vmatmul.mubr.bf16.vlgmr.msra.gmra.mrb[32].mxu0 %v3053_v3 }
 0x523   : > { %9991 = vmatpush3.bf16.msra.mxu0 %v11006_v37  ;;  %9986 = vmatprep.mubr.bf16.mxu0 %v3054_v11  ;;  %v11025_v37 = vld [vmem:[%s13117_s4 + $0x690] sm:$0xff]  }
 0x524   : > { %9992 = vmatprep.subr.bf16.mxu0 %v11007_v22 }
 0x525   : > { %v2881_v40 = vpop.f32.mrb[136].mxu1 }
 0x526   : > { %v2883_v41 = vpop.f32.mrb[137].mxu1 }
 0x527   : > { %9993 = vmatpush3.bf16.msra.mxu0 %v11007_v22  ;;  %v2884_v42 = vpop.f32.mrb[138].mxu1  ;;  %v11026_v22 = vld [vmem:[%s13117_s4 + $0x698] sm:$0xff]  }
 0x528   : > { %9994 = vmatprep.subr.bf16.mxu0 %v11009_v31  ;;  %v3058_v33 = vpack.c.bf16 %v2884_v42, %v2881_v40  ;;  %v2886_v36 = vpop.f32.mrb[139].mxu1 }
 0x52a   : > { %9987 = vmatmul.mubr.bf16.gmra.mrb[36].mxu0 %v3055_v19 }
 0x52b   : > { %9995 = vmatpush3.bf16.msra.mxu0 %v11009_v31  ;;  %10006 = vmatprep.mubr.bf16.mxu0 %v3056_v34  ;;  %v11027_v31 = vld [vmem:[%s13117_s4 + $0x6a0] sm:$0xff]  }
 0x52c   : > { %9996 = vmatprep.subr.bf16.mxu0 %v11010_v43 }
 0x52d   : > { %v2889_v44 = vpop.f32.mrb[140].mxu1 }
 0x52e   : > { %v2891_v45 = vpop.f32.mrb[141].mxu1 }
 0x52f   : > { %9997 = vmatpush3.bf16.msra.mxu0 %v11010_v43  ;;  %v2892_v46 = vpop.f32.mrb[142].mxu1  ;;  %v11028_v43 = vld [vmem:[%s13117_s4 + $0x6a8] sm:$0xff]   ;;  %v11033_v45 = vld [vmem:[%s13119_s6] sm:$0xff]  }
 0x530   : > { %9998 = vmatprep.subr.bf16.mxu0 %v11011_v38  ;;  %v3059_v48 = vpack.c.bf16 %v2892_v46, %v2889_v44  ;;  %v2894_v49 = vpop.f32.mrb[143].mxu1  ;;  %v11030_v44 = vld [vmem:[%s13117_s4 + $0x6b8] sm:$0xff]   ;;  %v11034_v46 = vld [vmem:[%s13119_s6 + $0x8] sm:$0xff]  }
 0x531   : > { %v11037_v49 = vld [vmem:[%s13119_s6 + $0x20] sm:$0xff]  }
 0x533   : > { %9999 = vmatpush3.bf16.msra.mxu0 %v11011_v38  ;;  %v11029_v38 = vld [vmem:[%s13117_s4 + $0x6b0] sm:$0xff]  }
 0x534   : > { %10000 = vmatprep.subr.bf16.mxu0 %v11012_v47 }
 0x535   : > { %v2897_v51 = vpop.f32.mrb[144].mxu1 }
 0x536   : > { %v2899_v52 = vpop.f32.mrb[145].mxu1 }
 0x537   : > { %10001 = vmatpush3.bf16.msra.mxu0 %v11012_v47  ;;  %v2900_v53 = vpop.f32.mrb[146].mxu1  ;;  %v11035_v47 = vld [vmem:[%s13119_s6 + $0x10] sm:$0xff]   ;;  %v11040_v52 = vld [vmem:[%s13119_s6 + $0x38] sm:$0xff]  }
 0x538   : > { %10002 = vmatprep.subr.bf16.mxu0 %v11013_v50  ;;  %v3060_v56 = vpack.c.bf16 %v2900_v53, %v2897_v51  ;;  %v2902_v57 = vpop.f32.mrb[147].mxu1  ;;  %v11039_v51 = vld [vmem:[%s13119_s6 + $0x30] sm:$0xff]   ;;  %v8749_v53 = vld [vmem:[%s13118_s5] ss:$0 sm:$0xff] }
 0x53b   : > { %10003 = vmatpush3.bf16.msra.mxu0 %v11013_v50  ;;  %v11038_v50 = vld [vmem:[%s13119_s6 + $0x28] sm:$0xff]  }
 0x53c   : > { %10004 = vmatprep.subr.bf16.mxu0 %v11014_v54 }
 0x53d   : > { %v2905_v59 = vpop.f32.mrb[148].mxu1 }
 0x53e   : > { %v2907_v60 = vpop.f32.mrb[149].mxu1 }
 0x53f   : > { %10005 = vmatpush3.bf16.msra.mxu0 %v11014_v54  ;;  %v2908_v61 = vpop.f32.mrb[150].mxu1 }
 0x540   : > { %10014 = vmatprep.subr.bf16.mxu0 %v11015_v58  ;;  %v3061_v62 = vpack.c.bf16 %v2908_v61, %v2905_v59  ;;  %v2910_v63 = vpop.f32.mrb[151].mxu1 }
 0x542   : > { %10007 = vmatmul.mubr.bf16.vlgmr.msra.gmra.mrb[32].mxu0 %v3057_v25 }
 0x543   : > { %10015 = vmatpush3.bf16.msra.mxu0 %v11015_v58  ;;  %10010 = vmatprep.mubr.bf16.mxu0 %v3058_v33 }
 0x544   : > { %10016 = vmatprep.subr.bf16.mxu0 %v11016_v55 }
 0x545   : > { %v2913_v1 = vpop.f32.mrb[152].mxu1 }
 0x546   : > { %v2915_v2 = vpop.f32.mrb[153].mxu1 }
 0x547   : > { %10017 = vmatpush3.bf16.msra.mxu0 %v11016_v55  ;;  %v2916_v3 = vpop.f32.mrb[154].mxu1 }
 0x548   : > { %10018 = vmatprep.subr.bf16.mxu0 %v11017_v0  ;;  %v3062_v5 = vpack.c.bf16 %v2916_v3, %v2913_v1  ;;  %v2918_v6 = vpop.f32.mrb[155].mxu1 }
 0x54a   : > { %10011 = vmatmul.mubr.bf16.gmra.mrb[36].mxu0 %v3059_v48  ;;  %v11036_v48 = vld [vmem:[%s13119_s6 + $0x18] sm:$0xff]  }
 0x54b   : > { %10019 = vmatpush3.bf16.msra.mxu0 %v11017_v0  ;;  %10030 = vmatprep.mubr.bf16.mxu0 %v3060_v56 }
 0x54c   : > { %10020 = vmatprep.subr.bf16.mxu0 %v11018_v4 }
 0x54d   : > { %v2921_v9 = vpop.f32.mrb[156].mxu1 }
 0x54e   : > { %v2923_v10 = vpop.f32.mrb[157].mxu1 }
 0x54f   : > { %10021 = vmatpush3.bf16.msra.mxu0 %v11018_v4  ;;  %v2924_v11 = vpop.f32.mrb[158].mxu1 }
 0x550   : > { %10022 = vmatprep.subr.bf16.mxu0 %v11019_v7  ;;  %v3063_v26 = vpack.c.bf16 %v2924_v11, %v2921_v9  ;;  %v2926_v15 = vpop.f32.mrb[159].mxu1 }
 0x553   : > { %10023 = vmatpush3.bf16.msra.mxu0 %v11019_v7 }
 0x554   : > { %10024 = vmatprep.subr.bf16.mxu0 %v11020_v13 }
 0x555   : > { %v2929_v14 = vpop.f32.mrb[160].mxu1 }
 0x556   : > { %v2931_v24 = vpop.f32.mrb[161].mxu1 }
 0x557   : > { %10025 = vmatpush3.bf16.msra.mxu0 %v11020_v13  ;;  %v2932_v16 = vpop.f32.mrb[162].mxu1 }
 0x558   : > { %10026 = vmatprep.subr.bf16.mxu0 %v11021_v12  ;;  %v3064_v19 = vpack.c.bf16 %v2932_v16, %v2929_v14  ;;  %v2934_v21 = vpop.f32.mrb[163].mxu1  ;;  %v11041_v16 = vld [vmem:[%s13119_s6 + $0xc0] sm:$0xff]  }
 0x55b   : > { %10027 = vmatpush3.bf16.msra.mxu0 %v11021_v12 }
 0x55c   : > { %10028 = vmatprep.subr.bf16.mxu0 %v11022_v18 }
 0x55d   : > { %v2937_v27 = vpop.f32.mrb[164].mxu1 }
 0x55e   : > { %v2939_v28 = vpop.f32.mrb[165].mxu1 }
 0x55f   : > { %10029 = vmatpush3.bf16.msra.mxu0 %v11022_v18  ;;  %v2940_v30 = vpop.f32.mrb[166].mxu1 }
 0x560   : > { %10038 = vmatprep.subr.bf16.mxu0 %v11023_v23  ;;  %v3065_v34 = vpack.c.bf16 %v2940_v30, %v2937_v27  ;;  %v2942_v35 = vpop.f32.mrb[167].mxu1  ;;  %v11043_v30 = vld [vmem:[%s13119_s6 + $0xc8] sm:$0xff]  }
 0x562   : > { %10031 = vmatmul.mubr.bf16.vlgmr.msra.gmra.mrb[32].mxu0 %v3061_v62 }
 0x563   : > { %10039 = vmatpush3.bf16.msra.mxu0 %v11023_v23  ;;  %10034 = vmatprep.mubr.bf16.mxu0 %v3062_v5  ;;  %v11042_v23 = vld [vmem:[%s13119_s6 + $0x80] sm:$0xff]  }
 0x564   : > { %10040 = vmatprep.subr.bf16.mxu0 %v11024_v32 }
 0x565   : > { %v2945_v39 = vpop.f32.mrb[168].mxu1 }
 0x566   : > { %v2947_v17 = vpop.f32.mrb[169].mxu1 }
 0x567   : > { %10041 = vmatpush3.bf16.msra.mxu0 %v11024_v32  ;;  %v2948_v20 = vpop.f32.mrb[170].mxu1  ;;  %v11046_v17 = vld [vmem:[%s13119_s6 + $0x90] sm:$0xff]  }
 0x568   : > { %10042 = vmatprep.subr.bf16.mxu0 %v11025_v37  ;;  %v3066_v25 = vpack.c.bf16 %v2948_v20, %v2945_v39  ;;  %v2950_v29 = vpop.f32.mrb[171].mxu1 }
 0x569   : > { %v11048_v29 = vld [vmem:[%s13119_s6 + $0x98] sm:$0xff]  }
 0x56a   : > { %10035 = vmatmul.mubr.bf16.gmra.mrb[36].mxu0 %v3063_v26 }
 0x56b   : > { %10043 = vmatpush3.bf16.msra.mxu0 %v11025_v37  ;;  %10054 = vmatprep.mubr.bf16.mxu0 %v3064_v19  ;;  %v11045_v37 = vld [vmem:[%s13119_s6 + $0xd0] sm:$0xff]  }
 0x56c   : > { %10044 = vmatprep.subr.bf16.mxu0 %v11026_v22 }
 0x56d   : > { %v2953_v40 = vpop.f32.mrb[172].mxu1 }
 0x56e   : > { %v2955_v41 = vpop.f32.mrb[173].mxu1 }
 0x56f   : > { %10045 = vmatpush3.bf16.msra.mxu0 %v11026_v22  ;;  %v2956_v42 = vpop.f32.mrb[174].mxu1  ;;  %v11047_v22 = vld [vmem:[%s13119_s6 + $0xd8] sm:$0xff]  }
 0x570   : > { %10046 = vmatprep.subr.bf16.mxu0 %v11027_v31  ;;  %v3067_v33 = vpack.c.bf16 %v2956_v42, %v2953_v40  ;;  %v2958_v36 = vpop.f32.mrb[175].mxu1  ;;  %v11049_v40 = vld [vmem:[%s13119_s6 + $0xe0] sm:$0xff]  }
 0x571   : > { %v11050_v42 = vld [vmem:[%s13119_s6 + $0xa0] sm:$0xff]  }
 0x573   : > { %10047 = vmatpush3.bf16.msra.mxu0 %v11027_v31 }
 0x574   : > { %10048 = vmatprep.subr.bf16.mxu0 %v11028_v43 }
 0x577   : > { %10049 = vmatpush3.bf16.msra.mxu0 %v11028_v43 }
 0x578   : > { %10050 = vmatprep.subr.bf16.mxu0 %v11029_v38 }
 0x57b   : > { %10051 = vmatpush3.bf16.msra.mxu0 %v11029_v38  ;;  %v11052_v38 = vld [vmem:[%s13119_s6 + $0xa8] sm:$0xff]  }
 0x57c   : > { %10052 = vmatprep.subr.bf16.mxu0 %v11030_v44 }
 0x57f   : > { %10053 = vmatpush3.bf16.msra.mxu0 %v11030_v44 }
 0x580   : > { %10082 = vmatprep.subr.bf16.mxu0 %v11106_v8 }
 0x582   : > { %10055 = vmatmul.mubr.bf16.vlgmr.msra.gmra.mrb[32].mxu0 %v3065_v34  ;;  %v11044_v34 = vld [vmem:[%s13119_s6 + $0x88] sm:$0xff]  }
 0x583   : > { %10058 = vmatprep.mubr.bf16.mxu0 %v3066_v25  ;;  %10083 = vmatpush3.bf16.msra.mxu0 %v11033_v45  ;;  %v11053_v45 = vld [vmem:[%s13119_s6 + $0xf0] sm:$0xff]  }
 0x584   : > { %10084 = vmatprep.subr.bf16.mxu0 %v11106_v8 }
 0x587   : > { %10085 = vmatpush3.bf16.msra.mxu0 %v11034_v46 }
 0x588   : > { %10086 = vmatprep.subr.bf16.mxu0 %v11106_v8 }
 0x58a   : > { %10059 = vmatmul.mubr.bf16.gmra.mrb[36].mxu0 %v3067_v33  ;;  %v11051_v33 = vld [vmem:[%s13119_s6 + $0xe8] sm:$0xff]  }
 0x58b   : > { %10087 = vmatpush3.bf16.msra.mxu0 %v11035_v47  ;;  %10098 = vmatprep.mubr.msk.bf16.mxu0 %vm11107_vm0, %v11106_v8  ;;  %v11054_v47 = vld [vmem:[%s13119_s6 + $0xb0] sm:$0xff]  }
 0x58c   : > { %10088 = vmatprep.subr.bf16.mxu0 %v11106_v8 }
 0x58f   : > { %10089 = vmatpush3.bf16.msra.mxu0 %v11036_v48 }
 0x590   : > { %10090 = vmatprep.subr.bf16.mxu0 %v11106_v8 }
 0x593   : > { %10091 = vmatpush3.bf16.msra.mxu0 %v11037_v49  ;;  %v11055_v49 = vld [vmem:[%s13119_s6 + $0xf8] sm:$0xff]  }
 0x594   : > { %10092 = vmatprep.subr.bf16.mxu0 %v11106_v8 }
 0x597   : > { %10093 = vmatpush3.bf16.msra.mxu0 %v11038_v50 }
 0x598   : > { %10094 = vmatprep.subr.bf16.mxu0 %v11106_v8 }
 0x59b   : > { %10095 = vmatpush3.bf16.msra.mxu0 %v11039_v51  ;;  %v11056_v51 = vld [vmem:[%s13119_s6 + $0xb8] sm:$0xff]  }
 0x59c   : > { %10096 = vmatprep.subr.bf16.mxu0 %v11106_v8 }
 0x59f   : > { %10097 = vmatpush3.bf16.msra.mxu0 %v11040_v52 }
 0x5a0   : > { %10122 = vmatprep.subr.bf16.mxu0 %v11106_v8 }
 0x655   : > { %v10056_v54 = vpop.f32.mrb[32].mxu0 }
 0x656   : > { %v6738_v56 = vpop.f32.mrb[33].mxu0  ;;  %v6786_v27 = vadd.f32 %v10056_v54, %v8749_v53 }
 0x657   : > { %v6784_v57 = vadd.f32 %v8749_v53, %v6738_v56  ;;  %v10057_v58 = vpop.f32.mrb[34].mxu0  ;;  %v11058_v56 = vld [vmem:[%s13119_s6 + $0x100] sm:$0xff]  }
 0x658   : > { %v6741_v59 = vpop.f32.mrb[35].mxu0  ;;  %v6787_v19 = vadd.f32 %v10057_v58, %v8749_v53  ;;  %v6794_v35 = vmax.f32 %v6786_v27, 0.0  ;;  %v11059_v58 = vld [vmem:[%s13119_s6 + $0x148] sm:$0xff]  }
 0x659   : > { %v6792_v60 = vmax.f32 %v6784_v57, 0.0  ;;  %v6785_v61 = vadd.f32 %v8749_v53, %v6741_v59 }
 0x65a   : > { %v6795_v32 = vmax.f32 %v6787_v19, 0.0  ;;  %v6812_v20 = vrot.slane %v6794_v35, 4  ;;  %v11071_v19 = vld [vmem:[%s13119_s6 + $0x178] sm:$0xff]  }
 0x65b   : > { %v6800_v55 = vrot.slane %v6792_v60, 4  ;;  %v6793_v62 = vmax.f32 %v6785_v61, 0.0 }
 0x65c   : > { %v6818_v39 = vrot.slane %v6795_v32, 4  ;;  %v6813_v31 = vmax.f32 %v6794_v35, %v6812_v20  ;;  %v11075_v35 = vld [vmem:[%s13119_s6 + $0x1c8] sm:$0xff]  }
 0x65d   : > { %v6801_v63 = vmax.f32 %v6792_v60, %v6800_v55  ;;  %v6806_v0 = vrot.slane %v6793_v62, 4  ;;  %v10060_v1 = vpop.f32.mrb[36].mxu0  ;;  %v11060_v60 = vld [vmem:[%s13119_s6 + $0x108] sm:$0xff]   ;;  %v11061_v55 = vld [vmem:[%s13119_s6 + $0x150] sm:$0xff]  }
 0x65e   : > { %v12852_v2 = vadd.f32 %v10060_v1, %v8749_v53  ;;  %v6754_v3 = vpop.f32.mrb[37].mxu0  ;;  %v6819_v25 = vmax.f32 %v6795_v32, %v6818_v39  ;;  %v6814_v43 = vrot.slane %v6813_v31, 2  ;;  %v11063_v1 = vld [vmem:[%s13119_s6 + $0x158] sm:$0xff]   ;;  %v11074_v32 = vld [vmem:[%s13119_s6 + $0x180] sm:$0xff]   ;;  %v11076_v39 = vld [vmem:[%s13119_s6 + $0x188] sm:$0xff]  }
 0x65f   : > { %v6802_v4 = vrot.slane %v6801_v63, 2  ;;  %v6807_v5 = vmax.f32 %v6793_v62, %v6806_v0  ;;  %v12854_v6 = vadd.f32 %v8749_v53, %v6754_v3  ;;  %v10061_v7 = vpop.f32.mrb[38].mxu0 }
 0x660   : > { %v12856_v9 = vadd.f32 %v10061_v7, %v8749_v53  ;;  %v6757_v10 = vpop.f32.mrb[39].mxu0  ;;  %v6820_v41 = vrot.slane %v6819_v25, 2  ;;  %v6815_v44 = vmax.f32 %v6813_v31, %v6814_v43  ;;  %v11080_v31 = vld [vmem:[%s13119_s6 + $0x198] sm:$0xff]   ;;  %v11082_v43 = vld [vmem:[%s13119_s6 + $0x1a0] sm:$0xff]  }
 0x661   : > { %v6803_v11 = vmax.f32 %v6801_v63, %v6802_v4  ;;  %v6808_v13 = vrot.slane %v6807_v5, 2  ;;  %v12858_v26 = vadd.f32 %v8749_v53, %v6757_v10  ;;  %v11057_v53 = vld [vmem:[%s13119_s6 + $0x140] sm:$0xff]   ;;  %v6796_v61 = vmax.f32 %v12854_v6, 0.0  ;;  %v11062_v63 = vld [vmem:[%s13119_s6 + $0x110] sm:$0xff]   ;;  %v11064_v4 = vld [vmem:[%s13119_s6 + $0x118] sm:$0xff]  }
 0x662   : > { %v6821_v36 = vmax.f32 %v6819_v25, %v6820_v41  ;;  %v6816_v48 = vrot.slane %v6815_v44, 1  ;;  %v11065_v6 = vld [vmem:[%s13119_s6 + $0x160] sm:$0xff]  }
 0x663   : > { %v6804_v15 = vrot.slane %v6803_v11, 1  ;;  %v6809_v12 = vmax.f32 %v6807_v5, %v6808_v13  ;;  %v6797_v59 = vmax.f32 %v12858_v26, 0.0  ;;  %v6824_v0 = vrot.slane %v6796_v61, 4  ;;  %v11066_v10 = vld [vmem:[%s13119_s6 + $0x120] sm:$0xff]   ;;  %v11067_v13 = vld [vmem:[%s13119_s6 + $0x168] sm:$0xff]  }
 0x664   : > { %v6822_v46 = vrot.slane %v6821_v36, 1  ;;  %v6817_v52 = vmax.f32 %v6815_v44, %v6816_v48  ;;  %v11081_v41 = vld [vmem:[%s13119_s6 + $0x1e0] sm:$0xff]   ;;  %v11084_v44 = vld [vmem:[%s13119_s6 + $0x1a8] sm:$0xff]   ;;  %v11086_v48 = vld [vmem:[%s13119_s6 + $0x1b0] sm:$0xff]  }
 0x665   : > { %v6805_v14 = vmax.f32 %v6803_v11, %v6804_v15  ;;  %v6810_v24 = vrot.slane %v6809_v12, 1  ;;  %v6830_v62 = vrot.slane %v6797_v59, 4  ;;  %v6825_v5 = vmax.f32 %v6796_v61, %v6824_v0  ;;  %v11068_v15 = vld [vmem:[%s13119_s6 + $0x128] sm:$0xff]   ;;  %v11093_v61 = vld [vmem:[%s13121_s8 + $0x20] sm:$0xff]  }
 0x666   : > { %v6823_v50 = vmax.f32 %v6821_v36, %v6822_v46  ;;  %v6850_v57 = vpack.c.bf16 %v6817_v52, %v6817_v52  ;;  %v11083_v36 = vld [vmem:[%s13119_s6 + $0x1e8] sm:$0xff]   ;;  %v11085_v46 = vld [vmem:[%s13119_s6 + $0x1f0] sm:$0xff]   ;;  %v11088_v52 = vld [vmem:[%s13119_s6 + $0x1b8] sm:$0xff]  }
 0x667   : > { %v6848_v18 = vpack.c.bf16 %v6805_v14, %v6805_v14  ;;  %v6811_v21 = vmax.f32 %v6809_v12, %v6810_v24  ;;  %v6831_v3 = vmax.f32 %v6797_v59, %v6830_v62  ;;  %v6826_v11 = vrot.slane %v6825_v5, 2  ;;  %v11069_v14 = vld [vmem:[%s13119_s6 + $0x170] sm:$0xff]  }
 0x668   : > { %v6851_v54 = vpack.c.bf16 %v6823_v50, %v6823_v50  ;;  %v11087_v50 = vld [vmem:[%s13119_s6 + $0x1f8] sm:$0xff]   ;;  %v11091_v59 = vld [vmem:[%s13121_s8 + $0x10] sm:$0xff]  }
 0x669   : > { %v6849_v28 = vpack.c.bf16 %v6811_v21, %v6811_v21  ;;  %10099 = vmatmul.mubr.bf16.vlgmr.msra.gmra.mrb[40].mxu0 %v6848_v18  ;;  %v6832_v7 = vrot.slane %v6831_v3, 2  ;;  %v6827_v12 = vmax.f32 %v6825_v5, %v6826_v11  ;;  %v11095_v62 = vld [vmem:[%s13121_s8 + $0x30] sm:$0xff]  }
 0x66a   : > { %10123 = vmatpush3.bf16.msra.mxu0 %v11041_v16  ;;  %10138 = vmatprep.mubr.msk.bf16.mxu0 %vm11107_vm0, %v11106_v8  ;;  %v11070_v16 = vld [vmem:[%s13119_s6 + $0x130] sm:$0xff]  }
 0x66b   : > { %10079 = vmatmul.mubr.bf16.vlgmr.msra.gmra.mrb[176].mxu1 %v6849_v28  ;;  %10124 = vmatprep.subr.bf16.mxu0 %v11106_v8  ;;  %v6833_v26 = vmax.f32 %v6831_v3, %v6832_v7  ;;  %v6828_v18 = vrot.slane %v6827_v12, 1  ;;  %v11073_v28 = vld [vmem:[%s13119_s6 + $0x1c0] sm:$0xff]  }
 0x66c   : > { %10103 = vmatpush3.bf16.msra.mxu1 %v11042_v23  ;;  %10118 = vmatprep.mubr.msk.bf16.mxu1 %vm11107_vm0, %v11106_v8  ;;  %v11072_v23 = vld [vmem:[%s13119_s6 + $0x138] sm:$0xff]  }
 0x66d   : > { %10104 = vmatprep.subr.bf16.mxu1 %v11106_v8  ;;  %v6834_v24 = vrot.slane %v6833_v26, 1  ;;  %v6829_v27 = vmax.f32 %v6827_v12, %v6828_v18 }
 0x66e   : > { %10125 = vmatpush3.bf16.msra.mxu0 %v11043_v30 }
 0x66f   : > { %10126 = vmatprep.subr.bf16.mxu0 %v11106_v8  ;;  %v6835_v21 = vmax.f32 %v6833_v26, %v6834_v24 }
 0x670   : > { %10105 = vmatpush3.bf16.msra.mxu1 %v11044_v34  ;;  %v6852_v34 = vpack.c.bf16 %v6829_v27, %v6829_v27 }
 0x671   : > { %10106 = vmatprep.subr.bf16.mxu1 %v11106_v8  ;;  %v6853_v30 = vpack.c.bf16 %v6835_v21, %v6835_v21 }
 0x672   : > { %10127 = vmatpush3.bf16.msra.mxu0 %v11045_v37  ;;  %v6799_v37 = vmax.f32 %v12856_v9, 0.0  ;;  %v11077_v9 = vld [vmem:[%s13119_s6 + $0x1d0] sm:$0xff]  }
 0x673   : > { %10128 = vmatprep.subr.bf16.mxu0 %v11106_v8 }
 0x674   : > { %10107 = vmatpush3.bf16.msra.mxu1 %v11046_v17  ;;  %v6798_v17 = vmax.f32 %v12852_v2, 0.0  ;;  %v6842_v20 = vrot.slane %v6799_v37, 4  ;;  %v11079_v2 = vld [vmem:[%s13119_s6 + $0x1d8] sm:$0xff]  }
 0x675   : > { %10108 = vmatprep.subr.bf16.mxu1 %v11106_v8 }
 0x676   : > { %10129 = vmatpush3.bf16.msra.mxu0 %v11047_v22  ;;  %v11078_v22 = vld [vmem:[%s13119_s6 + $0x190] sm:$0xff]   ;;  %v6836_v25 = vrot.slane %v6798_v17, 4 }
 0x677   : > { %10130 = vmatprep.subr.bf16.mxu0 %v11106_v8 }
 0x678   : > { %10109 = vmatpush3.bf16.msra.mxu1 %v11048_v29  ;;  %v6843_v29 = vmax.f32 %v6799_v37, %v6842_v20 }
 0x679   : > { %10110 = vmatprep.subr.bf16.mxu1 %v11106_v8 }
 0x67a   : > { %10131 = vmatpush3.bf16.msra.mxu0 %v11049_v40  ;;  %v6837_v40 = vmax.f32 %v6798_v17, %v6836_v25 }
 0x67b   : > { %10132 = vmatprep.subr.bf16.mxu0 %v11106_v8 }
 0x67c   : > { %10111 = vmatpush3.bf16.msra.mxu1 %v11050_v42  ;;  %v6844_v42 = vrot.slane %v6843_v29, 2 }
 0x67d   : > { %10112 = vmatprep.subr.bf16.mxu1 %v11106_v8 }
 0x67e   : > { %10133 = vmatpush3.bf16.msra.mxu0 %v11051_v33  ;;  %v6838_v33 = vrot.slane %v6837_v40, 2 }
 0x67f   : > { %10134 = vmatprep.subr.bf16.mxu0 %v11106_v8 }
 0x680   : > { %10113 = vmatpush3.bf16.msra.mxu1 %v11052_v38  ;;  %v6845_v38 = vmax.f32 %v6843_v29, %v6844_v42 }
 0x681   : > { %10114 = vmatprep.subr.bf16.mxu1 %v11106_v8 }
 0x682   : > { %10135 = vmatpush3.bf16.msra.mxu0 %v11053_v45  ;;  %v6839_v45 = vmax.f32 %v6837_v40, %v6838_v33 }
 0x683   : > { %10136 = vmatprep.subr.bf16.mxu0 %v11106_v8 }
 0x684   : > { %10115 = vmatpush3.bf16.msra.mxu1 %v11054_v47  ;;  %v6846_v47 = vrot.slane %v6845_v38, 1 }
 0x685   : > { %10116 = vmatprep.subr.bf16.mxu1 %v11106_v8 }
 0x686   : > { %10137 = vmatpush3.bf16.msra.mxu0 %v11055_v49  ;;  %v6840_v49 = vrot.slane %v6839_v45, 1 }
 0x687   : > { %10162 = vmatprep.subr.bf16.mxu0 %v11106_v8 }
 0x688   : > { %10117 = vmatpush3.bf16.msra.mxu1 %v11056_v51  ;;  %v6847_v51 = vmax.f32 %v6845_v38, %v6846_v47  ;;  %v7810_v38 = vlaneseq }
 0x689   : > { %10139 = vmatmul.mubr.bf16.vlgmr.msra.gmra.mrb[44].mxu0 %v6851_v54  ;;  %10142 = vmatprep.subr.bf16.mxu1 %v11106_v8 }
 0x68a   : > { %10163 = vmatpush3.bf16.msra.mxu0 %v11057_v53  ;;  %10178 = vmatprep.mubr.msk.bf16.mxu0 %vm11107_vm0, %v11106_v8  ;;  %v6841_v53 = vmax.f32 %v6839_v45, %v6840_v49  ;;  %v6855_v54 = vpack.c.bf16 %v6847_v51, %v6847_v51  ;;  %v7721_v45 = vld [vmem:[%s13122_s9] sm:$0x1] }
 0x68b   : > { %10119 = vmatmul.mubr.bf16.vlgmr.msra.gmra.mrb[180].mxu1 %v6850_v57  ;;  %10164 = vmatprep.subr.bf16.mxu0 %v11106_v8  ;;  %v11089_v57 = vld [vmem:[%s13121_s8] sm:$0xff]  }
 0x68c   : > { %10143 = vmatpush3.bf16.msra.mxu1 %v11058_v56  ;;  %10158 = vmatprep.mubr.msk.bf16.mxu1 %vm11107_vm0, %v11106_v8  ;;  %v6854_v56 = vpack.c.bf16 %v6841_v53, %v6841_v53 }
 0x68d   : > { %10144 = vmatprep.subr.bf16.mxu1 %v11106_v8 }
 0x68e   : > { %10165 = vmatpush3.bf16.msra.mxu0 %v11059_v58  ;;  %v11090_v58 = vld [vmem:[%s13121_s8 + $0x8] sm:$0xff]  }
 0x68f   : > { %10166 = vmatprep.subr.bf16.mxu0 %v11106_v8 }
 0x690   : > { %10145 = vmatpush3.bf16.msra.mxu1 %v11060_v60  ;;  %v11092_v60 = vld [vmem:[%s13121_s8 + $0x18] sm:$0xff]  }
 0x691   : > { %10146 = vmatprep.subr.bf16.mxu1 %v11106_v8 }
 0x692   : > { %10167 = vmatpush3.bf16.msra.mxu0 %v11061_v55  ;;  %v11094_v55 = vld [vmem:[%s13121_s8 + $0x28] sm:$0xff]  }
 0x693   : > { %10168 = vmatprep.subr.bf16.mxu0 %v11106_v8 }
 0x694   : > { %10147 = vmatpush3.bf16.msra.mxu1 %v11062_v63  ;;  %v11096_v63 = vld [vmem:[%s13121_s8 + $0x38] sm:$0xff]  }
 0x695   : > { %10148 = vmatprep.subr.bf16.mxu1 %v11106_v8 }
 0x696   : > { %10169 = vmatpush3.bf16.msra.mxu0 %v11063_v1 }
 0x697   : > { %10170 = vmatprep.subr.bf16.mxu0 %v11106_v8 }
 0x698   : > { %10149 = vmatpush3.bf16.msra.mxu1 %v11064_v4 }
 0x699   : > { %10150 = vmatprep.subr.bf16.mxu1 %v11106_v8 }
 0x69a   : > { %10171 = vmatpush3.bf16.msra.mxu0 %v11065_v6 }
 0x69b   : > { %10172 = vmatprep.subr.bf16.mxu0 %v11106_v8 }
 0x69c   : > { %10151 = vmatpush3.bf16.msra.mxu1 %v11066_v10 }
 0x69d   : > { %10152 = vmatprep.subr.bf16.mxu1 %v11106_v8 }
 0x69e   : > { %10173 = vmatpush3.bf16.msra.mxu0 %v11067_v13 }
 0x69f   : > { %10174 = vmatprep.subr.bf16.mxu0 %v11106_v8 }
 0x6a0   : > { %10153 = vmatpush3.bf16.msra.mxu1 %v11068_v15 }
 0x6a1   : > { %10154 = vmatprep.subr.bf16.mxu1 %v11106_v8 }
 0x6a2   : > { %10175 = vmatpush3.bf16.msra.mxu0 %v11069_v14 }
 0x6a3   : > { %10176 = vmatprep.subr.bf16.mxu0 %v11106_v8 }
 0x6a4   : > { %10155 = vmatpush3.bf16.msra.mxu1 %v11070_v16 }
 0x6a5   : > { %10156 = vmatprep.subr.bf16.mxu1 %v11106_v8 }
 0x6a6   : > { %10177 = vmatpush3.bf16.msra.mxu0 %v11071_v19 }
 0x6a7   : > { %10202 = vmatprep.subr.bf16.mxu0 %v11106_v8 }
 0x6a8   : > { %10157 = vmatpush3.bf16.msra.mxu1 %v11072_v23 }
 0x6a9   : > { %10179 = vmatmul.mubr.bf16.vlgmr.msra.gmra.mrb[48].mxu0 %v6853_v30  ;;  %10182 = vmatprep.subr.bf16.mxu1 %v11106_v8 }
 0x6aa   : > { %10203 = vmatpush3.bf16.msra.mxu0 %v11073_v28  ;;  %10218 = vmatprep.mubr.msk.bf16.mxu0 %vm11107_vm0, %v11106_v8 }
 0x6ab   : > { %10159 = vmatmul.mubr.bf16.vlgmr.msra.gmra.mrb[184].mxu1 %v6852_v34  ;;  %10204 = vmatprep.subr.bf16.mxu0 %v11106_v8 }
 0x6ac   : > { %10183 = vmatpush3.bf16.msra.mxu1 %v11074_v32  ;;  %10198 = vmatprep.mubr.msk.bf16.mxu1 %vm11107_vm0, %v11106_v8 }
 0x6ad   : > { %10184 = vmatprep.subr.bf16.mxu1 %v11106_v8 }
 0x6ae   : > { %10205 = vmatpush3.bf16.msra.mxu0 %v11075_v35 }
 0x6af   : > { %10206 = vmatprep.subr.bf16.mxu0 %v11106_v8 }
 0x6b0   : > { %10185 = vmatpush3.bf16.msra.mxu1 %v11076_v39 }
 0x6b1   : > { %10186 = vmatprep.subr.bf16.mxu1 %v11106_v8 }
 0x6b2   : > { %10207 = vmatpush3.bf16.msra.mxu0 %v11077_v9 }
 0x6b3   : > { %10208 = vmatprep.subr.bf16.mxu0 %v11106_v8 }
 0x6b4   : > { %10187 = vmatpush3.bf16.msra.mxu1 %v11078_v22 }
 0x6b5   : > { %10188 = vmatprep.subr.bf16.mxu1 %v11106_v8 }
 0x6b6   : > { %10209 = vmatpush3.bf16.msra.mxu0 %v11079_v2 }
 0x6b7   : > { %10210 = vmatprep.subr.bf16.mxu0 %v11106_v8 }
 0x6b8   : > { %10189 = vmatpush3.bf16.msra.mxu1 %v11080_v31  ;;  %v7701_v31 = vld [vmem:[%s13120_s7] sm:$0x1] }
 0x6b9   : > { %10190 = vmatprep.subr.bf16.mxu1 %v11106_v8 }
 0x6ba   : > { %10211 = vmatpush3.bf16.msra.mxu0 %v11081_v41 }
 0x6bb   : > { %10212 = vmatprep.subr.bf16.mxu0 %v11106_v8 }
 0x6bc   : > { %10191 = vmatpush3.bf16.msra.mxu1 %v11082_v43 }
 0x6bd   : > { %10192 = vmatprep.subr.bf16.mxu1 %v11106_v8 }
 0x6be   : > { %10213 = vmatpush3.bf16.msra.mxu0 %v11083_v36 }
 0x6bf   : > { %10214 = vmatprep.subr.bf16.mxu0 %v11106_v8 }
 0x6c0   : > { %10193 = vmatpush3.bf16.msra.mxu1 %v11084_v44  ;;  %v7811_v44 = vshrl.u32 %v7810_v38, 7 }
 0x6c1   : > { %10194 = vmatprep.subr.bf16.mxu1 %v11106_v8 }
 0x6c2   : > { %10215 = vmatpush3.bf16.msra.mxu0 %v11085_v46  ;;  %v7812_v46 = vsub.s32 0, %v7811_v44 }
 0x6c3   : > { %10216 = vmatprep.subr.bf16.mxu0 %v11106_v8 }
 0x6c4   : > { %10195 = vmatpush3.bf16.msra.mxu1 %v11086_v48 }
 0x6c5   : > { %10196 = vmatprep.subr.bf16.mxu1 %v11106_v8 }
 0x6c6   : > { %10217 = vmatpush3.bf16.msra.mxu0 %v11087_v50 }
 0x6c8   : > { %10197 = vmatpush3.bf16.msra.mxu1 %v11088_v52 }
 0x6c9   : > { %10219 = vmatmul.mubr.bf16.vlgmr.msra.gmra.mrb[52].mxu0 %v6855_v54  ;;  %10222 = vmatprep.subr.bf16.mxu1 %v11106_v8 }
 0x6cb   : > { %10199 = vmatmul.mubr.bf16.vlgmr.msra.gmra.mrb[188].mxu1 %v6854_v56 }
 0x6cc   : > { %10238 = vmatprep.mubr.msk.bf16.mxu1 %vm11107_vm0, %v11106_v8  ;;  %10223 = vmatpush3.bf16.msra.mxu1 %v11089_v57 }
 0x6cd   : > { %10224 = vmatprep.subr.bf16.mxu1 %v11106_v8 }
 0x6d0   : > { %10225 = vmatpush3.bf16.msra.mxu1 %v11090_v58 }
 0x6d1   : > { %10226 = vmatprep.subr.bf16.mxu1 %v11106_v8 }
 0x6d4   : > { %10227 = vmatpush3.bf16.msra.mxu1 %v11091_v59 }
 0x6d5   : > { %10228 = vmatprep.subr.bf16.mxu1 %v11106_v8 }
 0x6d8   : > { %10229 = vmatpush3.bf16.msra.mxu1 %v11092_v60 }
 0x6d9   : > { %10230 = vmatprep.subr.bf16.mxu1 %v11106_v8 }
 0x6dc   : > { %10231 = vmatpush3.bf16.msra.mxu1 %v11093_v61 }
 0x6dd   : > { %10232 = vmatprep.subr.bf16.mxu1 %v11106_v8 }
 0x6e0   : > { %10233 = vmatpush3.bf16.msra.mxu1 %v11094_v55 }
 0x6e1   : > { %10234 = vmatprep.subr.bf16.mxu1 %v11106_v8 }
 0x6e4   : > { %10235 = vmatpush3.bf16.msra.mxu1 %v11095_v62 }
 0x6e5   : > { %10236 = vmatprep.subr.bf16.mxu1 %v11106_v8 }
 0x6e8   : > { %10237 = vmatpush3.bf16.msra.mxu1 %v11096_v63 }
 0x73c   : > { %v7059_v0 = vpop.f32.mrb[40].mxu0 }
 0x73d   : > { %v10100_v1 = vpop.f32.mrb[41].mxu0 }
 0x73e   : > { %v6971_v3 = vpop.f32.mrb[176].mxu1  ;;  %v7062_v4 = vpop.f32.mrb[42].mxu0 }
 0x73f   : > { %v7060_v5 = vadd.f32 %v7059_v0, %v6971_v3  ;;  %v10080_v6 = vpop.f32.mrb[177].mxu1  ;;  %v10101_v7 = vpop.f32.mrb[43].mxu0 }
 0x740   : > { %v6974_v10 = vpop.f32.mrb[178].mxu1 }
 0x741   : > { %v10081_v11 = vpop.f32.mrb[179].mxu1 }
 0x75c   : > { %v7270_v13 = vpop.f32.mrb[44].mxu0 }
 0x75d   : > { %v10140_v26 = vpop.f32.mrb[45].mxu0 }
 0x75e   : > { %v7164_v15 = vpop.f32.mrb[180].mxu1  ;;  %v7273_v12 = vpop.f32.mrb[46].mxu0 }
 0x75f   : > { %v7170_v14 = vadd.f32 %v7164_v15, %v7060_v5  ;;  %v10120_v8 = vpop.f32.mrb[181].mxu1  ;;  %v10141_v24 = vpop.f32.mrb[47].mxu0 }
 0x760   : > { %v7167_v16 = vpop.f32.mrb[182].mxu1 }
 0x761   : > { %v10121_v18 = vpop.f32.mrb[183].mxu1  ;;  %v7276_v19 = vadd.f32 %v7270_v13, %v7170_v14 }
 0x77c   : > { %v7482_v21 = vpop.f32.mrb[48].mxu0 }
 0x77d   : > { %v10180_v23 = vpop.f32.mrb[49].mxu0 }
 0x77e   : > { %v7376_v27 = vpop.f32.mrb[184].mxu1  ;;  %v7485_v28 = vpop.f32.mrb[50].mxu0 }
 0x77f   : > { %v7382_v30 = vadd.f32 %v7376_v27, %v7276_v19  ;;  %v10160_v32 = vpop.f32.mrb[185].mxu1  ;;  %v10181_v34 = vpop.f32.mrb[51].mxu0 }
 0x780   : > { %v7379_v35 = vpop.f32.mrb[186].mxu1 }
 0x781   : > { %v10161_v37 = vpop.f32.mrb[187].mxu1  ;;  %v7488_v39 = vadd.f32 %v7482_v21, %v7382_v30 }
 0x79c   : > { %v7694_v17 = vpop.f32.mrb[52].mxu0 }
 0x79d   : > { %v10220_v9 = vpop.f32.mrb[53].mxu0 }
 0x79e   : > { %v7588_v20 = vpop.f32.mrb[188].mxu1  ;;  %v7697_v22 = vpop.f32.mrb[54].mxu0 }
 0x79f   : > { %v7594_v25 = vadd.f32 %v7588_v20, %v7488_v39  ;;  %v10200_v2 = vpop.f32.mrb[189].mxu1  ;;  %v10221_v29 = vpop.f32.mrb[55].mxu0 }
 0x7a0   : > { %v7591_v40 = vpop.f32.mrb[190].mxu1 }
 0x7a1   : > { %v7700_v41 = vadd.f32 %v7694_v17, %v7594_v25  ;;  %v10201_v42 = vpop.f32.mrb[191].mxu1 }
 0x7a3   : > { %v7702_v43 = vadd.f32 %v7701_v31, %v7700_v41 }
 0x7a5   : > { %v7703_v33 = vmax.f32 %v7702_v43, 0.0 }
 0x7a7   : > { %v7704_v36 = vpack.c.bf16 %v7703_v33, %v7703_v33 }
 0x7a9   : > { %10239 = vmatmul.mubr.bf16.vlgmr.msra.gmra.mrb[192].mxu1 %v7704_v36 }
 0x87c   : > { %v7804_v47 = vpop.f32.mrb[192].mxu1 }
 0x87d   : > { %v7805_v48 = vadd.f32 %v7804_v47, %v7721_v45  ;;  %v10240_v49 = vpop.f32.mrb[193].mxu1 }
 0x87e   : > { %v7807_v50 = vpop.f32.mrb[194].mxu1 }
 0x87f   : > { %v7813_v51 = vrot.slane %v7805_v48, %v7812_v46  ;;  %v10241_v52 = vpop.f32.mrb[195].mxu1 }
 0x881   : > { %7814 = vst [vmem:[%s357_s28] sm:$0xff] %v7813_v51 }
 0x882 PF: > { %s20_s13 = sadd.s32 1, %s11103_s13  }
 0x883   : > { %p17_p4 = scmp.ge.s32.totalorder %s20_s13, 4  }
 0x885   :  { %19 = sbr.rel (!%p17_p4) target bundleno = 1 (0x1), region = 123 }

</bundles_post_ra>
